<compile_context>
chip_gen: v6e
topology: v6e:2x2x1
jax: 0.10.0
libtpu: 0.0.40
codegen_flags: <defaults>
</compile_context>

<pallas_src>
import functools

import jax
import jax.numpy as jnp
from jax.experimental import pallas as pl
from jax.experimental.pallas import tpu as pltpu

IMG_WIDTH = 16
IMG_HEIGHT = 16
IN_DIM = 3 * IMG_WIDTH * IMG_HEIGHT  # 768

# Layer dims of the autoencoder (PyTorch nn.Linear chain).
DIMS = [IN_DIM, 256, 128, 64, 128, 256, IN_DIM]


def _round_up(x, m):
    return ((x + m - 1) // m) * m


def _mlp_ae_kernel(x_ref,
                   w1, b1, w2, b2, w3, b3,   # encoder
                   w4, b4, w5, b5, w6, b6,   # decoder
                   o_ref):
    """Full 6-layer forward for one (TILE_M, 768) batch tile.

    Weights are bf16 (MXU-native); matmuls accumulate in f32; bias add, ReLU
    and sigmoid stay in f32.
    """
    def linear(h_bf16, w_ref, b_ref):
        # (TILE_M, in) @ (in, out) -> f32 (TILE_M, out), + (1, out) f32 bias.
        return jnp.dot(h_bf16, w_ref[...],
                       preferred_element_type=jnp.float32) + b_ref[...]

    def relu_bf16(h_f32):
        return jnp.maximum(h_f32, 0.0).astype(jnp.bfloat16)

    h = x_ref[...].astype(jnp.bfloat16)          # single cast, no extra f32 copy
    # encoder
    h = relu_bf16(linear(h, w1, b1))
    h = relu_bf16(linear(h, w2, b2))
    h = linear(h, w3, b3)                        # encoded (no activation), f32
    # decoder
    h = relu_bf16(linear(h.astype(jnp.bfloat16), w4, b4))
    h = relu_bf16(linear(h, w5, b5))
    h = linear(h, w6, b6)                        # logits, f32
    o_ref[...] = jax.nn.sigmoid(h).astype(o_ref.dtype)


def init_params(key):
    """PyTorch-default-style init: U(-1/sqrt(fan_in), +1/sqrt(fan_in)).

    Weights are stored already-transposed as (in, out) so the kernel does x @ W.
    """
    params = []
    keys = jax.random.split(key, 2 * (len(DIMS) - 1))
    for i in range(len(DIMS) - 1):
        fan_in, fan_out = DIMS[i], DIMS[i + 1]
        bound = 1.0 / jnp.sqrt(jnp.float32(fan_in))
        w = jax.random.uniform(keys[2 * i], (fan_in, fan_out),
                               minval=-bound, maxval=bound, dtype=jnp.float32)
        b = jax.random.uniform(keys[2 * i + 1], (1, fan_out),
                               minval=-bound, maxval=bound, dtype=jnp.float32)
        params += [w, b]
    return params


def _resident_spec(shape):
    """Full-shape block with a constant index_map -> stays in VMEM across grid."""
    return pl.BlockSpec(shape, lambda i: (0,) * len(shape))


@functools.partial(jax.jit, static_argnames=())
def mlp_autoencoder_forward(x_nchw, params):
    """x_nchw: (N, 3, IMG_WIDTH, IMG_HEIGHT) f32 -> same shape, values in (0, 1)."""
    n = x_nchw.shape[0]
    x_flat = x_nchw.reshape(n, IN_DIM)           # glue: x.view(-1, 3*W*H)

    # --- batch tiling: multiple of 8, >=128 when possible, capped at 512 ---
    tile_m = min(512, max(128, _round_up(n, 8)))
    n_pad = _round_up(n, tile_m)
    if n_pad != n:
        x_flat = jnp.pad(x_flat, ((0, n_pad - n), (0, 0)))
    grid = (n_pad // tile_m,)

    # Weights go to the MXU in bf16 (cast once here, not per grid step);
    # biases stay f32 for the f32 accumulate/add path.
    kernel_params = []
    for i in range(0, len(params), 2):
        kernel_params.append(params[i].astype(jnp.bfloat16))   # weight
        kernel_params.append(params[i + 1])                    # bias (f32)

    io_spec = pl.BlockSpec((tile_m, IN_DIM), lambda i: (i, 0))
    in_specs = [io_spec] + [_resident_spec(p.shape) for p in kernel_params]

    # Advisory cost estimate for XLA's scheduler.
    flops_per_row = 2 * sum(DIMS[i] * DIMS[i + 1] for i in range(len(DIMS) - 1))
    weight_bytes = sum(p.size * p.dtype.itemsize for p in kernel_params)
    cost = pl.CostEstimate(
        flops=flops_per_row * n_pad,
        transcendentals=n_pad * IN_DIM,                       # sigmoid
        bytes_accessed=2 * n_pad * IN_DIM * 4 + weight_bytes,
    )

    out_flat = pl.pallas_call(
        _mlp_ae_kernel,
        out_shape=jax.ShapeDtypeStruct((n_pad, IN_DIM), jnp.float32),
        grid=grid,
        in_specs=in_specs,
        out_specs=io_spec,
        compiler_params=pltpu.CompilerParams(
            dimension_semantics=("parallel",),
            vmem_limit_bytes=32 << 20,
        ),
        cost_estimate=cost,
    )(x_flat, *kernel_params)

    out_flat = out_flat[:n]
    return out_flat.reshape(n, 3, IMG_WIDTH, IMG_HEIGHT)


def _reference_forward(x_nchw, params):
    """Pure-JAX f32 reference for a sanity check."""
    n = x_nchw.shape[0]
    h = x_nchw.reshape(n, IN_DIM)
    w1, b1, w2, b2, w3, b3, w4, b4, w5, b5, w6, b6 = params
    h = jnp.maximum(h @ w1 + b1, 0.0)
    h = jnp.maximum(h @ w2 + b2, 0.0)
    h = h @ w3 + b3
    h = jnp.maximum(h @ w4 + b4, 0.0)
    h = jnp.maximum(h @ w5 + b5, 0.0)
    h = jax.nn.sigmoid(h @ w6 + b6)
    return h.reshape(n, 3, IMG_WIDTH, IMG_HEIGHT)


if __name__ == "__main__":
    key = jax.random.PRNGKey(0)
    key_x, key_p = jax.random.split(key)

    batch = 2
    x = jax.random.uniform(key_x, (batch, 3, IMG_WIDTH, IMG_HEIGHT),
                           dtype=jnp.float32)
    params = init_params(key_p)

    out = mlp_autoencoder_forward(x, params)
    out = jax.block_until_ready(out)

    ref = _reference_forward(x, params)
    assert out.shape == (batch, 3, IMG_WIDTH, IMG_HEIGHT)
    # bf16 MXU inputs + f32 accumulation vs. pure-f32 reference -> loose tol;
    # outputs are post-sigmoid in (0, 1), so 2e-2 absolute is a tight check.
    assert jnp.allclose(out, ref, atol=2e-2, rtol=2e-2), (
        float(jnp.max(jnp.abs(out - ref))))

    print("KERNEL_OK")
</pallas_src>

<mosaic_0001>
module attributes {stable_mosaic.version = 11 : i64} {
  func.func @_mlp_ae_kernel(%arg0: i32, %arg1: memref<128x768xf32, #tpu.memory_space<vmem>>, %arg2: memref<768x256xbf16, #tpu.memory_space<vmem>>, %arg3: memref<1x256xf32, #tpu.memory_space<vmem>>, %arg4: memref<256x128xbf16, #tpu.memory_space<vmem>>, %arg5: memref<1x128xf32, #tpu.memory_space<vmem>>, %arg6: memref<128x64xbf16, #tpu.memory_space<vmem>>, %arg7: memref<1x64xf32, #tpu.memory_space<vmem>>, %arg8: memref<64x128xbf16, #tpu.memory_space<vmem>>, %arg9: memref<1x128xf32, #tpu.memory_space<vmem>>, %arg10: memref<128x256xbf16, #tpu.memory_space<vmem>>, %arg11: memref<1x256xf32, #tpu.memory_space<vmem>>, %arg12: memref<256x768xbf16, #tpu.memory_space<vmem>>, %arg13: memref<1x768xf32, #tpu.memory_space<vmem>>, %arg14: memref<128x768xf32, #tpu.memory_space<vmem>>) attributes {dimension_semantics = [#tpu.dimension_semantics<parallel>], iteration_bounds = array<i64: 1>, scalar_prefetch = 0 : i64, scratch_operands = 0 : i64, tpu.core_type = #tpu.core_type<tc>, window_params = [{transform_indices = @transform_0, window_bounds = array<i64: 128, 768>}, {pipeline_mode = #tpu.pipeline_mode<synchronous>, transform_indices = @transform_1, window_bounds = array<i64: 768, 256>}, {pipeline_mode = #tpu.pipeline_mode<synchronous>, transform_indices = @transform_2, window_bounds = array<i64: 1, 256>}, {pipeline_mode = #tpu.pipeline_mode<synchronous>, transform_indices = @transform_3, window_bounds = array<i64: 256, 128>}, {pipeline_mode = #tpu.pipeline_mode<synchronous>, transform_indices = @transform_4, window_bounds = array<i64: 1, 128>}, {pipeline_mode = #tpu.pipeline_mode<synchronous>, transform_indices = @transform_5, window_bounds = array<i64: 128, 64>}, {pipeline_mode = #tpu.pipeline_mode<synchronous>, transform_indices = @transform_6, window_bounds = array<i64: 1, 64>}, {pipeline_mode = #tpu.pipeline_mode<synchronous>, transform_indices = @transform_7, window_bounds = array<i64: 64, 128>}, {pipeline_mode = #tpu.pipeline_mode<synchronous>, transform_indices = @transform_8, window_bounds = array<i64: 1, 128>}, {pipeline_mode = #tpu.pipeline_mode<synchronous>, transform_indices = @transform_9, window_bounds = array<i64: 128, 256>}, {pipeline_mode = #tpu.pipeline_mode<synchronous>, transform_indices = @transform_10, window_bounds = array<i64: 1, 256>}, {pipeline_mode = #tpu.pipeline_mode<synchronous>, transform_indices = @transform_11, window_bounds = array<i64: 256, 768>}, {pipeline_mode = #tpu.pipeline_mode<synchronous>, transform_indices = @transform_12, window_bounds = array<i64: 1, 768>}, {transform_indices = @transform_13, window_bounds = array<i64: 128, 768>}]} {
    %c0 = arith.constant 0 : index
    %c0_0 = arith.constant 0 : index
    %0 = vector.load %arg1[%c0, %c0_0] : memref<128x768xf32, #tpu.memory_space<vmem>>, vector<128x768xf32>
    %1 = arith.truncf %0 : vector<128x768xf32> to vector<128x768xbf16>
    %c0_1 = arith.constant 0 : index
    %c0_2 = arith.constant 0 : index
    %2 = vector.load %arg2[%c0_1, %c0_2] : memref<768x256xbf16, #tpu.memory_space<vmem>>, vector<768x256xbf16>
    %cst = arith.constant dense<0.000000e+00> : vector<128x256xf32>
    %3 = tpu.matmul %1, %2, %cst {dimension_numbers = #tpu.dot_dimension_numbers<[1], [0], [0], [1], [0, 0, 1, 1], [], []>} : vector<128x768xbf16>, vector<768x256xbf16>, vector<128x256xf32> -> vector<128x256xf32>
    %c0_3 = arith.constant 0 : index
    %c0_4 = arith.constant 0 : index
    %4 = vector.load %arg3[%c0_3, %c0_4] : memref<1x256xf32, #tpu.memory_space<vmem>>, vector<1x256xf32>
    %5 = vector.broadcast %4 : vector<1x256xf32> to vector<128x256xf32>
    %6 = arith.addf %3, %5 : vector<128x256xf32>
    %cst_5 = arith.constant 0.000000e+00 : f32
    %7 = vector.broadcast %cst_5 : f32 to vector<128x256xf32>
    %8 = arith.maximumf %6, %7 : vector<128x256xf32>
    %9 = arith.truncf %8 : vector<128x256xf32> to vector<128x256xbf16>
    %c0_6 = arith.constant 0 : index
    %c0_7 = arith.constant 0 : index
    %10 = vector.load %arg4[%c0_6, %c0_7] : memref<256x128xbf16, #tpu.memory_space<vmem>>, vector<256x128xbf16>
    %cst_8 = arith.constant dense<0.000000e+00> : vector<128x128xf32>
    %11 = tpu.matmul %9, %10, %cst_8 {dimension_numbers = #tpu.dot_dimension_numbers<[1], [0], [0], [1], [0, 0, 1, 1], [], []>} : vector<128x256xbf16>, vector<256x128xbf16>, vector<128x128xf32> -> vector<128x128xf32>
    %c0_9 = arith.constant 0 : index
    %c0_10 = arith.constant 0 : index
    %12 = vector.load %arg5[%c0_9, %c0_10] : memref<1x128xf32, #tpu.memory_space<vmem>>, vector<1x128xf32>
    %13 = vector.broadcast %12 : vector<1x128xf32> to vector<128x128xf32>
    %14 = arith.addf %11, %13 : vector<128x128xf32>
    %cst_11 = arith.constant 0.000000e+00 : f32
    %15 = vector.broadcast %cst_11 : f32 to vector<128x128xf32>
    %16 = arith.maximumf %14, %15 : vector<128x128xf32>
    %17 = arith.truncf %16 : vector<128x128xf32> to vector<128x128xbf16>
    %c0_12 = arith.constant 0 : index
    %c0_13 = arith.constant 0 : index
    %18 = vector.load %arg6[%c0_12, %c0_13] : memref<128x64xbf16, #tpu.memory_space<vmem>>, vector<128x64xbf16>
    %cst_14 = arith.constant dense<0.000000e+00> : vector<128x64xf32>
    %19 = tpu.matmul %17, %18, %cst_14 {dimension_numbers = #tpu.dot_dimension_numbers<[1], [0], [0], [1], [0, 0, 1, 1], [], []>} : vector<128x128xbf16>, vector<128x64xbf16>, vector<128x64xf32> -> vector<128x64xf32>
    %c0_15 = arith.constant 0 : index
    %c0_16 = arith.constant 0 : index
    %20 = vector.load %arg7[%c0_15, %c0_16] : memref<1x64xf32, #tpu.memory_space<vmem>>, vector<1x64xf32>
    %21 = vector.broadcast %20 : vector<1x64xf32> to vector<128x64xf32>
    %22 = arith.addf %19, %21 : vector<128x64xf32>
    %23 = arith.truncf %22 : vector<128x64xf32> to vector<128x64xbf16>
    %c0_17 = arith.constant 0 : index
    %c0_18 = arith.constant 0 : index
    %24 = vector.load %arg8[%c0_17, %c0_18] : memref<64x128xbf16, #tpu.memory_space<vmem>>, vector<64x128xbf16>
    %cst_19 = arith.constant dense<0.000000e+00> : vector<128x128xf32>
    %25 = tpu.matmul %23, %24, %cst_19 {dimension_numbers = #tpu.dot_dimension_numbers<[1], [0], [0], [1], [0, 0, 1, 1], [], []>} : vector<128x64xbf16>, vector<64x128xbf16>, vector<128x128xf32> -> vector<128x128xf32>
    %c0_20 = arith.constant 0 : index
    %c0_21 = arith.constant 0 : index
    %26 = vector.load %arg9[%c0_20, %c0_21] : memref<1x128xf32, #tpu.memory_space<vmem>>, vector<1x128xf32>
    %27 = vector.broadcast %26 : vector<1x128xf32> to vector<128x128xf32>
    %28 = arith.addf %25, %27 : vector<128x128xf32>
    %cst_22 = arith.constant 0.000000e+00 : f32
    %29 = vector.broadcast %cst_22 : f32 to vector<128x128xf32>
    %30 = arith.maximumf %28, %29 : vector<128x128xf32>
    %31 = arith.truncf %30 : vector<128x128xf32> to vector<128x128xbf16>
    %c0_23 = arith.constant 0 : index
    %c0_24 = arith.constant 0 : index
    %32 = vector.load %arg10[%c0_23, %c0_24] : memref<128x256xbf16, #tpu.memory_space<vmem>>, vector<128x256xbf16>
    %cst_25 = arith.constant dense<0.000000e+00> : vector<128x256xf32>
    %33 = tpu.matmul %31, %32, %cst_25 {dimension_numbers = #tpu.dot_dimension_numbers<[1], [0], [0], [1], [0, 0, 1, 1], [], []>} : vector<128x128xbf16>, vector<128x256xbf16>, vector<128x256xf32> -> vector<128x256xf32>
    %c0_26 = arith.constant 0 : index
    %c0_27 = arith.constant 0 : index
    %34 = vector.load %arg11[%c0_26, %c0_27] : memref<1x256xf32, #tpu.memory_space<vmem>>, vector<1x256xf32>
    %35 = vector.broadcast %34 : vector<1x256xf32> to vector<128x256xf32>
    %36 = arith.addf %33, %35 : vector<128x256xf32>
    %cst_28 = arith.constant 0.000000e+00 : f32
    %37 = vector.broadcast %cst_28 : f32 to vector<128x256xf32>
    %38 = arith.maximumf %36, %37 : vector<128x256xf32>
    %39 = arith.truncf %38 : vector<128x256xf32> to vector<128x256xbf16>
    %c0_29 = arith.constant 0 : index
    %c0_30 = arith.constant 0 : index
    %40 = vector.load %arg12[%c0_29, %c0_30] : memref<256x768xbf16, #tpu.memory_space<vmem>>, vector<256x768xbf16>
    %cst_31 = arith.constant dense<0.000000e+00> : vector<128x768xf32>
    %41 = tpu.matmul %39, %40, %cst_31 {dimension_numbers = #tpu.dot_dimension_numbers<[1], [0], [0], [1], [0, 0, 1, 1], [], []>} : vector<128x256xbf16>, vector<256x768xbf16>, vector<128x768xf32> -> vector<128x768xf32>
    %c0_32 = arith.constant 0 : index
    %c0_33 = arith.constant 0 : index
    %42 = vector.load %arg13[%c0_32, %c0_33] : memref<1x768xf32, #tpu.memory_space<vmem>>, vector<1x768xf32>
    %43 = vector.broadcast %42 : vector<1x768xf32> to vector<128x768xf32>
    %44 = arith.addf %41, %43 : vector<128x768xf32>
    %45 = arith.negf %44 : vector<128x768xf32>
    %46 = math.exp %45 : vector<128x768xf32>
    %cst_34 = arith.constant 1.000000e+00 : f32
    %47 = vector.broadcast %cst_34 : f32 to vector<128x768xf32>
    %48 = arith.addf %47, %46 : vector<128x768xf32>
    %49 = arith.divf %47, %48 : vector<128x768xf32>
    %c0_35 = arith.constant 0 : index
    %c0_36 = arith.constant 0 : index
    %50 = vector.load %arg14[%c0_35, %c0_36] : memref<128x768xf32, #tpu.memory_space<vmem>>, vector<128x768xf32>
    tpu.vector_store %arg14[%c0_35, %c0_36], %49 {strides = array<i32>} : memref<128x768xf32, #tpu.memory_space<vmem>>, vector<128x768xf32>,
    return
  }
  func.func @transform_0(%arg0: i32) -> (i32, i32) {
    %c0_i32 = arith.constant 0 : i32
    %c0_i32_0 = arith.constant 0 : i32
    return %arg0, %c0_i32 : i32, i32
  }
  func.func @transform_1(%arg0: i32) -> (i32, i32) {
    %c0_i32 = arith.constant 0 : i32
    %c0_i32_0 = arith.constant 0 : i32
    %c0_i32_1 = arith.constant 0 : i32
    return %c0_i32, %c0_i32_0 : i32, i32
  }
  func.func @transform_2(%arg0: i32) -> (i32, i32) {
    %c0_i32 = arith.constant 0 : i32
    %c0_i32_0 = arith.constant 0 : i32
    %c0_i32_1 = arith.constant 0 : i32
    return %c0_i32, %c0_i32_0 : i32, i32
  }
  func.func @transform_3(%arg0: i32) -> (i32, i32) {
    %c0_i32 = arith.constant 0 : i32
    %c0_i32_0 = arith.constant 0 : i32
    %c0_i32_1 = arith.constant 0 : i32
    return %c0_i32, %c0_i32_0 : i32, i32
  }
  func.func @transform_4(%arg0: i32) -> (i32, i32) {
    %c0_i32 = arith.constant 0 : i32
    %c0_i32_0 = arith.constant 0 : i32
    %c0_i32_1 = arith.constant 0 : i32
    return %c0_i32, %c0_i32_0 : i32, i32
  }
  func.func @transform_5(%arg0: i32) -> (i32, i32) {
    %c0_i32 = arith.constant 0 : i32
    %c0_i32_0 = arith.constant 0 : i32
    %c0_i32_1 = arith.constant 0 : i32
    return %c0_i32, %c0_i32_0 : i32, i32
  }
  func.func @transform_6(%arg0: i32) -> (i32, i32) {
    %c0_i32 = arith.constant 0 : i32
    %c0_i32_0 = arith.constant 0 : i32
    %c0_i32_1 = arith.constant 0 : i32
    return %c0_i32, %c0_i32_0 : i32, i32
  }
  func.func @transform_7(%arg0: i32) -> (i32, i32) {
    %c0_i32 = arith.constant 0 : i32
    %c0_i32_0 = arith.constant 0 : i32
    %c0_i32_1 = arith.constant 0 : i32
    return %c0_i32, %c0_i32_0 : i32, i32
  }
  func.func @transform_8(%arg0: i32) -> (i32, i32) {
    %c0_i32 = arith.constant 0 : i32
    %c0_i32_0 = arith.constant 0 : i32
    %c0_i32_1 = arith.constant 0 : i32
    return %c0_i32, %c0_i32_0 : i32, i32
  }
  func.func @transform_9(%arg0: i32) -> (i32, i32) {
    %c0_i32 = arith.constant 0 : i32
    %c0_i32_0 = arith.constant 0 : i32
    %c0_i32_1 = arith.constant 0 : i32
    return %c0_i32, %c0_i32_0 : i32, i32
  }
  func.func @transform_10(%arg0: i32) -> (i32, i32) {
    %c0_i32 = arith.constant 0 : i32
    %c0_i32_0 = arith.constant 0 : i32
    %c0_i32_1 = arith.constant 0 : i32
    return %c0_i32, %c0_i32_0 : i32, i32
  }
  func.func @transform_11(%arg0: i32) -> (i32, i32) {
    %c0_i32 = arith.constant 0 : i32
    %c0_i32_0 = arith.constant 0 : i32
    %c0_i32_1 = arith.constant 0 : i32
    return %c0_i32, %c0_i32_0 : i32, i32
  }
  func.func @transform_12(%arg0: i32) -> (i32, i32) {
    %c0_i32 = arith.constant 0 : i32
    %c0_i32_0 = arith.constant 0 : i32
    %c0_i32_1 = arith.constant 0 : i32
    return %c0_i32, %c0_i32_0 : i32, i32
  }
  func.func @transform_13(%arg0: i32) -> (i32, i32) {
    %c0_i32 = arith.constant 0 : i32
    %c0_i32_0 = arith.constant 0 : i32
    return %arg0, %c0_i32 : i32, i32
  }
}

</mosaic_0001>

<bundles_post_ra>
// kernel: mlp_autoencoder_forward.1
= control target key start
LH: loop header
LB: loop body
LE: loop exit
PB: predicated region body
PF: predicated region fallthrough
CT: control target
= control target key end

     0   :  { %vm1635_vm0 = vcmask 523264   ;;  %s6905_s1 = inlined_call_operand.vmem [shape: bf16[768,256], index: 1, kind: input, shape index: {}]   ;;  %s6906_s0 = inlined_call_operand.vmem [shape: f32[128,768], index: 0, kind: input, shape index: {}]   ;;  %s6907_s3 = inlined_call_operand.vmem [shape: bf16[256,128], index: 3, kind: input, shape index: {}]   ;;  %s6908_s5 = inlined_call_operand.vmem [shape: bf16[128,64], index: 5, kind: input, shape index: {}]   ;;  %s6909_s2 = inlined_call_operand.vmem [shape: f32[1,256], index: 2, kind: input, shape index: {}]   ;;  %s6910_s7 = inlined_call_operand.vmem [shape: bf16[64,128], index: 7, kind: input, shape index: {}]   ;;  %s6911_s4 = inlined_call_operand.vmem [shape: f32[1,128], index: 4, kind: input, shape index: {}]   ;;  %s6912_s9 = inlined_call_operand.vmem [shape: bf16[128,256], index: 9, kind: input, shape index: {}]   ;;  %s6913_s6 = inlined_call_operand.vmem [shape: f32[1,64], index: 6, kind: input, shape index: {}]   ;;  %s6914_s11 = inlined_call_operand.vmem [shape: bf16[256,768], index: 11, kind: input, shape index: {}]   ;;  %s6915_s8 = inlined_call_operand.vmem [shape: f32[1,128], index: 8, kind: input, shape index: {}]   ;;  %s6916_s10 = inlined_call_operand.vmem [shape: f32[1,256], index: 10, kind: input, shape index: {}]   ;;  %s6917_s12 = inlined_call_operand.vmem [shape: f32[1,768], index: 12, kind: input, shape index: {}]   ;;  %s6918_s13 = inlined_call_operand.vmem [shape: f32[128,768], index: 13, kind: output, shape index: {}]  }
   0x1   :  { %v4197_v0 = vld [vmem:[%s6905_s1 + $0x74] ss:$8 sps:$4 sm:$0xff]   ;;  %v4199_v1 = vld [vmem:[%s6905_s1 + $0x70] ss:$8 sps:$4 sm:$0xff]   ;;  %v4203_v4 = vld [vmem:[%s6905_s1 + $0x64] ss:$8 sps:$4 sm:$0xff]  }
   0x2   :  { %777 = vmatprep.subr.bf16.mxu0 %v4197_v0  ;;  %v4200_v2 = vld [vmem:[%s6905_s1 + $0x174] ss:$8 sps:$4 sm:$0xff]   ;;  %v4202_v3 = vld [vmem:[%s6905_s1 + $0x170] ss:$8 sps:$4 sm:$0xff]   ;;  %v4205_v5 = vld [vmem:[%s6905_s1 + $0x60] ss:$8 sps:$4 sm:$0xff]  }
   0x3   :  { %778 = vmatpush1.bf16.msra.mxu0 %v4199_v1  ;;  %890 = vmatprep.subr.bf16.mxu1 %v4200_v2  ;;  %v4206_v6 = vld [vmem:[%s6905_s1 + $0x164] ss:$8 sps:$4 sm:$0xff]   ;;  %v4208_v7 = vld [vmem:[%s6905_s1 + $0x160] ss:$8 sps:$4 sm:$0xff]   ;;  %v4209_v8 = vld [vmem:[%s6905_s1 + $0x54] ss:$8 sps:$4 sm:$0xff]  }
   0x4   :  { %891 = vmatpush1.bf16.msra.mxu1 %v4202_v3  ;;  %779 = vmatprep.subr.bf16.mxu0 %v4203_v4  ;;  %v4211_v9 = vld [vmem:[%s6905_s1 + $0x50] ss:$8 sps:$4 sm:$0xff]   ;;  %v4212_v10 = vld [vmem:[%s6905_s1 + $0x154] ss:$8 sps:$4 sm:$0xff]   ;;  %v4215_v11 = vld [vmem:[%s6905_s1 + $0x44] ss:$8 sps:$4 sm:$0xff]  }
   0x5   :  { %892 = vmatprep.subr.bf16.mxu1 %v4206_v6  ;;  %v4214_v12 = vld [vmem:[%s6905_s1 + $0x150] ss:$8 sps:$4 sm:$0xff]   ;;  %v4218_v13 = vld [vmem:[%s6905_s1 + $0x144] ss:$8 sps:$4 sm:$0xff]   ;;  %v4217_v14 = vld [vmem:[%s6905_s1 + $0x40] ss:$8 sps:$4 sm:$0xff]  }
   0x6   :  { %v4221_v15 = vld [vmem:[%s6905_s1 + $0x34] ss:$8 sps:$4 sm:$0xff]   ;;  %v4220_v16 = vld [vmem:[%s6905_s1 + $0x140] ss:$8 sps:$4 sm:$0xff]   ;;  %v4223_v18 = vld [vmem:[%s6905_s1 + $0x30] ss:$8 sps:$4 sm:$0xff]  }
   0x7   :  { %780 = vmatpush1.bf16.msra.mxu0 %v4205_v5  ;;  %v4224_v17 = vld [vmem:[%s6905_s1 + $0x134] ss:$8 sps:$4 sm:$0xff]   ;;  %v4227_v19 = vld [vmem:[%s6905_s1 + $0x24] ss:$8 sps:$4 sm:$0xff]   ;;  %v4226_v20 = vld [vmem:[%s6905_s1 + $0x130] ss:$8 sps:$4 sm:$0xff]  }
   0x8   :  { %781 = vmatprep.subr.bf16.mxu0 %v4209_v8  ;;  %893 = vmatpush1.bf16.msra.mxu1 %v4208_v7  ;;  %v4230_v21 = vld [vmem:[%s6905_s1 + $0x124] ss:$8 sps:$4 sm:$0xff]   ;;  %v4229_v22 = vld [vmem:[%s6905_s1 + $0x20] ss:$8 sps:$4 sm:$0xff]   ;;  %v4233_v23 = vld [vmem:[%s6905_s1 + $0x14] ss:$8 sps:$4 sm:$0xff]  }
   0x9   :  { %894 = vmatprep.subr.bf16.mxu1 %v4212_v10  ;;  %v4232_v24 = vld [vmem:[%s6905_s1 + $0x120] ss:$8 sps:$4 sm:$0xff]   ;;  %v4236_v25 = vld [vmem:[%s6905_s1 + $0x114] ss:$8 sps:$4 sm:$0xff]   ;;  %v4235_v26 = vld [vmem:[%s6905_s1 + $0x10] ss:$8 sps:$4 sm:$0xff]  }
   0xa   :  { %v4239_v27 = vld [vmem:[%s6905_s1 + $0x4] ss:$8 sps:$4 sm:$0xff]   ;;  %v4238_v28 = vld [vmem:[%s6905_s1 + $0x110] ss:$8 sps:$4 sm:$0xff]   ;;  %v4241_v30 = vld [vmem:[%s6905_s1] ss:$8 sps:$4 sm:$0xff]  }
   0xb   :  { %782 = vmatpush1.bf16.msra.mxu0 %v4211_v9  ;;  %v4242_v29 = vld [vmem:[%s6905_s1 + $0x104] ss:$8 sps:$4 sm:$0xff]   ;;  %v4245_v31 = vld [vmem:[%s6905_s1 + $0xf4] ss:$8 sps:$4 sm:$0xff]   ;;  %v4244_v32 = vld [vmem:[%s6905_s1 + $0x100] ss:$8 sps:$4 sm:$0xff]  }
   0xc   :  { %783 = vmatprep.subr.bf16.mxu0 %v4215_v11  ;;  %895 = vmatpush1.bf16.msra.mxu1 %v4214_v12  ;;  %v4248_v33 = vld [vmem:[%s6905_s1 + $0x1f4] ss:$8 sps:$4 sm:$0xff]   ;;  %v4247_v34 = vld [vmem:[%s6905_s1 + $0xf0] ss:$8 sps:$4 sm:$0xff]   ;;  %v4251_v35 = vld [vmem:[%s6905_s1 + $0xe4] ss:$8 sps:$4 sm:$0xff]  }
   0xd   :  { %896 = vmatprep.subr.bf16.mxu1 %v4218_v13  ;;  %v4250_v36 = vld [vmem:[%s6905_s1 + $0x1f0] ss:$8 sps:$4 sm:$0xff]   ;;  %v4254_v37 = vld [vmem:[%s6905_s1 + $0x1e4] ss:$8 sps:$4 sm:$0xff]   ;;  %v4253_v38 = vld [vmem:[%s6905_s1 + $0xe0] ss:$8 sps:$4 sm:$0xff]  }
   0xe   :  { %v4257_v39 = vld [vmem:[%s6905_s1 + $0xd4] ss:$8 sps:$4 sm:$0xff]   ;;  %v4256_v40 = vld [vmem:[%s6905_s1 + $0x1e0] ss:$8 sps:$4 sm:$0xff]   ;;  %v4259_v42 = vld [vmem:[%s6905_s1 + $0xd0] ss:$8 sps:$4 sm:$0xff]  }
   0xf   :  { %784 = vmatpush1.bf16.msra.mxu0 %v4217_v14  ;;  %v4260_v41 = vld [vmem:[%s6905_s1 + $0x1d4] ss:$8 sps:$4 sm:$0xff]   ;;  %v4263_v43 = vld [vmem:[%s6905_s1 + $0xc4] ss:$8 sps:$4 sm:$0xff]   ;;  %v4262_v44 = vld [vmem:[%s6905_s1 + $0x1d0] ss:$8 sps:$4 sm:$0xff]  }
  0x10   :  { %785 = vmatprep.subr.bf16.mxu0 %v4221_v15  ;;  %897 = vmatpush1.bf16.msra.mxu1 %v4220_v16  ;;  %v4266_v45 = vld [vmem:[%s6905_s1 + $0x1c4] ss:$8 sps:$4 sm:$0xff]   ;;  %v52_v47 = vld [vmem:[%s6906_s0 + $0x38] sm:$0xff]  ;;  %v4265_v48 = vld [vmem:[%s6905_s1 + $0xc0] ss:$8 sps:$4 sm:$0xff]  }
  0x11   :  { %898 = vmatprep.subr.bf16.mxu1 %v4224_v17  ;;  %v46_v46 = vld [vmem:[%s6906_s0 + $0x8] sm:$0xff]  ;;  %v4269_v50 = vld [vmem:[%s6905_s1 + $0xb4] ss:$8 sps:$4 sm:$0xff]   ;;  %v4271_v56 = vld [vmem:[%s6905_s1 + $0xb0] ss:$8 sps:$4 sm:$0xff]  }
  0x12   :  { %v142_v49 = vpack.c.bf16 %v52_v47, %v46_v46  ;;  %v4268_v51 = vld [vmem:[%s6905_s1 + $0x1c0] ss:$8 sps:$4 sm:$0xff]   ;;  %v48_v52 = vld [vmem:[%s6906_s0 + $0x18] sm:$0xff]  ;;  %v4275_v57 = vld [vmem:[%s6905_s1 + $0xa4] ss:$8 sps:$4 sm:$0xff]  }
  0x13   :  { %786 = vmatpush1.bf16.msra.mxu0 %v4223_v18  ;;  %v54_v53 = vld [vmem:[%s6906_s0 + $0x48] sm:$0xff]  ;;  %v4272_v54 = vld [vmem:[%s6905_s1 + $0x1b4] ss:$8 sps:$4 sm:$0xff]   ;;  %v4274_v58 = vld [vmem:[%s6905_s1 + $0x1b0] ss:$8 sps:$4 sm:$0xff]  }
  0x14   :  { %787 = vmatprep.subr.bf16.mxu0 %v4227_v19  ;;  %899 = vmatpush1.bf16.msra.mxu1 %v4226_v20  ;;  %v144_v55 = vpack.c.bf16 %v54_v53, %v48_v52  ;;  %v4278_v59 = vld [vmem:[%s6905_s1 + $0x1a4] ss:$8 sps:$4 sm:$0xff]   ;;  %v4277_v60 = vld [vmem:[%s6905_s1 + $0xa0] ss:$8 sps:$4 sm:$0xff]   ;;  %v4281_v61 = vld [vmem:[%s6905_s1 + $0x94] ss:$8 sps:$4 sm:$0xff]  }
  0x15   :  { %900 = vmatprep.subr.bf16.mxu1 %v4230_v21  ;;  %809 = vmatprep.mubr.bf16.mxu0 %v142_v49  ;;  %v4280_v62 = vld [vmem:[%s6905_s1 + $0x1a0] ss:$8 sps:$4 sm:$0xff]   ;;  %v4284_v63 = vld [vmem:[%s6905_s1 + $0x194] ss:$8 sps:$4 sm:$0xff]   ;;  %v4283_v0 = vld [vmem:[%s6905_s1 + $0x90] ss:$8 sps:$4 sm:$0xff]  }
  0x16   :  { %922 = vmatprep.mubr.bf16.mxu1 %v144_v55  ;;  %v4287_v1 = vld [vmem:[%s6905_s1 + $0x84] ss:$8 sps:$4 sm:$0xff]   ;;  %v4286_v2 = vld [vmem:[%s6905_s1 + $0x190] ss:$8 sps:$4 sm:$0xff]   ;;  %v4289_v3 = vld [vmem:[%s6905_s1 + $0x80] ss:$8 sps:$4 sm:$0xff]  }
  0x17   :  { %788 = vmatpush1.bf16.msra.mxu0 %v4229_v22  ;;  %v4290_v4 = vld [vmem:[%s6905_s1 + $0x184] ss:$8 sps:$4 sm:$0xff]   ;;  %v51_v6 = vld [vmem:[%s6906_s0 + $0x30] sm:$0xff]  ;;  %v64_v9 = vld [vmem:[%s6906_s0 + $0x98] sm:$0xff] }
  0x18   :  { %789 = vmatprep.subr.bf16.mxu0 %v4233_v23  ;;  %901 = vmatpush1.bf16.msra.mxu1 %v4232_v24  ;;  %v45_v5 = vld [vmem:[%s6906_s0] sm:$0xff]  ;;  %v4295_v7 = vld [vmem:[%s6905_s1 + $0x274] ss:$8 sps:$4 sm:$0xff]   ;;  %v58_v8 = vld [vmem:[%s6906_s0 + $0x68] sm:$0xff] }
  0x19   :  { %902 = vmatprep.subr.bf16.mxu1 %v4236_v25  ;;  %v4292_v10 = vld [vmem:[%s6905_s1 + $0x180] ss:$8 sps:$4 sm:$0xff]   ;;  %v47_v11 = vld [vmem:[%s6906_s0 + $0x10] sm:$0xff]  ;;  %v141_v13 = vpack.c.bf16 %v51_v6, %v45_v5  ;;  %v60_v14 = vld [vmem:[%s6906_s0 + $0x78] sm:$0xff]  ;;  %v148_v17 = vpack.c.bf16 %v64_v9, %v58_v8 }
  0x1a   :  { %v53_v12 = vld [vmem:[%s6906_s0 + $0x40] sm:$0xff]  ;;  %v66_v15 = vld [vmem:[%s6906_s0 + $0xa8] sm:$0xff]  ;;  %v4293_v16 = vld [vmem:[%s6905_s1 + $0x270] ss:$8 sps:$4 sm:$0xff]  }
  0x1b   :  { %790 = vmatpush1.bf16.msra.mxu0 %v4235_v26  ;;  %v143_v18 = vpack.c.bf16 %v53_v12, %v47_v11  ;;  %v4298_v19 = vld [vmem:[%s6905_s1 + $0x264] ss:$8 sps:$4 sm:$0xff]   ;;  %v150_v20 = vpack.c.bf16 %v66_v15, %v60_v14  ;;  %v4296_v21 = vld [vmem:[%s6905_s1 + $0x260] ss:$8 sps:$4 sm:$0xff]   ;;  %v63_v23 = vld [vmem:[%s6906_s0 + $0x90] sm:$0xff] }
  0x1c   :  { %791 = vmatprep.subr.bf16.mxu0 %v4239_v27  ;;  %903 = vmatpush1.bf16.msra.mxu1 %v4238_v28  ;;  %v57_v22 = vld [vmem:[%s6906_s0 + $0x60] sm:$0xff]  ;;  %v4301_v24 = vld [vmem:[%s6905_s1 + $0x254] ss:$8 sps:$4 sm:$0xff]   ;;  %v70_v25 = vld [vmem:[%s6906_s0 + $0xc8] sm:$0xff] }
  0x1d   :  { %904 = vmatprep.subr.bf16.mxu1 %v4242_v29  ;;  %v76_v26 = vld [vmem:[%s6906_s0 + $0xf8] sm:$0xff]  ;;  %v59_v27 = vld [vmem:[%s6906_s0 + $0x70] sm:$0xff]  ;;  %v65_v28 = vld [vmem:[%s6906_s0 + $0xa0] sm:$0xff]  ;;  %v147_v29 = vpack.c.bf16 %v63_v23, %v57_v22 }
  0x1e   :  { %v84_v46 = vld [vmem:[%s6906_s0 + $0x138] sm:$0xff]  ;;  %v90_v47 = vld [vmem:[%s6906_s0 + $0x168] sm:$0xff]  ;;  %v87_v55 = vld [vmem:[%s6906_s0 + $0x150] sm:$0xff] }
  0x1f   :  { %792 = vmatpush1.bf16.msra.mxu0 %v4241_v30  ;;  %v72_v30 = vld [vmem:[%s6906_s0 + $0xd8] sm:$0xff]  ;;  %v162_v52 = vpack.c.bf16 %v90_v47, %v84_v46  ;;  %v4308_v53 = vld [vmem:[%s6905_s1 + $0x220] ss:$8 sps:$4 sm:$0xff]   ;;  %v95_v11 = vld [vmem:[%s6906_s0 + $0x190] sm:$0xff] }
  0x20   :  { %793 = vmatprep.subr.bf16.mxu0 %v4245_v31  ;;  %905 = vmatpush1.bf16.msra.mxu1 %v4244_v32  ;;  %v78_v31 = vld [vmem:[%s6906_s0 + $0x108] sm:$0xff]  ;;  %v4299_v32 = vld [vmem:[%s6905_s1 + $0x250] ss:$8 sps:$4 sm:$0xff]   ;;  %v93_v6 = vld [vmem:[%s6906_s0 + $0x180] sm:$0xff] }
  0x21   :  { %906 = vmatprep.subr.bf16.mxu1 %v4248_v33  ;;  %v154_v33 = vpack.c.bf16 %v76_v26, %v70_v25  ;;  %v4314_v5 = vld [vmem:[%s6905_s1 + $0x200] ss:$8 sps:$4 sm:$0xff]   ;;  %v4319_v8 = vld [vmem:[%s6905_s1 + $0x2f4] ss:$8 sps:$4 sm:$0xff]  }
  0x22   :  { %v106_v9 = vld [vmem:[%s6906_s0 + $0x1e8] sm:$0xff]  ;;  %v101_v12 = vld [vmem:[%s6906_s0 + $0x1c0] sm:$0xff]  ;;  %v108_v14 = vld [vmem:[%s6906_s0 + $0x1f8] sm:$0xff] }
  0x23   :  { %794 = vmatpush2.bf16.msra.mxu0 %v4247_v34  ;;  %v149_v34 = vpack.c.bf16 %v65_v28, %v59_v27  ;;  %v114_v15 = vld [vmem:[%s6906_s0 + $0x228] sm:$0xff]  ;;  %v105_v22 = vld [vmem:[%s6906_s0 + $0x1e0] sm:$0xff]  ;;  %v111_v23 = vld [vmem:[%s6906_s0 + $0x210] sm:$0xff] }
  0x24   :  { %795 = vmatprep.subr.bf16.mxu0 %v4251_v35  ;;  %907 = vmatpush2.bf16.msra.mxu1 %v4250_v36  ;;  %v4304_v35 = vld [vmem:[%s6905_s1 + $0x244] ss:$8 sps:$4 sm:$0xff]   ;;  %v156_v36 = vpack.c.bf16 %v78_v31, %v72_v30  ;;  %v124_v26 = vld [vmem:[%s6906_s0 + $0x278] sm:$0xff]  ;;  %v107_v27 = vld [vmem:[%s6906_s0 + $0x1f0] sm:$0xff] }
  0x25   :  { %908 = vmatprep.subr.bf16.mxu1 %v4254_v37  ;;  %v4302_v37 = vld [vmem:[%s6905_s1 + $0x240] ss:$8 sps:$4 sm:$0xff]   ;;  %v120_v30 = vld [vmem:[%s6906_s0 + $0x258] sm:$0xff] }
  0x26   :  { %v118_v25 = vld [vmem:[%s6906_s0 + $0x248] sm:$0xff]  ;;  %v113_v28 = vld [vmem:[%s6906_s0 + $0x220] sm:$0xff]  ;;  %v132_v46 = vld [vmem:[%s6906_s0 + $0x2b8] sm:$0xff] }
  0x27   :  { %796 = vmatpush2.bf16.msra.mxu0 %v4253_v38  ;;  %v69_v38 = vld [vmem:[%s6906_s0 + $0xc0] sm:$0xff]  ;;  %v126_v31 = vld [vmem:[%s6906_s0 + $0x288] sm:$0xff] }
  0x28   :  { %797 = vmatprep.subr.bf16.mxu0 %v4257_v39  ;;  %909 = vmatpush2.bf16.msra.mxu1 %v4256_v40  ;;  %v75_v39 = vld [vmem:[%s6906_s0 + $0xf0] sm:$0xff]  ;;  %v138_v47 = vld [vmem:[%s6906_s0 + $0x2e8] sm:$0xff] }
  0x29   :  { %910 = vmatprep.subr.bf16.mxu1 %v4260_v41  ;;  %v4307_v40 = vld [vmem:[%s6905_s1 + $0x234] ss:$8 sps:$4 sm:$0xff]   ;;  %v82_v41 = vld [vmem:[%s6906_s0 + $0x128] sm:$0xff] }
  0x2b   :  { %798 = vmatpush2.bf16.msra.mxu0 %v4259_v42  ;;  %v88_v42 = vld [vmem:[%s6906_s0 + $0x158] sm:$0xff] }
  0x2c   :  { %799 = vmatprep.subr.bf16.mxu0 %v4263_v43  ;;  %911 = vmatpush2.bf16.msra.mxu1 %v4262_v44  ;;  %v71_v43 = vld [vmem:[%s6906_s0 + $0xd0] sm:$0xff]  ;;  %v77_v44 = vld [vmem:[%s6906_s0 + $0x100] sm:$0xff]  ;;  %v160_v49 = vpack.c.bf16 %v88_v42, %v82_v41  ;;  %v130_v41 = vld [vmem:[%s6906_s0 + $0x2a8] sm:$0xff] }
  0x2d   :  { %912 = vmatprep.subr.bf16.mxu1 %v4266_v45  ;;  %v153_v45 = vpack.c.bf16 %v75_v39, %v69_v38  ;;  %v117_v38 = vld [vmem:[%s6906_s0 + $0x240] sm:$0xff]  ;;  %v123_v39 = vld [vmem:[%s6906_s0 + $0x270] sm:$0xff]  ;;  %v136_v42 = vld [vmem:[%s6906_s0 + $0x2d8] sm:$0xff] }
  0x2f   :  { %800 = vmatpush2.bf16.msra.mxu0 %v4265_v48  ;;  %v4305_v48 = vld [vmem:[%s6905_s1 + $0x230] ss:$8 sps:$4 sm:$0xff]  }
  0x30   :  { %801 = vmatprep.subr.bf16.mxu0 %v4269_v50  ;;  %913 = vmatpush2.bf16.msra.mxu1 %v4268_v51  ;;  %v155_v50 = vpack.c.bf16 %v77_v44, %v71_v43  ;;  %v4310_v51 = vld [vmem:[%s6905_s1 + $0x224] ss:$8 sps:$4 sm:$0xff]   ;;  %v119_v43 = vld [vmem:[%s6906_s0 + $0x250] sm:$0xff] }
  0x31   :  { %914 = vmatprep.subr.bf16.mxu1 %v4272_v54  ;;  %v81_v54 = vld [vmem:[%s6906_s0 + $0x120] sm:$0xff] }
  0x32   :  { %v125_v44 = vld [vmem:[%s6906_s0 + $0x280] sm:$0xff] }
  0x33   :  { %802 = vmatpush2.bf16.msra.mxu0 %v4271_v56  ;;  %v4313_v56 = vld [vmem:[%s6905_s1 + $0x214] ss:$8 sps:$4 sm:$0xff]  }
  0x34   :  { %803 = vmatprep.subr.bf16.mxu0 %v4275_v57  ;;  %915 = vmatpush2.bf16.msra.mxu1 %v4274_v58  ;;  %v94_v57 = vld [vmem:[%s6906_s0 + $0x188] sm:$0xff]  ;;  %v100_v58 = vld [vmem:[%s6906_s0 + $0x1b8] sm:$0xff] }
  0x35   :  { %916 = vmatprep.subr.bf16.mxu1 %v4278_v59  ;;  %v83_v59 = vld [vmem:[%s6906_s0 + $0x130] sm:$0xff] }
  0x37   :  { %804 = vmatpush2.bf16.msra.mxu0 %v4277_v60  ;;  %v89_v60 = vld [vmem:[%s6906_s0 + $0x160] sm:$0xff] }
  0x38   :  { %805 = vmatprep.subr.bf16.mxu0 %v4281_v61  ;;  %917 = vmatpush2.bf16.msra.mxu1 %v4280_v62  ;;  %v159_v61 = vpack.c.bf16 %v87_v55, %v81_v54  ;;  %v96_v62 = vld [vmem:[%s6906_s0 + $0x198] sm:$0xff]  ;;  %v129_v54 = vld [vmem:[%s6906_s0 + $0x2a0] sm:$0xff]  ;;  %v135_v55 = vld [vmem:[%s6906_s0 + $0x2d0] sm:$0xff] }
  0x39   :  { %918 = vmatprep.subr.bf16.mxu1 %v4284_v63  ;;  %v102_v63 = vld [vmem:[%s6906_s0 + $0x1c8] sm:$0xff] }
  0x3b   :  { %806 = vmatpush2.bf16.msra.mxu0 %v4283_v0  ;;  %v4311_v0 = vld [vmem:[%s6905_s1 + $0x210] ss:$8 sps:$4 sm:$0xff]  }
  0x3c   :  { %807 = vmatprep.subr.bf16.mxu0 %v4287_v1  ;;  %919 = vmatpush2.bf16.msra.mxu1 %v4286_v2  ;;  %v166_v1 = vpack.c.bf16 %v100_v58, %v94_v57  ;;  %v161_v2 = vpack.c.bf16 %v89_v60, %v83_v59  ;;  %v50_v57 = vld [vmem:[%s6906_s0 + $0x28] sm:$0xff]  ;;  %v56_v58 = vld [vmem:[%s6906_s0 + $0x58] sm:$0xff]  ;;  %v131_v59 = vld [vmem:[%s6906_s0 + $0x2b0] sm:$0xff] }
  0x3d   :  { %920 = vmatprep.subr.bf16.mxu1 %v4290_v4  ;;  %v168_v4 = vpack.c.bf16 %v102_v63, %v96_v62  ;;  %v137_v60 = vld [vmem:[%s6906_s0 + $0x2e0] sm:$0xff]  ;;  %v4335_v62 = vld [vmem:[%s6905_s1 + $0x290] ss:$8 sps:$4 sm:$0xff]   ;;  %v146_v63 = vpack.c.bf16 %v56_v58, %v50_v57 }
  0x3e   :  { %v4351_v58 = vld [vmem:[%s6907_s3 + $0x50] sm:$0xff]  }
  0x3f   :  { %808 = vmatpush2.bf16.msra.mxu0 %v4289_v3  ;;  %v4316_v3 = vld [vmem:[%s6905_s1 + $0x204] ss:$8 sps:$4 sm:$0xff]  }
  0x40   :  { %1003 = vmatprep.subr.bf16.mxu0 %v4295_v7  ;;  %921 = vmatpush2.bf16.msra.mxu1 %v4292_v10  ;;  %v99_v7 = vld [vmem:[%s6906_s0 + $0x1b0] sm:$0xff]  ;;  %v112_v10 = vld [vmem:[%s6906_s0 + $0x218] sm:$0xff] }
  0x42   :  { %810 = vmatmul.mubr.bf16.vlgmr.msra.gmra.mxu0 %v141_v13  ;;  %v165_v13 = vpack.c.bf16 %v99_v7, %v93_v6  ;;  %v68_v6 = vld [vmem:[%s6906_s0 + $0xb8] sm:$0xff] }
  0x43   :  { %1004 = vmatpush1.bf16.msra.mxu0 %v4293_v16  ;;  %819 = vmatprep.mubr.bf16.mxu0 %v148_v17  ;;  %v4317_v16 = vld [vmem:[%s6905_s1 + $0x2f0] ss:$8 sps:$4 sm:$0xff]   ;;  %v172_v17 = vpack.c.bf16 %v112_v10, %v106_v9  ;;  %v61_v9 = vld [vmem:[%s6906_s0 + $0x80] sm:$0xff] }
  0x44   :  { %923 = vmatmul.mubr.bf16.vlgmr.msra.gmra.mxu1 %v143_v18  ;;  %1005 = vmatprep.subr.bf16.mxu0 %v4298_v19  ;;  %v167_v18 = vpack.c.bf16 %v101_v12, %v95_v11  ;;  %v4322_v19 = vld [vmem:[%s6905_s1 + $0x2e4] ss:$8 sps:$4 sm:$0xff]   ;;  %v67_v10 = vld [vmem:[%s6906_s0 + $0xb0] sm:$0xff]  ;;  %v80_v12 = vld [vmem:[%s6906_s0 + $0x118] sm:$0xff] }
  0x45   :  { %932 = vmatprep.mubr.bf16.mxu1 %v150_v20  ;;  %v174_v20 = vpack.c.bf16 %v114_v15, %v108_v14  ;;  %v74_v11 = vld [vmem:[%s6906_s0 + $0xe8] sm:$0xff]  ;;  %v73_v15 = vld [vmem:[%s6906_s0 + $0xe0] sm:$0xff] }
  0x46   :  { %v158_v14 = vpack.c.bf16 %v80_v12, %v74_v11  ;;  %v4359_v12 = vld [vmem:[%s6908_s5 + $0x28] sm:$0xff]  }
  0x47   :  { %1006 = vmatpush1.bf16.msra.mxu0 %v4296_v21  ;;  %v4320_v21 = vld [vmem:[%s6905_s1 + $0x2e0] ss:$8 sps:$4 sm:$0xff]  }
  0x48   :  { %1007 = vmatprep.subr.bf16.mxu0 %v4301_v24  ;;  %v4325_v24 = vld [vmem:[%s6905_s1 + $0x2d4] ss:$8 sps:$4 sm:$0xff]  }
  0x4a   :  { %820 = vmatmul.mubr.bf16.gmra.mxu0 %v147_v29  ;;  %v171_v29 = vpack.c.bf16 %v111_v23, %v105_v22  ;;  %v91_v22 = vld [vmem:[%s6906_s0 + $0x170] sm:$0xff]  ;;  %v98_v23 = vld [vmem:[%s6906_s0 + $0x1a8] sm:$0xff] }
  0x4b   :  { %1008 = vmatpush1.bf16.msra.mxu0 %v4299_v32  ;;  %829 = vmatprep.mubr.bf16.mxu0 %v154_v33  ;;  %v4323_v32 = vld [vmem:[%s6905_s1 + $0x2d0] ss:$8 sps:$4 sm:$0xff]   ;;  %v178_v33 = vpack.c.bf16 %v124_v26, %v118_v25 }
  0x4c   :  { %933 = vmatmul.mubr.bf16.gmra.mxu1 %v149_v34  ;;  %1009 = vmatprep.subr.bf16.mxu0 %v4304_v35  ;;  %v173_v34 = vpack.c.bf16 %v113_v28, %v107_v27  ;;  %v4328_v35 = vld [vmem:[%s6905_s1 + $0x2c4] ss:$8 sps:$4 sm:$0xff]   ;;  %v4341_v25 = vld [vmem:[%s6907_s3 + $0x78] sm:$0xff]  }
  0x4d   :  { %942 = vmatprep.mubr.bf16.mxu1 %v156_v36  ;;  %v180_v36 = vpack.c.bf16 %v126_v31, %v120_v30  ;;  %v4342_v26 = vld [vmem:[%s6907_s3 + $0x38] sm:$0xff]   ;;  %4016 = vmatprep.subr.bf16.mxu1 %v4341_v25  ;;  %v103_v30 = vld [vmem:[%s6906_s0 + $0x1d0] sm:$0xff] }
  0x4e   :  { %4017 = vmatpush3.bf16.msra.mxu1 %v4342_v26  ;;  %v4343_v31 = vld [vmem:[%s6907_s3 + $0x70] sm:$0xff]  }
  0x4f   :  { %1010 = vmatpush1.bf16.msra.mxu0 %v4302_v37  ;;  %v4326_v37 = vld [vmem:[%s6905_s1 + $0x2c0] ss:$8 sps:$4 sm:$0xff]   ;;  %4018 = vmatprep.subr.bf16.mxu1 %v4343_v31 }
  0x50   :  { %1011 = vmatprep.subr.bf16.mxu0 %v4307_v40  ;;  %v4331_v40 = vld [vmem:[%s6905_s1 + $0x2b4] ss:$8 sps:$4 sm:$0xff]  }
  0x52   :  { %830 = vmatmul.mubr.bf16.gmra.mxu0 %v153_v45  ;;  %v177_v45 = vpack.c.bf16 %v123_v39, %v117_v38  ;;  %v4346_v38 = vld [vmem:[%s6907_s3 + $0x28] sm:$0xff]   ;;  %v109_v39 = vld [vmem:[%s6906_s0 + $0x200] sm:$0xff] }
  0x53   :  { %1012 = vmatpush1.bf16.msra.mxu0 %v4305_v48  ;;  %839 = vmatprep.mubr.bf16.mxu0 %v160_v49  ;;  %v4329_v48 = vld [vmem:[%s6905_s1 + $0x2b0] ss:$8 sps:$4 sm:$0xff]   ;;  %v184_v49 = vpack.c.bf16 %v136_v42, %v130_v41  ;;  %v122_v41 = vld [vmem:[%s6906_s0 + $0x268] sm:$0xff] }
  0x54   :  { %943 = vmatmul.mubr.bf16.gmra.mxu1 %v155_v50  ;;  %1013 = vmatprep.subr.bf16.mxu0 %v4310_v51  ;;  %v179_v50 = vpack.c.bf16 %v125_v44, %v119_v43  ;;  %v4334_v51 = vld [vmem:[%s6905_s1 + $0x2a4] ss:$8 sps:$4 sm:$0xff]   ;;  %v128_v42 = vld [vmem:[%s6906_s0 + $0x298] sm:$0xff] }
  0x55   :  { %952 = vmatprep.mubr.bf16.mxu1 %v162_v52  ;;  %v186_v52 = vpack.c.bf16 %v138_v47, %v132_v46  ;;  %v182_v44 = vpack.c.bf16 %v128_v42, %v122_v41  ;;  %v4348_v46 = vld [vmem:[%s6907_s3 + $0x20] sm:$0xff]  }
  0x56   :  { %v121_v47 = vld [vmem:[%s6906_s0 + $0x260] sm:$0xff] }
  0x57   :  { %1014 = vmatpush1.bf16.msra.mxu0 %v4308_v53  ;;  %v4332_v53 = vld [vmem:[%s6905_s1 + $0x2a0] ss:$8 sps:$4 sm:$0xff]  }
  0x58   :  { %1015 = vmatprep.subr.bf16.mxu0 %v4313_v56  ;;  %v4337_v56 = vld [vmem:[%s6905_s1 + $0x294] ss:$8 sps:$4 sm:$0xff]  }
  0x5a   :  { %840 = vmatmul.mubr.bf16.gmra.mxu0 %v159_v61  ;;  %v183_v61 = vpack.c.bf16 %v135_v55, %v129_v54  ;;  %v4350_v54 = vld [vmem:[%s6907_s3 + $0x18] sm:$0xff]   ;;  %v133_v55 = vld [vmem:[%s6906_s0 + $0x2c0] sm:$0xff] }
  0x5b   :  { %1016 = vmatpush1.bf16.msra.mxu0 %v4311_v0  ;;  %849 = vmatprep.mubr.bf16.mxu0 %v166_v1  ;;  %v185_v0 = vpack.c.bf16 %v137_v60, %v131_v59  ;;  %v4340_v1 = vld [vmem:[%s6905_s1 + $0x284] ss:$8 sps:$4 sm:$0xff]   ;;  %v4352_v59 = vld [vmem:[%s6907_s3 + $0x10] sm:$0xff]  }
  0x5c   :  { %953 = vmatmul.mubr.bf16.gmra.mxu1 %v161_v2  ;;  %1017 = vmatprep.subr.bf16.mxu0 %v4316_v3  ;;  %v4338_v2 = vld [vmem:[%s6905_s1 + $0x280] ss:$8 sps:$4 sm:$0xff]  }
  0x5d   :  { %962 = vmatprep.mubr.bf16.mxu1 %v168_v4  ;;  %v49_v3 = vld [vmem:[%s6906_s0 + $0x20] sm:$0xff]  ;;  %v55_v4 = vld [vmem:[%s6906_s0 + $0x50] sm:$0xff]  ;;  %v4353_v60 = vld [vmem:[%s6907_s3 + $0x48] sm:$0xff]  }
  0x5e   :  { %v145_v7 = vpack.c.bf16 %v55_v4, %v49_v3 }
  0x5f   :  { %1018 = vmatpush1.bf16.msra.mxu0 %v4314_v5  ;;  %v62_v5 = vld [vmem:[%s6906_s0 + $0x88] sm:$0xff] }
  0x60   :  { %1019 = vmatprep.subr.bf16.mxu0 %v4319_v8  ;;  %v152_v8 = vpack.c.bf16 %v68_v6, %v62_v5 }
  0x62   :  { %850 = vmatmul.mubr.bf16.gmra.mxu0 %v165_v13  ;;  %v151_v13 = vpack.c.bf16 %v67_v10, %v61_v9  ;;  %v4358_v9 = vld [vmem:[%s6908_s5 + $0x30] sm:$0xff]  }
  0x63   :  { %1020 = vmatpush2.bf16.msra.mxu0 %v4317_v16  ;;  %859 = vmatprep.mubr.bf16.mxu0 %v172_v17  ;;  %v79_v16 = vld [vmem:[%s6906_s0 + $0x110] sm:$0xff]  ;;  %v86_v17 = vld [vmem:[%s6906_s0 + $0x148] sm:$0xff] }
  0x64   :  { %963 = vmatmul.mubr.bf16.gmra.mxu1 %v167_v18  ;;  %1021 = vmatprep.subr.bf16.mxu0 %v4322_v19  ;;  %v92_v18 = vld [vmem:[%s6906_s0 + $0x178] sm:$0xff]  ;;  %v157_v19 = vpack.c.bf16 %v79_v16, %v73_v15  ;;  %v4360_v16 = vld [vmem:[%s6908_s5 + $0x20] sm:$0xff]  }
  0x65   :  { %972 = vmatprep.mubr.bf16.mxu1 %v174_v20  ;;  %v164_v20 = vpack.c.bf16 %v92_v18, %v86_v17 }
  0x67   :  { %1022 = vmatpush2.bf16.msra.mxu0 %v4320_v21  ;;  %v85_v21 = vld [vmem:[%s6906_s0 + $0x140] sm:$0xff] }
  0x68   :  { %1023 = vmatprep.subr.bf16.mxu0 %v4325_v24  ;;  %v104_v24 = vld [vmem:[%s6906_s0 + $0x1d8] sm:$0xff]  ;;  %v163_v27 = vpack.c.bf16 %v91_v22, %v85_v21 }
  0x69   :  { %v170_v28 = vpack.c.bf16 %v104_v24, %v98_v23  ;;  %v4362_v24 = vld [vmem:[%s6908_s5 + $0x10] sm:$0xff]  }
  0x6a   :  { %860 = vmatmul.mubr.bf16.gmra.mxu0 %v171_v29  ;;  %v97_v29 = vld [vmem:[%s6906_s0 + $0x1a0] sm:$0xff] }
  0x6b   :  { %1024 = vmatpush2.bf16.msra.mxu0 %v4323_v32  ;;  %869 = vmatprep.mubr.bf16.mxu0 %v178_v33  ;;  %v4344_v32 = vld [vmem:[%s6907_s3 + $0x30] sm:$0xff]   ;;  %v110_v33 = vld [vmem:[%s6906_s0 + $0x208] sm:$0xff] }
  0x6c   :  { %973 = vmatmul.mubr.bf16.gmra.mxu1 %v173_v34  ;;  %1025 = vmatprep.subr.bf16.mxu0 %v4328_v35  ;;  %v116_v34 = vld [vmem:[%s6906_s0 + $0x238] sm:$0xff]  ;;  %v169_v35 = vpack.c.bf16 %v103_v30, %v97_v29 }
  0x6d   :  { %982 = vmatprep.mubr.bf16.mxu1 %v180_v36  ;;  %4019 = vmatpush3.bf16.msra.mxu1 %v4344_v32  ;;  %v176_v36 = vpack.c.bf16 %v116_v34, %v110_v33 }
  0x6f   :  { %1026 = vmatpush2.bf16.msra.mxu0 %v4326_v37  ;;  %v4345_v37 = vld [vmem:[%s6907_s3 + $0x68] sm:$0xff]  }
  0x70   :  { %1027 = vmatprep.subr.bf16.mxu0 %v4331_v40  ;;  %v115_v40 = vld [vmem:[%s6906_s0 + $0x230] sm:$0xff]  ;;  %4020 = vmatprep.subr.bf16.mxu1 %v4345_v37 }
  0x71   :  { %4021 = vmatpush3.bf16.msra.mxu1 %v4346_v38  ;;  %v175_v43 = vpack.c.bf16 %v115_v40, %v109_v39 }
  0x72   :  { %870 = vmatmul.mubr.bf16.gmra.mxu0 %v177_v45  ;;  %v4347_v45 = vld [vmem:[%s6907_s3 + $0x60] sm:$0xff]  }
  0x73   :  { %1028 = vmatpush2.bf16.msra.mxu0 %v4329_v48  ;;  %879 = vmatprep.mubr.bf16.mxu0 %v184_v49  ;;  %v127_v48 = vld [vmem:[%s6906_s0 + $0x290] sm:$0xff]  ;;  %v134_v49 = vld [vmem:[%s6906_s0 + $0x2c8] sm:$0xff] }
  0x74   :  { %983 = vmatmul.mubr.bf16.gmra.mxu1 %v179_v50  ;;  %1029 = vmatprep.subr.bf16.mxu0 %v4334_v51  ;;  %v140_v50 = vld [vmem:[%s6906_s0 + $0x2f8] sm:$0xff]  ;;  %v181_v51 = vpack.c.bf16 %v127_v48, %v121_v47 }
  0x75   :  { %992 = vmatprep.mubr.bf16.mxu1 %v186_v52  ;;  %4022 = vmatprep.subr.bf16.mxu1 %v4347_v45  ;;  %v188_v52 = vpack.c.bf16 %v140_v50, %v134_v49 }
  0x76   :  { %4023 = vmatpush3.bf16.msra.mxu1 %v4348_v46 }
  0x77   :  { %1030 = vmatpush2.bf16.msra.mxu0 %v4332_v53  ;;  %v4349_v53 = vld [vmem:[%s6907_s3 + $0x58] sm:$0xff]  }
  0x78   :  { %1031 = vmatprep.subr.bf16.mxu0 %v4337_v56  ;;  %v139_v56 = vld [vmem:[%s6906_s0 + $0x2f0] sm:$0xff]  ;;  %4024 = vmatprep.subr.bf16.mxu1 %v4349_v53 }
  0x79   :  { %v187_v57 = vpack.c.bf16 %v139_v56, %v133_v55 }
  0x7a   :  { %880 = vmatmul.mubr.bf16.gmra.mxu0 %v183_v61  ;;  %4025 = vmatpush3.bf16.msra.mxu1 %v4350_v54  ;;  %v4354_v61 = vld [vmem:[%s6907_s3 + $0x8] sm:$0xff]   ;;  %v285_v54 = vld [vmem:[%s6909_s2] sm:$0x3] }
  0x7b   :  { %1032 = vmatpush2.bf16.msra.mxu0 %v4335_v62  ;;  %1035 = vmatprep.mubr.bf16.mxu0 %v146_v63  ;;  %v4355_v62 = vld [vmem:[%s6907_s3 + $0x40] sm:$0xff]  }
  0x7c   :  { %993 = vmatmul.mubr.bf16.gmra.mxu1 %v185_v0  ;;  %1033 = vmatprep.subr.bf16.mxu0 %v4340_v1  ;;  %v4356_v63 = vld [vmem:[%s6907_s3] sm:$0xff]  }
  0x7d   :  { %4026 = vmatprep.subr.bf16.mxu1 %v4351_v58 }
  0x7e   :  { %4027 = vmatpush3.bf16.msra.mxu1 %v4352_v59 }
  0x7f   :  { %1034 = vmatpush2.bf16.msra.mxu0 %v4338_v2  ;;  %4028 = vmatprep.subr.bf16.mxu1 %v4353_v60 }
  0x82   :  { %1036 = vmatmul.mubr.bf16.vlgmr.msra.gmra.mxu0 %v145_v7  ;;  %4029 = vmatpush3.bf16.msra.mxu1 %v4354_v61  ;;  %v4357_v7 = vld [vmem:[%s6908_s5 + $0x38] sm:$0xff]  }
  0x83   :  { %1045 = vmatprep.mubr.bf16.mxu0 %v152_v8  ;;  %4030 = vmatprep.subr.bf16.mxu1 %v4355_v62 }
  0x84   :  { %4108 = vmatprep.subr.bf16.mxu0 %v4357_v7 }
  0x85   :  { %4109 = vmatpush3.bf16.msra.mxu0 %v4357_v7 }
  0x86   :  { %4031 = vmatpush3.bf16.msra.mxu1 %v4356_v63  ;;  %4110 = vmatprep.subr.bf16.mxu0 %v4358_v9 }
  0x89   :  { %4111 = vmatpush3.bf16.msra.mxu0 %v4358_v9 }
  0x8a   :  { %1046 = vmatmul.mubr.bf16.gmra.mxu0 %v151_v13  ;;  %4112 = vmatprep.subr.bf16.mxu0 %v4359_v12 }
  0x8b   :  { %1055 = vmatprep.mubr.bf16.mxu0 %v158_v14 }
  0x8d   :  { %4113 = vmatpush3.bf16.msra.mxu0 %v4359_v12 }
  0x8e   :  { %4114 = vmatprep.subr.bf16.mxu0 %v4360_v16 }
  0x91   :  { %4115 = vmatpush3.bf16.msra.mxu0 %v4360_v16 }
  0x92   :  { %1056 = vmatmul.mubr.bf16.gmra.mxu0 %v157_v19 }
  0x93   :  { %1065 = vmatprep.mubr.bf16.mxu0 %v164_v20  ;;  %v4361_v20 = vld [vmem:[%s6908_s5 + $0x18] sm:$0xff]  }
  0x94   :  { %4116 = vmatprep.subr.bf16.mxu0 %v4361_v20 }
  0x95   :  { %4117 = vmatpush3.bf16.msra.mxu0 %v4361_v20 }
  0x96   :  { %4118 = vmatprep.subr.bf16.mxu0 %v4362_v24 }
  0x99   :  { %4119 = vmatpush3.bf16.msra.mxu0 %v4362_v24 }
  0x9a   :  { %1066 = vmatmul.mubr.bf16.gmra.mxu0 %v163_v27 }
  0x9b   :  { %1075 = vmatprep.mubr.bf16.mxu0 %v170_v28 }
  0xa2   :  { %1076 = vmatmul.mubr.bf16.gmra.mxu0 %v169_v35 }
  0xa3   :  { %1085 = vmatprep.mubr.bf16.mxu0 %v176_v36 }
  0xaa   :  { %1086 = vmatmul.mubr.bf16.gmra.mxu0 %v175_v43  ;;  %v287_v43 = vlaneseq }
  0xab   :  { %1095 = vmatprep.mubr.bf16.mxu0 %v182_v44 }
  0xac   :  { %v5715_v47 = vshrl.u32 %v287_v43, 7 }
  0xae   :  { %6925 = vst [vmem:[#allocation2_spill] sm:$0xff] %v5715_v47 }
  0xb2   :  { %1096 = vmatmul.mubr.bf16.gmra.mxu0 %v181_v51  ;;  %v5724_v51 = vsub.s32 1, %v5715_v47 }
  0xb3   :  { %1105 = vmatprep.mubr.bf16.mxu0 %v188_v52  ;;  %v5727_v52 = vsub.s32 0, %v5715_v47 }
  0xb4   :  { %6926 = vst [vmem:[#allocation3_spill] sm:$0xff] %v5724_v51 }
  0xb5   :  { %6927 = vst [vmem:[#allocation4_spill] sm:$0xff] %v5727_v52  ;;  %v5742_v58 = vrot.slane %v285_v54, %v5727_v52 }
  0xba   :  { %1106 = vmatmul.mubr.bf16.gmra.mxu0 %v187_v57  ;;  %v5739_v57 = vrot.slane %v285_v54, %v5724_v51 }
 0x102   :  { %v5617_v0 = vpop.f32.mrf.mxu0 }
 0x103   :  { %v812_v7 = vadd.f32 %v5617_v0, %v5742_v58 }
 0x104   :  { %v5619_v1 = vpop.f32.mrf.mxu0  ;;  %v5621_v2 = vpop.f32.mrf.mxu1 }
 0x105   :  { %v814_v62 = vadd.f32 %v5619_v1, %v5739_v57  ;;  %v925_v54 = vadd.f32 %v5621_v2, %v812_v7 }
 0x106   :  { %v5623_v3 = vpop.f32.mrf.mxu0  ;;  %v5625_v4 = vpop.f32.mrf.mxu1 }
 0x107   :  { %v816_v63 = vadd.f32 %v5623_v3, %v5742_v58  ;;  %v927_v24 = vadd.f32 %v5625_v4, %v814_v62 }
 0x108   :  { %v5627_v5 = vpop.f32.mrf.mxu0  ;;  %v5629_v6 = vpop.f32.mrf.mxu1 }
 0x109   :  { %v818_v12 = vadd.f32 %v5627_v5, %v5739_v57  ;;  %v929_v43 = vadd.f32 %v5629_v6, %v816_v63 }
 0x10a   :  { %v5634_v8 = vpop.f32.mrf.mxu0  ;;  %v5639_v10 = vpop.f32.mrf.mxu1 }
 0x10b   :  { %v931_v47 = vadd.f32 %v5639_v10, %v818_v12  ;;  %v822_v6 = vadd.f32 %v5634_v8, %v5742_v58 }
 0x10c   :  { %v5641_v11 = vpop.f32.mrf.mxu0  ;;  %v5648_v14 = vpop.f32.mrf.mxu1 }
 0x10d   :  { %v824_v5 = vadd.f32 %v5641_v11, %v5739_v57 }
 0x10e   :  { %v5646_v13 = vpop.f32.mrf.mxu0  ;;  %v5657_v18 = vpop.f32.mrf.mxu1 }
 0x10f   :  { %v937_v11 = vadd.f32 %v5657_v18, %v824_v5 }
 0x110   :  { %v5650_v15 = vpop.f32.mrf.mxu0  ;;  %v5666_v22 = vpop.f32.mrf.mxu1 }
 0x111   :  { %v828_v10 = vadd.f32 %v5650_v15, %v5739_v57 }
 0x112   :  { %v5655_v17 = vpop.f32.mrf.mxu0  ;;  %v5675_v26 = vpop.f32.mrf.mxu1 }
 0x114   :  { %v5659_v19 = vpop.f32.mrf.mxu0  ;;  %v5681_v29 = vpop.f32.mrf.mxu1 }
 0x115   :  { %v834_v18 = vadd.f32 %v5659_v19, %v5739_v57 }
 0x116   :  { %v5664_v21 = vpop.f32.mrf.mxu0  ;;  %v5687_v32 = vpop.f32.mrf.mxu1 }
 0x117   :  { %v947_v19 = vadd.f32 %v5687_v32, %v834_v18 }
 0x118   :  { %v5668_v23 = vpop.f32.mrf.mxu0  ;;  %v5693_v35 = vpop.f32.mrf.mxu1 }
 0x119   :  { %v838_v5 = vadd.f32 %v5668_v23, %v5739_v57 }
 0x11a   :  { %v5673_v25 = vpop.f32.mrf.mxu0  ;;  %v5699_v38 = vpop.f32.mrf.mxu1 }
 0x11c   :  { %v5677_v27 = vpop.f32.mrf.mxu0  ;;  %v5705_v41 = vpop.f32.mrf.mxu1 }
 0x11d   :  { %v844_v32 = vadd.f32 %v5677_v27, %v5739_v57 }
 0x11e   :  { %v5679_v28 = vpop.f32.mrf.mxu0  ;;  %v5711_v45 = vpop.f32.mrf.mxu1 }
 0x120   :  { %v5683_v30 = vpop.f32.mrf.mxu0  ;;  %v5719_v49 = vpop.f32.mrf.mxu1 }
 0x122   :  { %v5685_v31 = vpop.f32.mrf.mxu0  ;;  %v5734_v55 = vpop.f32.mrf.mxu1 }
 0x124   :  { %v5689_v33 = vpop.f32.mrf.mxu0  ;;  %v5746_v60 = vpop.f32.mrf.mxu1 }
 0x126   :  { %v5691_v34 = vpop.f32.mrf.mxu0  ;;  %v5758_v16 = vpop.f32.mrf.mxu1 }
 0x128   :  { %v5695_v36 = vpop.f32.mrf.mxu0  ;;  %v5764_v51 = vpop.f32.mrf.mxu1 }
 0x12a   :  { %v5697_v37 = vpop.f32.mrf.mxu0  ;;  %v5774_v12 = vpop.f32.mrf.mxu1 }
 0x12c   :  { %v5701_v39 = vpop.f32.mrf.mxu0  ;;  %v5780_v15 = vpop.f32.mrf.mxu1 }
 0x12e   :  { %v5703_v40 = vpop.f32.mrf.mxu0 }
 0x130   :  { %v5707_v42 = vpop.f32.mrf.mxu0 }
 0x132   :  { %v5709_v44 = vpop.f32.mrf.mxu0 }
 0x134   :  { %v5713_v46 = vpop.f32.mrf.mxu0 }
 0x136   :  { %v5717_v48 = vpop.f32.mrf.mxu0 }
 0x138   :  { %v5721_v50 = vpop.f32.mrf.mxu0 }
 0x13a   :  { %v5729_v53 = vpop.f32.mrf.mxu0 }
 0x13b   :  { %6928 = vst [vmem:[#allocation5_spill] sm:$0xff] %v5729_v53  ;;  %v826_v53 = vadd.f32 %v5646_v13, %v5742_v58 }
 0x13c   :  { %v5736_v56 = vpop.f32.mrf.mxu0 }
 0x13e   :  { %v5744_v59 = vpop.f32.mrf.mxu0 }
 0x140   :  { %v5748_v61 = vpop.f32.mrf.mxu0 }
 0x141   :  { %6929 = vst [vmem:[#allocation6_spill] sm:$0xff] %v5748_v61 }
 0x142   :  { %v1037_v9 = vpop.f32.mrf.mxu0 }
 0x143   :  { %v1038_v0 = vadd.f32 %v1037_v9, %v925_v54 }
 0x144   :  { %v1039_v20 = vpop.f32.mrf.mxu0 }
 0x145   :  { %v1040_v3 = vadd.f32 %v1039_v20, %v927_v24  ;;  %v1116_v9 = vmax.f32 %v1038_v0, 0.0  ;;  %v939_v24 = vadd.f32 %v5666_v22, %v826_v53  ;;  %v836_v22 = vadd.f32 %v5664_v21, %v5742_v58 }
 0x146   :  { %v1041_v1 = vpop.f32.mrf.mxu0 }
 0x147   :  { %v1042_v52 = vadd.f32 %v1041_v1, %v929_v43  ;;  %v1117_v63 = vmax.f32 %v1040_v3, 0.0 }
 0x148   :  { %v1043_v61 = vpop.f32.mrf.mxu0 }
 0x149   :  { %v1044_v4 = vadd.f32 %v1043_v61, %v931_v47  ;;  %v1118_v2 = vmax.f32 %v1042_v52, 0.0  ;;  %v935_v47 = vadd.f32 %v5648_v14, %v822_v6  ;;  %v941_v52 = vadd.f32 %v5675_v26, %v828_v10 }
 0x14a   :  { %v1047_v62 = vpop.f32.mrf.mxu0  ;;  %v832_v14 = vadd.f32 %v5655_v17, %v5742_v58 }
 0x14b   :  { %v1119_v7 = vmax.f32 %v1044_v4, 0.0  ;;  %v1148_v61 = vpack.c.bf16 %v1118_v2, %v1116_v9  ;;  %v1048_v1 = vadd.f32 %v1047_v62, %v935_v47  ;;  %v5790_v2 = vpop.f32.mrf.mxu1 }
 0x14c   :  { %v1049_v20 = vpop.f32.mrf.mxu0 }
 0x14d   :  { %v1149_v13 = vpack.c.bf16 %v1119_v7, %v1117_v63  ;;  %v1050_v43 = vadd.f32 %v1049_v20, %v937_v11  ;;  %v1120_v62 = vmax.f32 %v1048_v1, 0.0  ;;  %v949_v63 = vadd.f32 %v5693_v35, %v836_v22  ;;  %v5796_v23 = vpop.f32.mrf.mxu1 }
 0x14e   :  { %v1051_v8 = vpop.f32.mrf.mxu0  ;;  %v945_v7 = vadd.f32 %v5681_v29, %v832_v14  ;;  %v951_v20 = vadd.f32 %v5699_v38, %v838_v5  ;;  %v846_v35 = vadd.f32 %v5679_v28, %v5742_v58  ;;  %v842_v29 = vadd.f32 %v5673_v25, %v5742_v58 }
 0x14f   :  { %v1052_v54 = vadd.f32 %v1051_v8, %v939_v24  ;;  %1331 = vmatprep.mubr.bf16.mxu1 %v1149_v13  ;;  %v1121_v4 = vmax.f32 %v1050_v43, 0.0  ;;  %v980_v1 = vpop.f32.mrf.mxu1  ;;  %v957_v22 = vadd.f32 %v5711_v45, %v844_v32  ;;  %v854_v45 = vadd.f32 %v5689_v33, %v5739_v57 }
 0x150   :  { %v1053_v3 = vpop.f32.mrf.mxu0  ;;  %1332 = vmatmul.mubr.bf16.vlgmr.msra.gmra.mxu1 %v1148_v61  ;;  %v959_v27 = vadd.f32 %v5719_v49, %v846_v35  ;;  %v955_v28 = vadd.f32 %v5705_v41, %v842_v29  ;;  %v856_v49 = vadd.f32 %v5691_v34, %v5742_v58  ;;  %v852_v41 = vadd.f32 %v5685_v31, %v5742_v58 }
 0x151   :  { %v1054_v53 = vadd.f32 %v1053_v3, %v941_v52  ;;  %v1122_v0 = vmax.f32 %v1052_v54, 0.0  ;;  %v848_v52 = vadd.f32 %v5683_v30, %v5739_v57  ;;  %v5810_v30 = vpop.f32.mrf.mxu1  ;;  %v864_v29 = vadd.f32 %v5701_v39, %v5739_v57 }
 0x152   :  { %v1057_v26 = vpop.f32.mrf.mxu0  ;;  %v969_v33 = vadd.f32 %v5764_v51, %v856_v49  ;;  %v965_v34 = vadd.f32 %v5746_v60, %v852_v41  ;;  %v866_v51 = vadd.f32 %v5703_v40, %v5742_v58  ;;  %v862_v60 = vadd.f32 %v5697_v37, %v5742_v58 }
 0x153   :  { %v1123_v6 = vmax.f32 %v1054_v53, 0.0  ;;  %v1150_v9 = vpack.c.bf16 %v1122_v0, %v1120_v62  ;;  %v1058_v13 = vadd.f32 %v1057_v26, %v945_v7  ;;  %v961_v25 = vadd.f32 %v5734_v55, %v848_v52  ;;  %v986_v7 = vpop.f32.mrf.mxu1 }
 0x154   :  { %v1059_v10 = vpop.f32.mrf.mxu0  ;;  %v979_v39 = vadd.f32 %v5796_v23, %v866_v51  ;;  %v975_v40 = vadd.f32 %v5780_v15, %v862_v60  ;;  %v872_v15 = vadd.f32 %v5709_v44, %v5742_v58 }
 0x155   :  { %v1151_v21 = vpack.c.bf16 %v1123_v6, %v1121_v4  ;;  %v1060_v11 = vadd.f32 %v1059_v10, %v947_v19  ;;  %v1124_v3 = vmax.f32 %v1058_v13, 0.0  ;;  %v858_v19 = vadd.f32 %v5695_v36, %v5739_v57  ;;  %v988_v36 = vpop.f32.mrf.mxu1 }
 0x156   :  { %v1061_v17 = vpop.f32.mrf.mxu0 }
 0x157   :  { %v1062_v24 = vadd.f32 %v1061_v17, %v949_v63  ;;  %1339 = vmatprep.mubr.bf16.mxu1 %v1151_v21  ;;  %v1125_v43 = vmax.f32 %v1060_v11, 0.0  ;;  %v971_v31 = vadd.f32 %v5774_v12, %v858_v19  ;;  %v868_v12 = vadd.f32 %v5707_v42, %v5739_v57 }
 0x158   :  { %v1063_v47 = vpop.f32.mrf.mxu0  ;;  %1340 = vmatmul.mubr.bf16.gmra.mxu1 %v1150_v9 }
 0x159   :  { %v1064_v61 = vadd.f32 %v1063_v47, %v951_v20  ;;  %v1126_v8 = vmax.f32 %v1062_v24, 0.0  ;;  %v967_v20 = vadd.f32 %v5758_v16, %v854_v45  ;;  %v981_v37 = vadd.f32 %v980_v1, %v868_v12 }
 0x15a   :  { %v1067_v38 = vpop.f32.mrf.mxu0  ;;  %v878_v1 = vadd.f32 %v5721_v50, %v5739_v57  ;;  %v884_v50 = vadd.f32 %v5736_v56, %v5739_v57 }
 0x15b   :  { %v1127_v54 = vmax.f32 %v1064_v61, 0.0  ;;  %v1152_v14 = vpack.c.bf16 %v1126_v8, %v1124_v3  ;;  %v1068_v4 = vadd.f32 %v1067_v38, %v955_v28 }
 0x15c   :  { %v1069_v18 = vpop.f32.mrf.mxu0 }
 0x15d   :  { %v1153_v53 = vpack.c.bf16 %v1127_v54, %v1125_v43  ;;  %v1070_v26 = vadd.f32 %v1069_v18, %v957_v22  ;;  %v1128_v9 = vmax.f32 %v1068_v4, 0.0  ;;  %v990_v54 = vpop.f32.mrf.mxu1  ;;  %v977_v22 = vadd.f32 %v5790_v2, %v864_v29 }
 0x15e   :  { %v1071_v0 = vpop.f32.mrf.mxu0  ;;  %v876_v2 = vadd.f32 %v5717_v48, %v5742_v58 }
 0x15f   :  { %v1072_v5 = vadd.f32 %v1071_v0, %v959_v27  ;;  %1347 = vmatprep.mubr.bf16.mxu1 %v1153_v53  ;;  %v1129_v63 = vmax.f32 %v1070_v26, 0.0 }
 0x160   :  { %v1073_v6 = vpop.f32.mrf.mxu0  ;;  %1348 = vmatmul.mubr.bf16.gmra.mxu1 %v1152_v14  ;;  %v989_v19 = vadd.f32 %v988_v36, %v876_v2  ;;  %v5873_v2 = vld [vmem:[%s6911_s4] ss:$0 sm:$0xff] }
 0x161   :  { %v1074_v62 = vadd.f32 %v1073_v6, %v961_v25  ;;  %v1130_v10 = vmax.f32 %v1072_v5, 0.0  ;;  %v994_v25 = vpop.f32.mrf.mxu1  ;;  %v874_v5 = vadd.f32 %v5713_v46, %v5739_v57 }
 0x162   :  { %v1077_v55 = vpop.f32.mrf.mxu0 }
 0x163   :  { %v1131_v21 = vmax.f32 %v1074_v62, 0.0  ;;  %v1154_v24 = vpack.c.bf16 %v1130_v10, %v1128_v9  ;;  %v1078_v35 = vadd.f32 %v1077_v55, %v965_v34  ;;  %v996_v62 = vpop.f32.mrf.mxu1  ;;  %v987_v55 = vadd.f32 %v986_v7, %v874_v5 }
 0x164   :  { %v1079_v17 = vpop.f32.mrf.mxu0  ;;  %v991_v9 = vadd.f32 %v990_v54, %v878_v1  ;;  %v886_v7 = vadd.f32 %v5744_v59, %v5742_v58 }
 0x165   :  { %v1155_v11 = vpack.c.bf16 %v1131_v21, %v1129_v63  ;;  %v1080_v47 = vadd.f32 %v1079_v17, %v967_v20  ;;  %v1132_v3 = vmax.f32 %v1078_v35, 0.0  ;;  %v985_v63 = vadd.f32 %v5810_v30, %v872_v15  ;;  %v998_v20 = vpop.f32.mrf.mxu1 }
 0x166   :  { %v1081_v13 = vpop.f32.mrf.mxu0  ;;  %v999_v60 = vadd.f32 %v998_v20, %v886_v7 }
 0x167   :  { %v1082_v32 = vadd.f32 %v1081_v13, %v969_v33  ;;  %1355 = vmatprep.mubr.bf16.mxu1 %v1155_v11  ;;  %v1133_v52 = vmax.f32 %v1080_v47, 0.0  ;;  %v6931_v47 = vld [vmem:[#allocation6_spill] sm:$0xff] }
 0x168   :  { %v1083_v61 = vpop.f32.mrf.mxu0  ;;  %1356 = vmatmul.mubr.bf16.gmra.mxu1 %v1154_v24  ;;  %v6930_v24 = vld [vmem:[#allocation5_spill] sm:$0xff] }
 0x169   :  { %v1084_v16 = vadd.f32 %v1083_v61, %v971_v31  ;;  %v1134_v8 = vmax.f32 %v1082_v32, 0.0  ;;  %v882_v30 = vadd.f32 %v6930_v24, %v5742_v58  ;;  %v888_v32 = vadd.f32 %v6931_v47, %v5739_v57  ;;  %v1000_v61 = vpop.f32.mrf.mxu1 }
 0x16a   :  { %v1087_v38 = vpop.f32.mrf.mxu0 }
 0x16b   :  { %v1135_v43 = vmax.f32 %v1084_v16, 0.0  ;;  %v1156_v53 = vpack.c.bf16 %v1134_v8, %v1132_v3  ;;  %v1088_v42 = vadd.f32 %v1087_v38, %v975_v40  ;;  %v997_v16 = vadd.f32 %v996_v62, %v884_v50 }
 0x16c   :  { %v1089_v18 = vpop.f32.mrf.mxu0  ;;  %v995_v8 = vadd.f32 %v994_v25, %v882_v30  ;;  %v1001_v12 = vadd.f32 %v1000_v61, %v888_v32  ;;  %v4368_v25 = vld [vmem:[%s6910_s7] sm:$0xff]  }
 0x16d   :  { %v1157_v27 = vpack.c.bf16 %v1135_v43, %v1133_v52  ;;  %v1090_v14 = vadd.f32 %v1089_v18, %v977_v22  ;;  %v1136_v41 = vmax.f32 %v1088_v42, 0.0 }
 0x16e   :  { %v1091_v28 = vpop.f32.mrf.mxu0 }
 0x16f   :  { %v1092_v0 = vadd.f32 %v1091_v28, %v979_v39  ;;  %1363 = vmatprep.mubr.bf16.mxu1 %v1157_v27  ;;  %v1137_v45 = vmax.f32 %v1090_v14, 0.0  ;;  %v4364_v28 = vld [vmem:[%s6908_s5] sm:$0xff]   ;;  %v4366_v14 = vld [vmem:[%s6910_s7 + $0x10] sm:$0xff]  }
 0x170   :  { %v1093_v26 = vpop.f32.mrf.mxu0  ;;  %1364 = vmatmul.mubr.bf16.gmra.mxu1 %v1156_v53  ;;  %v4363_v53 = vld [vmem:[%s6908_s5 + $0x8] sm:$0xff]  }
 0x171   :  { %v1094_v23 = vadd.f32 %v1093_v26, %v981_v37  ;;  %v1138_v4 = vmax.f32 %v1092_v0, 0.0  ;;  %4120 = vmatprep.subr.bf16.mxu0 %v4363_v53  ;;  %v4365_v37 = vld [vmem:[%s6910_s7 + $0x18] sm:$0xff]   ;;  %v4367_v0 = vld [vmem:[%s6910_s7 + $0x8] sm:$0xff]  }
 0x172   :  { %v1097_v6 = vpop.f32.mrf.mxu0  ;;  %4121 = vmatpush3.bf16.msra.mxu0 %v4363_v53  ;;  %4140 = vmatprep.subr.bf16.mxu1 %v4365_v37 }
 0x173   :  { %v1139_v49 = vmax.f32 %v1094_v23, 0.0  ;;  %v1158_v48 = vpack.c.bf16 %v1138_v4, %v1136_v41  ;;  %v1098_v33 = vadd.f32 %v1097_v6, %v985_v63  ;;  %4122 = vmatprep.subr.bf16.mxu0 %v4364_v28  ;;  %4141 = vmatpush3.bf16.msra.mxu1 %v4365_v37 }
 0x174   :  { %v1099_v10 = vpop.f32.mrf.mxu0  ;;  %4142 = vmatprep.subr.bf16.mxu1 %v4366_v14 }
 0x175   :  { %v1159_v46 = vpack.c.bf16 %v1139_v49, %v1137_v45  ;;  %v1100_v17 = vadd.f32 %v1099_v10, %v987_v55  ;;  %v1140_v29 = vmax.f32 %v1098_v33, 0.0 }
 0x176   :  { %v1101_v21 = vpop.f32.mrf.mxu0  ;;  %4123 = vmatpush3.bf16.msra.mxu0 %v4364_v28 }
 0x177   :  { %v1102_v44 = vadd.f32 %v1101_v21, %v989_v19  ;;  %1371 = vmatprep.mubr.bf16.mxu1 %v1159_v46  ;;  %v1141_v36 = vmax.f32 %v1100_v17, 0.0  ;;  %4143 = vmatpush3.bf16.msra.mxu1 %v4366_v14 }
 0x178   :  { %v1103_v11 = vpop.f32.mrf.mxu0  ;;  %1372 = vmatmul.mubr.bf16.gmra.mxu1 %v1158_v48  ;;  %4144 = vmatprep.subr.bf16.mxu1 %v4367_v0 }
 0x179   :  { %v1104_v34 = vadd.f32 %v1103_v11, %v991_v9  ;;  %v1142_v13 = vmax.f32 %v1102_v44, 0.0 }
 0x17a   :  { %v1107_v31 = vpop.f32.mrf.mxu0 }
 0x17b   :  { %v1143_v35 = vmax.f32 %v1104_v34, 0.0  ;;  %v1160_v38 = vpack.c.bf16 %v1142_v13, %v1140_v29  ;;  %v1108_v58 = vadd.f32 %v1107_v31, %v995_v8  ;;  %4145 = vmatpush3.bf16.msra.mxu1 %v4367_v0 }
 0x17c   :  { %v1109_v51 = vpop.f32.mrf.mxu0  ;;  %4146 = vmatprep.subr.bf16.mxu1 %v4368_v25 }
 0x17d   :  { %v1161_v56 = vpack.c.bf16 %v1143_v35, %v1141_v36  ;;  %v1110_v52 = vadd.f32 %v1109_v51, %v997_v16  ;;  %v1144_v39 = vmax.f32 %v1108_v58, 0.0 }
 0x17e   :  { %v1111_v59 = vpop.f32.mrf.mxu0 }
 0x17f   :  { %v1112_v43 = vadd.f32 %v1111_v59, %v999_v60  ;;  %1379 = vmatprep.mubr.bf16.mxu1 %v1161_v56  ;;  %v1145_v18 = vmax.f32 %v1110_v52, 0.0  ;;  %4147 = vmatpush3.bf16.msra.mxu1 %v4368_v25 }
 0x180   :  { %v1113_v54 = vpop.f32.mrf.mxu0  ;;  %1380 = vmatmul.mubr.bf16.gmra.mxu1 %v1160_v38 }
 0x181   :  { %v1114_v3 = vadd.f32 %v1113_v54, %v1001_v12  ;;  %v1146_v57 = vmax.f32 %v1112_v43, 0.0 }
 0x183   :  { %v1147_v22 = vmax.f32 %v1114_v3, 0.0  ;;  %v1162_v40 = vpack.c.bf16 %v1146_v57, %v1144_v39 }
 0x185   :  { %v1163_v27 = vpack.c.bf16 %v1147_v22, %v1145_v18 }
 0x187   :  { %1387 = vmatprep.mubr.bf16.mxu1 %v1163_v27 }
 0x188   :  { %1388 = vmatmul.mubr.bf16.gmra.mxu1 %v1162_v40 }
 0x210   :  { %v4032_v42 = vpop.f32.mrf.mxu1 }
 0x212   :  { %v4033_v26 = vpop.f32.mrf.mxu1 }
 0x213   :  { %v4034_v5 = vadd.f32 %v4033_v26, %v4032_v42 }
 0x214   :  { %v4035_v23 = vpop.f32.mrf.mxu1 }
 0x215   :  { %v1334_v4 = vadd.f32 %v4034_v5, %v5873_v2 }
 0x216   :  { %v4036_v15 = vpop.f32.mrf.mxu1 }
 0x217   :  { %v4037_v6 = vadd.f32 %v4036_v15, %v4035_v23  ;;  %v1396_v62 = vmax.f32 %v1334_v4, 0.0 }
 0x218   :  { %v4038_v1 = vpop.f32.mrf.mxu1 }
 0x219   :  { %v1337_v45 = vadd.f32 %v4037_v6, %v5873_v2 }
 0x21a   :  { %v4039_v49 = vpop.f32.mrf.mxu1 }
 0x21b   :  { %v1397_v41 = vmax.f32 %v1337_v45, 0.0  ;;  %v4040_v10 = vadd.f32 %v4039_v49, %v4038_v1 }
 0x21c   :  { %v4041_v55 = vpop.f32.mrf.mxu1 }
 0x21d   :  { %v1412_v19 = vpack.c.bf16 %v1397_v41, %v1396_v62  ;;  %v1342_v63 = vadd.f32 %v4040_v10, %v5873_v2 }
 0x21e   :  { %v4042_v46 = vpop.f32.mrf.mxu1 }
 0x21f   :  { %v4043_v48 = vadd.f32 %v4042_v46, %v4041_v55  ;;  %4124 = vmatprep.mubr.bf16.mxu0 %v1412_v19  ;;  %v1398_v44 = vmax.f32 %v1342_v63, 0.0 }
 0x220   :  { %v4044_v21 = vpop.f32.mrf.mxu1 }
 0x221   :  { %v1345_v9 = vadd.f32 %v4043_v48, %v5873_v2 }
 0x222   :  { %v4045_v17 = vpop.f32.mrf.mxu1 }
 0x223   :  { %v1399_v20 = vmax.f32 %v1345_v9, 0.0  ;;  %v4046_v33 = vadd.f32 %v4045_v17, %v4044_v21 }
 0x224   :  { %v4047_v11 = vpop.f32.mrf.mxu1 }
 0x225   :  { %v1413_v50 = vpack.c.bf16 %v1399_v20, %v1398_v44  ;;  %v1350_v34 = vadd.f32 %v4046_v33, %v5873_v2 }
 0x226   :  { %v4048_v7 = vpop.f32.mrf.mxu1 }
 0x227   :  { %v4049_v24 = vadd.f32 %v4048_v7, %v4047_v11  ;;  %4125 = vmatmul.mubr.bf16.vlgmr.msra.gmra.mxu0 %v1413_v50  ;;  %v1400_v47 = vmax.f32 %v1350_v34, 0.0  ;;  %v4369_v50 = vld [vmem:[%s6912_s9 + $0x70] ss:$8 sps:$4 sm:$0xff]   ;;  %v4371_v7 = vld [vmem:[%s6912_s9 + $0x74] ss:$8 sps:$4 sm:$0xff]  }
 0x228   :  { %v4050_v30 = vpop.f32.mrf.mxu1  ;;  %v4374_v34 = vld [vmem:[%s6912_s9 + $0x64] ss:$8 sps:$4 sm:$0xff]   ;;  %1889 = vmatprep.subr.bf16.mxu0 %v4371_v7 }
 0x229   :  { %v1353_v13 = vadd.f32 %v4049_v24, %v5873_v2  ;;  %1890 = vmatpush1.bf16.msra.mxu0 %v4369_v50  ;;  %v4377_v24 = vld [vmem:[%s6912_s9 + $0x54] ss:$8 sps:$4 sm:$0xff]   ;;  %v4405_v50 = vld [vmem:[%s6914_s11 + $0xf0] ss:$24 sps:$4 sm:$0xff]  }
 0x22a   :  { %v4051_v31 = vpop.f32.mrf.mxu1  ;;  %1891 = vmatprep.subr.bf16.mxu0 %v4374_v34  ;;  %v4413_v7 = vld [vmem:[%s6914_s11 + $0xc4] ss:$24 sps:$4 sm:$0xff]   ;;  %v4411_v34 = vld [vmem:[%s6914_s11 + $0xc0] ss:$24 sps:$4 sm:$0xff]  }
 0x22b   :  { %v1401_v32 = vmax.f32 %v1353_v13, 0.0  ;;  %v4052_v36 = vadd.f32 %v4051_v31, %v4050_v30  ;;  %v4375_v30 = vld [vmem:[%s6912_s9 + $0x50] ss:$8 sps:$4 sm:$0xff]   ;;  %v4380_v13 = vld [vmem:[%s6912_s9 + $0x44] ss:$8 sps:$4 sm:$0xff]  }
 0x22c   :  { %v4053_v35 = vpop.f32.mrf.mxu1  ;;  %v4378_v31 = vld [vmem:[%s6912_s9 + $0x40] ss:$8 sps:$4 sm:$0xff]  }
 0x22d   :  { %v1414_v61 = vpack.c.bf16 %v1401_v32, %v1400_v47  ;;  %v1358_v51 = vadd.f32 %v4052_v36, %v5873_v2  ;;  %v4383_v47 = vld [vmem:[%s6912_s9 + $0x34] ss:$8 sps:$4 sm:$0xff]   ;;  %v4381_v32 = vld [vmem:[%s6912_s9 + $0x30] ss:$8 sps:$4 sm:$0xff]  }
 0x22e   :  { %v4054_v29 = vpop.f32.mrf.mxu1 }
 0x22f   :  { %v4055_v16 = vadd.f32 %v4054_v29, %v4053_v35  ;;  %4128 = vmatprep.mubr.bf16.mxu0 %v1414_v61  ;;  %v1402_v38 = vmax.f32 %v1358_v51, 0.0  ;;  %v3786_v29 = vld [vmem:[%s6913_s6] ss:$0 sm:$0xff] }
 0x230   :  { %v4056_v60 = vpop.f32.mrf.mxu1 }
 0x231   :  { %v1361_v56 = vadd.f32 %v4055_v16, %v5873_v2 }
 0x232   :  { %v4057_v8 = vpop.f32.mrf.mxu1 }
 0x233   :  { %v1403_v59 = vmax.f32 %v1361_v56, 0.0  ;;  %v4058_v12 = vadd.f32 %v4057_v8, %v4056_v60 }
 0x234   :  { %v4059_v52 = vpop.f32.mrf.mxu1 }
 0x235   :  { %v1415_v43 = vpack.c.bf16 %v1403_v59, %v1402_v38  ;;  %v1366_v54 = vadd.f32 %v4058_v12, %v5873_v2 }
 0x236   :  { %v4060_v58 = vpop.f32.mrf.mxu1 }
 0x237   :  { %v4061_v3 = vadd.f32 %v4060_v58, %v4059_v52  ;;  %4129 = vmatmul.mubr.bf16.gmra.mxu0 %v1415_v43  ;;  %v1404_v39 = vmax.f32 %v1366_v54, 0.0 }
 0x238   :  { %v4062_v57 = vpop.f32.mrf.mxu1 }
 0x239   :  { %v1369_v18 = vadd.f32 %v4061_v3, %v5873_v2 }
 0x23a   :  { %v4063_v22 = vpop.f32.mrf.mxu1 }
 0x23b   :  { %v1405_v27 = vmax.f32 %v1369_v18, 0.0  ;;  %v4064_v40 = vadd.f32 %v4063_v22, %v4062_v57 }
 0x23c   :  { %v4065_v53 = vpop.f32.mrf.mxu1 }
 0x23d   :  { %v1416_v28 = vpack.c.bf16 %v1405_v27, %v1404_v39  ;;  %v1374_v14 = vadd.f32 %v4064_v40, %v5873_v2 }
 0x23e   :  { %v4066_v37 = vpop.f32.mrf.mxu1 }
 0x23f   :  { %v4067_v0 = vadd.f32 %v4066_v37, %v4065_v53  ;;  %4132 = vmatprep.mubr.bf16.mxu0 %v1416_v28  ;;  %v1406_v5 = vmax.f32 %v1374_v14, 0.0 }
 0x240   :  { %v4068_v25 = vpop.f32.mrf.mxu1 }
 0x241   :  { %v1377_v42 = vadd.f32 %v4067_v0, %v5873_v2 }
 0x242   :  { %v4069_v26 = vpop.f32.mrf.mxu1 }
 0x243   :  { %v1407_v23 = vmax.f32 %v1377_v42, 0.0  ;;  %v4070_v15 = vadd.f32 %v4069_v26, %v4068_v25 }
 0x244   :  { %v4071_v4 = vpop.f32.mrf.mxu1 }
 0x245   :  { %v1417_v6 = vpack.c.bf16 %v1407_v23, %v1406_v5  ;;  %v1382_v45 = vadd.f32 %v4070_v15, %v5873_v2 }
 0x246   :  { %v4072_v1 = vpop.f32.mrf.mxu1 }
 0x247   :  { %v4073_v49 = vadd.f32 %v4072_v1, %v4071_v4  ;;  %4133 = vmatmul.mubr.bf16.gmra.mxu0 %v1417_v6  ;;  %v1408_v55 = vmax.f32 %v1382_v45, 0.0 }
 0x248   :  { %v4074_v62 = vpop.f32.mrf.mxu1 }
 0x249   :  { %v1385_v41 = vadd.f32 %v4073_v49, %v5873_v2 }
 0x24a   :  { %v4075_v10 = vpop.f32.mrf.mxu1 }
 0x24b   :  { %v1409_v19 = vmax.f32 %v1385_v41, 0.0  ;;  %v4076_v46 = vadd.f32 %v4075_v10, %v4074_v62  ;;  %v4386_v10 = vld [vmem:[%s6912_s9 + $0x24] ss:$8 sps:$4 sm:$0xff]  }
 0x24c   :  { %v4077_v63 = vpop.f32.mrf.mxu1 }
 0x24d   :  { %v1418_v48 = vpack.c.bf16 %v1409_v19, %v1408_v55  ;;  %v1390_v9 = vadd.f32 %v4076_v46, %v5873_v2  ;;  %v4384_v55 = vld [vmem:[%s6912_s9 + $0x20] ss:$8 sps:$4 sm:$0xff]   ;;  %v4389_v19 = vld [vmem:[%s6912_s9 + $0x14] ss:$8 sps:$4 sm:$0xff]   ;;  %v4387_v46 = vld [vmem:[%s6912_s9 + $0x10] ss:$8 sps:$4 sm:$0xff]  }
 0x24e   :  { %v4078_v21 = vpop.f32.mrf.mxu1 }
 0x24f   :  { %v4079_v17 = vadd.f32 %v4078_v21, %v4077_v63  ;;  %4136 = vmatprep.mubr.bf16.mxu0 %v1418_v48  ;;  %v1410_v20 = vmax.f32 %v1390_v9, 0.0  ;;  %v4392_v63 = vld [vmem:[%s6912_s9 + $0x4] ss:$8 sps:$4 sm:$0xff]   ;;  %v4390_v48 = vld [vmem:[%s6912_s9] ss:$8 sps:$4 sm:$0xff]   ;;  %v4922_v21 = vmov 0  }
 0x250   :  { %v4393_v9 = vld [vmem:[%s6914_s11 + $0x150] ss:$24 sps:$4 sm:$0xff]  }
 0x251   :  { %v1393_v44 = vadd.f32 %v4079_v17, %v5873_v2  ;;  %v4372_v2 = vld [vmem:[%s6912_s9 + $0x60] ss:$8 sps:$4 sm:$0xff]   ;;  %v4395_v17 = vld [vmem:[%s6914_s11 + $0x154] ss:$24 sps:$4 sm:$0xff]  }
 0x252   :  { %1892 = vmatpush1.bf16.msra.mxu0 %v4372_v2  ;;  %2658 = vmatprep.subr.bf16.mxu1 %v4395_v17  ;;  %v4419_v2 = vld [vmem:[%s6914_s11 + $0x94] ss:$24 sps:$4 sm:$0xff]  }
 0x253   :  { %v1411_v33 = vmax.f32 %v1393_v44, 0.0  ;;  %1893 = vmatprep.subr.bf16.mxu0 %v4377_v24  ;;  %v4398_v44 = vld [vmem:[%s6914_s11 + $0x15c] ss:$24 sps:$4 sm:$0xff]   ;;  %v4417_v24 = vld [vmem:[%s6914_s11 + $0x90] ss:$24 sps:$4 sm:$0xff]  }
 0x255   :  { %v1419_v11 = vpack.c.bf16 %v1411_v33, %v1410_v20  ;;  %v4401_v20 = vld [vmem:[%s6914_s11 + $0x124] ss:$24 sps:$4 sm:$0xff]   ;;  %v4399_v33 = vld [vmem:[%s6914_s11 + $0x120] ss:$24 sps:$4 sm:$0xff]  }
 0x256   :  { %1894 = vmatpush1.bf16.msra.mxu0 %v4375_v30  ;;  %v4425_v30 = vld [vmem:[%s6914_s11 + $0x64] ss:$24 sps:$4 sm:$0xff]  }
 0x257   :  { %4137 = vmatmul.mubr.bf16.gmra.mxu0 %v1419_v11  ;;  %1895 = vmatprep.subr.bf16.mxu0 %v4380_v13  ;;  %v4407_v11 = vld [vmem:[%s6914_s11 + $0xf4] ss:$24 sps:$4 sm:$0xff]   ;;  %v4423_v13 = vld [vmem:[%s6914_s11 + $0x60] ss:$24 sps:$4 sm:$0xff]  }
 0x258   :  { %1921 = vmatprep.mubr.bf16.mxu0 %v4922_v21 }
 0x25a   :  { %1896 = vmatpush1.bf16.msra.mxu0 %v4378_v31  ;;  %v4431_v31 = vld [vmem:[%s6914_s11 + $0x34] ss:$24 sps:$4 sm:$0xff]  }
 0x25b   :  { %1897 = vmatprep.subr.bf16.mxu0 %v4383_v47  ;;  %v4429_v47 = vld [vmem:[%s6914_s11 + $0x30] ss:$24 sps:$4 sm:$0xff]  }
 0x25e   :  { %1898 = vmatpush1.bf16.msra.mxu0 %v4381_v32  ;;  %v4437_v32 = vld [vmem:[%s6914_s11 + $0x4] ss:$24 sps:$4 sm:$0xff]  }
 0x25f   :  { %1899 = vmatprep.subr.bf16.mxu0 %v4386_v10 }
 0x262   :  { %1900 = vmatpush1.bf16.msra.mxu0 %v4384_v55  ;;  %v4420_v55 = vld [vmem:[%s6914_s11 + $0x98] ss:$24 sps:$4 sm:$0xff]  }
 0x263   :  { %1901 = vmatprep.subr.bf16.mxu0 %v4389_v19 }
 0x266   :  { %1902 = vmatpush1.bf16.msra.mxu0 %v4387_v46 }
 0x267   :  { %1903 = vmatprep.subr.bf16.mxu0 %v4392_v63  ;;  %v4428_v63 = vld [vmem:[%s6914_s11 + $0x6c] ss:$24 sps:$4 sm:$0xff]  }
 0x26a   :  { %1904 = vmatpush1.bf16.msra.mxu0 %v4390_v48 }
 0x26b   :  { %2771 = vmatprep.subr.bf16.mxu0 %v4398_v44  ;;  %v4434_v44 = vld [vmem:[%s6914_s11 + $0x3c] ss:$24 sps:$4 sm:$0xff]  }
 0x2e7   :  { %v4126_v36 = vpop.f32.mrf.mxu0 }
 0x2e8   :  { %v1534_v8 = vadd.f32 %v4126_v36, %v3786_v29  ;;  %v4435_v36 = vld [vmem:[%s6914_s11] ss:$24 sps:$4 sm:$0xff]  }
 0x2e9   :  { %v1525_v35 = vpop.f32.mrf.mxu0 }
 0x2ea   :  { %v1526_v60 = vadd.f32 %v3786_v29, %v1525_v35  ;;  %v4443_v35 = vld [vmem:[%s6914_s11 + $0x2d4] ss:$24 sps:$4 sm:$0xff]  }
 0x2eb   :  { %v4127_v61 = vpop.f32.mrf.mxu0 }
 0x2ec   :  { %v1537_v51 = vadd.f32 %v4127_v61, %v3786_v29  ;;  %v4441_v61 = vld [vmem:[%s6914_s11 + $0x2d0] ss:$24 sps:$4 sm:$0xff]  }
 0x2ed   :  { %v1528_v16 = vpop.f32.mrf.mxu0 }
 0x2ee   :  { %v1529_v56 = vadd.f32 %v3786_v29, %v1528_v16  ;;  %v1589_v59 = vpack.c.bf16 %v1537_v51, %v1534_v8  ;;  %v4447_v51 = vld [vmem:[%s6914_s11 + $0x2a0] ss:$24 sps:$4 sm:$0xff]   ;;  %v4455_v16 = vld [vmem:[%s6914_s11 + $0x274] ss:$24 sps:$4 sm:$0xff]  }
 0x2ef   :  { %v4459_v8 = vld [vmem:[%s6914_s11 + $0x240] ss:$24 sps:$4 sm:$0xff]  }
 0x2f0   :  { %v1588_v38 = vpack.c.bf16 %v1529_v56, %v1526_v60  ;;  %v4453_v60 = vld [vmem:[%s6914_s11 + $0x270] ss:$24 sps:$4 sm:$0xff]   ;;  %v4461_v56 = vld [vmem:[%s6914_s11 + $0x244] ss:$24 sps:$4 sm:$0xff]  }
 0x2f2   :  { %4148 = vmatprep.mubr.msk.bf16.mxu1 %vm1635_vm0, %v1588_v38  ;;  %v4467_v38 = vld [vmem:[%s6914_s11 + $0x214] ss:$24 sps:$4 sm:$0xff]  }
 0x2f3   :  { %4149 = vmatmul.mubr.msk.bf16.vlgmr.msra.gmra.mxu1 %vm1635_vm0, %v1589_v59  ;;  %v4465_v59 = vld [vmem:[%s6914_s11 + $0x210] ss:$24 sps:$4 sm:$0xff]  }
 0x2f4   :  { %2659 = vmatpush1.bf16.msra.mxu1 %v4393_v9  ;;  %v4426_v9 = vld [vmem:[%s6914_s11 + $0x68] ss:$24 sps:$4 sm:$0xff]  }
 0x2f5   :  { %2660 = vmatprep.subr.bf16.mxu1 %v4401_v20 }
 0x2f7   :  { %v4130_v12 = vpop.f32.mrf.mxu0 }
 0x2f8   :  { %v1550_v18 = vadd.f32 %v4130_v12, %v3786_v29  ;;  %2661 = vmatpush1.bf16.msra.mxu1 %v4399_v33 }
 0x2f9   :  { %v1541_v52 = vpop.f32.mrf.mxu0  ;;  %2662 = vmatprep.subr.bf16.mxu1 %v4407_v11 }
 0x2fa   :  { %v1542_v3 = vadd.f32 %v3786_v29, %v1541_v52 }
 0x2fb   :  { %v4131_v43 = vpop.f32.mrf.mxu0 }
 0x2fc   :  { %v1553_v58 = vadd.f32 %v4131_v43, %v3786_v29  ;;  %2663 = vmatpush1.bf16.msra.mxu1 %v4405_v50  ;;  %v6035_v43 = vld [vmem:[%s6915_s8] ss:$0 sm:$0xff]  ;;  %v4432_v50 = vld [vmem:[%s6914_s11 + $0x38] ss:$24 sps:$4 sm:$0xff]  }
 0x2fd   :  { %v1544_v54 = vpop.f32.mrf.mxu0  ;;  %2664 = vmatprep.subr.bf16.mxu1 %v4413_v7 }
 0x2fe   :  { %v1545_v57 = vadd.f32 %v3786_v29, %v1544_v54  ;;  %v1591_v39 = vpack.c.bf16 %v1553_v58, %v1550_v18 }
 0x300   :  { %v1590_v22 = vpack.c.bf16 %v1545_v57, %v1542_v3  ;;  %2665 = vmatpush1.bf16.msra.mxu1 %v4411_v34  ;;  %v4440_v34 = vld [vmem:[%s6914_s11 + $0xc] ss:$24 sps:$4 sm:$0xff]  }
 0x301   :  { %2666 = vmatprep.subr.bf16.mxu1 %v4419_v2 }
 0x302   :  { %4152 = vmatprep.mubr.msk.bf16.mxu1 %vm1635_vm0, %v1590_v22 }
 0x303   :  { %4153 = vmatmul.mubr.msk.bf16.gmra.mxu1 %vm1635_vm0, %v1591_v39  ;;  %v4396_v39 = vld [vmem:[%s6914_s11 + $0x158] ss:$24 sps:$4 sm:$0xff]  }
 0x304   :  { %2667 = vmatpush1.bf16.msra.mxu1 %v4417_v24 }
 0x305   :  { %2668 = vmatprep.subr.bf16.mxu1 %v4425_v30 }
 0x307   :  { %v4134_v27 = vpop.f32.mrf.mxu0 }
 0x308   :  { %v1566_v25 = vadd.f32 %v4134_v27, %v3786_v29  ;;  %2669 = vmatpush1.bf16.msra.mxu1 %v4423_v13  ;;  %v4438_v13 = vld [vmem:[%s6914_s11 + $0x8] ss:$24 sps:$4 sm:$0xff]  }
 0x309   :  { %v1557_v40 = vpop.f32.mrf.mxu0  ;;  %2670 = vmatprep.subr.bf16.mxu1 %v4431_v31 }
 0x30a   :  { %v1558_v14 = vadd.f32 %v3786_v29, %v1557_v40 }
 0x30b   :  { %v4135_v53 = vpop.f32.mrf.mxu0 }
 0x30c   :  { %v1569_v28 = vadd.f32 %v4135_v53, %v3786_v29  ;;  %2671 = vmatpush1.bf16.msra.mxu1 %v4429_v47  ;;  %v4404_v53 = vld [vmem:[%s6914_s11 + $0x12c] ss:$24 sps:$4 sm:$0xff]   ;;  %v4446_v47 = vld [vmem:[%s6914_s11 + $0x2dc] ss:$24 sps:$4 sm:$0xff]  }
 0x30d   :  { %v1560_v37 = vpop.f32.mrf.mxu0  ;;  %2672 = vmatprep.subr.bf16.mxu1 %v4437_v32 }
 0x30e   :  { %v1561_v0 = vadd.f32 %v3786_v29, %v1560_v37  ;;  %v1593_v26 = vpack.c.bf16 %v1569_v28, %v1566_v25  ;;  %v4402_v37 = vld [vmem:[%s6914_s11 + $0x128] ss:$24 sps:$4 sm:$0xff]  }
 0x310   :  { %v1592_v42 = vpack.c.bf16 %v1561_v0, %v1558_v14  ;;  %2673 = vmatpush1.bf16.msra.mxu1 %v4435_v36  ;;  %v4410_v0 = vld [vmem:[%s6914_s11 + $0xfc] ss:$24 sps:$4 sm:$0xff]  }
 0x311   :  { %2674 = vmatprep.subr.bf16.mxu1 %v4443_v35  ;;  %v4444_v35 = vld [vmem:[%s6914_s11 + $0x2d8] ss:$24 sps:$4 sm:$0xff]  }
 0x312   :  { %4156 = vmatprep.mubr.msk.bf16.mxu1 %vm1635_vm0, %v1592_v42 }
 0x313   :  { %4157 = vmatmul.mubr.msk.bf16.gmra.mxu1 %vm1635_vm0, %v1593_v26 }
 0x314   :  { %2675 = vmatpush2.bf16.msra.mxu1 %v4441_v61 }
 0x317   :  { %v4138_v5 = vpop.f32.mrf.mxu0 }
 0x318   :  { %v1582_v49 = vadd.f32 %v4138_v5, %v3786_v29  ;;  %v4408_v5 = vld [vmem:[%s6914_s11 + $0xf8] ss:$24 sps:$4 sm:$0xff]  }
 0x319   :  { %v1573_v23 = vpop.f32.mrf.mxu0 }
 0x31a   :  { %v1574_v1 = vadd.f32 %v3786_v29, %v1573_v23 }
 0x31b   :  { %v4139_v15 = vpop.f32.mrf.mxu0 }
 0x31c   :  { %v1585_v4 = vadd.f32 %v4139_v15, %v3786_v29  ;;  %v4416_v15 = vld [vmem:[%s6914_s11 + $0xcc] ss:$24 sps:$4 sm:$0xff]  }
 0x31d   :  { %v1576_v6 = vpop.f32.mrf.mxu0 }
 0x31e   :  { %v1577_v45 = vadd.f32 %v3786_v29, %v1576_v6  ;;  %v1595_v41 = vpack.c.bf16 %v1585_v4, %v1582_v49  ;;  %v4449_v29 = vld [vmem:[%s6914_s11 + $0x2a4] ss:$24 sps:$4 sm:$0xff]  }
 0x31f   :  { %2676 = vmatprep.subr.bf16.mxu1 %v4449_v29 }
 0x320   :  { %v1594_v62 = vpack.c.bf16 %v1577_v45, %v1574_v1  ;;  %2677 = vmatpush2.bf16.msra.mxu1 %v4447_v51  ;;  %v4414_v45 = vld [vmem:[%s6914_s11 + $0xc8] ss:$24 sps:$4 sm:$0xff]   ;;  %v4452_v51 = vld [vmem:[%s6914_s11 + $0x2ac] ss:$24 sps:$4 sm:$0xff]  }
 0x321   :  { %2678 = vmatprep.subr.bf16.mxu1 %v4455_v16 }
 0x322   :  { %4160 = vmatprep.mubr.msk.bf16.mxu1 %vm1635_vm0, %v1594_v62  ;;  %v4422_v62 = vld [vmem:[%s6914_s11 + $0x9c] ss:$24 sps:$4 sm:$0xff]  }
 0x323   :  { %4161 = vmatmul.mubr.msk.bf16.gmra.mxu1 %vm1635_vm0, %v1595_v41 }
 0x324   :  { %2679 = vmatpush2.bf16.msra.mxu1 %v4453_v60  ;;  %v4450_v60 = vld [vmem:[%s6914_s11 + $0x2a8] ss:$24 sps:$4 sm:$0xff]  }
 0x325   :  { %2680 = vmatprep.subr.bf16.mxu1 %v4461_v56 }
 0x328   :  { %2681 = vmatpush2.bf16.msra.mxu1 %v4459_v8  ;;  %v4458_v8 = vld [vmem:[%s6914_s11 + $0x27c] ss:$24 sps:$4 sm:$0xff]  }
 0x329   :  { %2682 = vmatprep.subr.bf16.mxu1 %v4467_v38 }
 0x32c   :  { %2683 = vmatpush2.bf16.msra.mxu1 %v4465_v59 }
 0x3b3   :  { %v4150_v12 = vpop.f32.mrf.mxu1 }
 0x3b4   :  { %v1703_v28 = vadd.f32 %v4150_v12, %v6035_v43 }
 0x3b5   :  { %v1694_v52 = vpop.f32.mrf.mxu1 }
 0x3b6   :  { %v1695_v54 = vadd.f32 %v6035_v43, %v1694_v52  ;;  %v1759_v42 = vmax.f32 %v1703_v28, 0.0  ;;  %v4456_v52 = vld [vmem:[%s6914_s11 + $0x278] ss:$24 sps:$4 sm:$0xff]  }
 0x3b7   :  { %v4151_v58 = vpop.f32.mrf.mxu1  ;;  %v4468_v28 = vld [vmem:[%s6914_s11 + $0x218] ss:$24 sps:$4 sm:$0xff]  }
 0x3b8   :  { %v1757_v18 = vmax.f32 %v1695_v54, 0.0  ;;  %v1706_v27 = vadd.f32 %v4151_v58, %v6035_v43  ;;  %v4464_v54 = vld [vmem:[%s6914_s11 + $0x24c] ss:$24 sps:$4 sm:$0xff]  }
 0x3b9   :  { %v1697_v3 = vpop.f32.mrf.mxu1 }
 0x3ba   :  { %v1698_v57 = vadd.f32 %v6035_v43, %v1697_v3  ;;  %v1760_v14 = vmax.f32 %v1706_v27, 0.0  ;;  %v4470_v27 = vld [vmem:[%s6914_s11 + $0x21c] ss:$24 sps:$4 sm:$0xff]  }
 0x3bc   :  { %v1758_v22 = vmax.f32 %v1698_v57, 0.0  ;;  %v1774_v23 = vpack.c.bf16 %v1760_v14, %v1759_v42 }
 0x3be   :  { %v1773_v40 = vpack.c.bf16 %v1758_v22, %v1757_v18  ;;  %v4462_v22 = vld [vmem:[%s6914_s11 + $0x248] ss:$24 sps:$4 sm:$0xff]  }
 0x3c0   :  { %1922 = vmatmul.mubr.bf16.vlgmr.msra.gmra.mxu0 %v1773_v40 }
 0x3c1   :  { %1931 = vmatprep.mubr.bf16.mxu0 %v4922_v21  ;;  %2772 = vmatpush1.bf16.msra.mxu0 %v4396_v39 }
 0x3c2   :  { %2773 = vmatprep.subr.bf16.mxu0 %v4404_v53 }
 0x3c3   :  { %v4154_v25 = vpop.f32.mrf.mxu1 }
 0x3c4   :  { %v1719_v48 = vadd.f32 %v4154_v25, %v6035_v43 }
 0x3c5   :  { %v1710_v26 = vpop.f32.mrf.mxu1  ;;  %2774 = vmatpush1.bf16.msra.mxu0 %v4402_v37 }
 0x3c6   :  { %2775 = vmatprep.subr.bf16.mxu0 %v4410_v0  ;;  %v1711_v6 = vadd.f32 %v6035_v43, %v1710_v26  ;;  %v1763_v33 = vmax.f32 %v1719_v48, 0.0  ;;  %v6933_v48 = vld [vmem:[#allocation4_spill] sm:$0xff] }
 0x3c7   :  { %v4155_v4 = vpop.f32.mrf.mxu1 }
 0x3c8   :  { %1932 = vmatmul.mubr.bf16.gmra.mxu0 %v1774_v23  ;;  %v1761_v41 = vmax.f32 %v1711_v6, 0.0  ;;  %v1722_v19 = vadd.f32 %v4155_v4, %v6035_v43  ;;  %v4476_v23 = vld [vmem:[%s6914_s11 + $0x1ec] ss:$24 sps:$4 sm:$0xff]   ;;  %v4482_v4 = vld [vmem:[%s6914_s11 + $0x1bc] ss:$24 sps:$4 sm:$0xff]  }
 0x3c9   :  { %v1713_v1 = vpop.f32.mrf.mxu1  ;;  %1941 = vmatprep.mubr.bf16.mxu0 %v4922_v21  ;;  %2776 = vmatpush1.bf16.msra.mxu0 %v4408_v5  ;;  %v4473_v5 = vld [vmem:[%s6914_s11 + $0x1e4] ss:$24 sps:$4 sm:$0xff]   ;;  %v4477_v6 = vld [vmem:[%s6914_s11 + $0x1b0] ss:$24 sps:$4 sm:$0xff]  }
 0x3ca   :  { %v1714_v49 = vadd.f32 %v6035_v43, %v1713_v1  ;;  %2777 = vmatprep.subr.bf16.mxu0 %v4416_v15  ;;  %v1764_v17 = vmax.f32 %v1722_v19, 0.0  ;;  %2684 = vmatprep.subr.bf16.mxu1 %v4473_v5  ;;  %v4479_v15 = vld [vmem:[%s6914_s11 + $0x1b4] ss:$24 sps:$4 sm:$0xff]   ;;  %v4480_v1 = vld [vmem:[%s6914_s11 + $0x1b8] ss:$24 sps:$4 sm:$0xff]  }
 0x3cc   :  { %v1762_v10 = vmax.f32 %v1714_v49, 0.0  ;;  %v1776_v7 = vpack.c.bf16 %v1764_v17, %v1763_v33  ;;  %v4488_v49 = vld [vmem:[%s6914_s11 + $0x18c] ss:$24 sps:$4 sm:$0xff]  }
 0x3cd   :  { %2778 = vmatpush1.bf16.msra.mxu0 %v4414_v45  ;;  %v4485_v45 = vld [vmem:[%s6914_s11 + $0x184] ss:$24 sps:$4 sm:$0xff]  }
 0x3ce   :  { %v1775_v46 = vpack.c.bf16 %v1762_v10, %v1761_v41  ;;  %2779 = vmatprep.subr.bf16.mxu0 %v4422_v62  ;;  %v4483_v62 = vld [vmem:[%s6914_s11 + $0x180] ss:$24 sps:$4 sm:$0xff]   ;;  %v4491_v10 = vld [vmem:[%s6914_s11 + $0x164] ss:$24 sps:$4 sm:$0xff]  }
 0x3cf   :  { %v4486_v41 = vld [vmem:[%s6914_s11 + $0x188] ss:$24 sps:$4 sm:$0xff]  }
 0x3d0   :  { %1942 = vmatmul.mubr.bf16.gmra.mxu0 %v1775_v46  ;;  %v6932_v46 = vld [vmem:[#allocation3_spill] sm:$0xff] }
 0x3d1   :  { %1951 = vmatprep.mubr.bf16.mxu0 %v4922_v21  ;;  %2780 = vmatpush1.bf16.msra.mxu0 %v4420_v55  ;;  %v1797_v55 = vld [vmem:[%s6916_s10] sm:$0x3] }
 0x3d2   :  { %2781 = vmatprep.subr.bf16.mxu0 %v4428_v63  ;;  %v6178_v63 = vrot.slane %v1797_v55, %v6932_v46 }
 0x3d3   :  { %v4158_v20 = vpop.f32.mrf.mxu1 }
 0x3d4   :  { %v1735_v16 = vadd.f32 %v4158_v20, %v6035_v43 }
 0x3d5   :  { %v1726_v11 = vpop.f32.mrf.mxu1  ;;  %2782 = vmatpush1.bf16.msra.mxu0 %v4426_v9  ;;  %v6181_v9 = vrot.slane %v1797_v55, %v6933_v48 }
 0x3d6   :  { %2783 = vmatprep.subr.bf16.mxu0 %v4434_v44  ;;  %v1727_v24 = vadd.f32 %v6035_v43, %v1726_v11  ;;  %v1767_v59 = vmax.f32 %v1735_v16, 0.0 }
 0x3d7   :  { %v4159_v2 = vpop.f32.mrf.mxu1 }
 0x3d8   :  { %1952 = vmatmul.mubr.bf16.gmra.mxu0 %v1776_v7  ;;  %v1765_v32 = vmax.f32 %v1727_v24, 0.0  ;;  %v1738_v61 = vadd.f32 %v4159_v2, %v6035_v43 }
 0x3d9   :  { %v1729_v30 = vpop.f32.mrf.mxu1  ;;  %1961 = vmatprep.mubr.bf16.mxu0 %v4922_v21  ;;  %2784 = vmatpush1.bf16.msra.mxu0 %v4432_v50 }
 0x3da   :  { %v1730_v31 = vadd.f32 %v6035_v43, %v1729_v30  ;;  %2785 = vmatprep.subr.bf16.mxu0 %v4440_v34  ;;  %v1768_v56 = vmax.f32 %v1738_v61, 0.0  ;;  %v4494_v61 = vld [vmem:[%s6914_s11 + $0x134] ss:$24 sps:$4 sm:$0xff]  }
 0x3dc   :  { %v1766_v36 = vmax.f32 %v1730_v31, 0.0  ;;  %v1778_v58 = vpack.c.bf16 %v1768_v56, %v1767_v59 }
 0x3dd   :  { %2786 = vmatpush1.bf16.msra.mxu0 %v4438_v13 }
 0x3de   :  { %v1777_v29 = vpack.c.bf16 %v1766_v36, %v1765_v32  ;;  %2787 = vmatprep.subr.bf16.mxu0 %v4446_v47  ;;  %v4489_v32 = vld [vmem:[%s6914_s11 + $0x160] ss:$24 sps:$4 sm:$0xff]  }
 0x3e0   :  { %1962 = vmatmul.mubr.bf16.gmra.mxu0 %v1777_v29 }
 0x3e1   :  { %1971 = vmatprep.mubr.bf16.mxu0 %v4922_v21  ;;  %2788 = vmatpush2.bf16.msra.mxu0 %v4444_v35 }
 0x3e2   :  { %2789 = vmatprep.subr.bf16.mxu0 %v4452_v51 }
 0x3e3   :  { %v4162_v38 = vpop.f32.mrf.mxu1 }
 0x3e4   :  { %v1751_v0 = vadd.f32 %v4162_v38, %v6035_v43 }
 0x3e5   :  { %v1742_v12 = vpop.f32.mrf.mxu1  ;;  %2790 = vmatpush2.bf16.msra.mxu0 %v4450_v60 }
 0x3e6   :  { %2791 = vmatprep.subr.bf16.mxu0 %v4458_v8  ;;  %v1743_v57 = vadd.f32 %v6035_v43, %v1742_v12  ;;  %v1771_v42 = vmax.f32 %v1751_v0, 0.0  ;;  %v4492_v8 = vld [vmem:[%s6914_s11 + $0x130] ss:$24 sps:$4 sm:$0xff]   ;;  %v4497_v12 = vld [vmem:[%s6914_s11 + $0x104] ss:$24 sps:$4 sm:$0xff]  }
 0x3e7   :  { %v4163_v3 = vpop.f32.mrf.mxu1  ;;  %v4498_v0 = vld [vmem:[%s6914_s11 + $0xd0] ss:$24 sps:$4 sm:$0xff]  }
 0x3e8   :  { %1972 = vmatmul.mubr.bf16.gmra.mxu0 %v1778_v58  ;;  %v1769_v40 = vmax.f32 %v1743_v57, 0.0  ;;  %v1754_v37 = vadd.f32 %v4163_v3, %v6035_v43 }
 0x3e9   :  { %v1745_v18 = vpop.f32.mrf.mxu1  ;;  %1981 = vmatprep.mubr.bf16.mxu0 %v4922_v21  ;;  %2792 = vmatpush2.bf16.msra.mxu0 %v4456_v52 }
 0x3ea   :  { %v1746_v39 = vadd.f32 %v6035_v43, %v1745_v18  ;;  %2793 = vmatprep.subr.bf16.mxu0 %v4464_v54  ;;  %v1772_v25 = vmax.f32 %v1754_v37, 0.0  ;;  %v4471_v43 = vld [vmem:[%s6914_s11 + $0x1e0] ss:$24 sps:$4 sm:$0xff]  }
 0x3eb   :  { %2685 = vmatpush2.bf16.msra.mxu1 %v4471_v43  ;;  %v4495_v18 = vld [vmem:[%s6914_s11 + $0x100] ss:$24 sps:$4 sm:$0xff]  }
 0x3ec   :  { %v1770_v53 = vmax.f32 %v1746_v39, 0.0  ;;  %v1780_v26 = vpack.c.bf16 %v1772_v25, %v1771_v42  ;;  %2686 = vmatprep.subr.bf16.mxu1 %v4479_v15 }
 0x3ed   :  { %2794 = vmatpush2.bf16.msra.mxu0 %v4462_v22 }
 0x3ee   :  { %v1779_v14 = vpack.c.bf16 %v1770_v53, %v1769_v40  ;;  %2795 = vmatprep.subr.bf16.mxu0 %v4470_v27  ;;  %v4500_v27 = vld [vmem:[%s6914_s11 + $0xd4] ss:$24 sps:$4 sm:$0xff]  }
 0x3ef   :  { %2687 = vmatpush2.bf16.msra.mxu1 %v4477_v6 }
 0x3f0   :  { %1982 = vmatmul.mubr.bf16.gmra.mxu0 %v1779_v14  ;;  %2688 = vmatprep.subr.bf16.mxu1 %v4485_v45  ;;  %v4506_v45 = vld [vmem:[%s6914_s11 + $0x74] ss:$24 sps:$4 sm:$0xff]  }
 0x3f1   :  { %1991 = vmatprep.mubr.bf16.mxu0 %v4922_v21  ;;  %2796 = vmatpush2.bf16.msra.mxu0 %v4468_v28  ;;  %v4474_v21 = vld [vmem:[%s6914_s11 + $0x1e8] ss:$24 sps:$4 sm:$0xff]  }
 0x3f2   :  { %2797 = vmatprep.subr.bf16.mxu0 %v4476_v23 }
 0x3f3   :  { %2689 = vmatpush2.bf16.msra.mxu1 %v4483_v62 }
 0x3f4   :  { %4164 = vmatprep.subr.bf16.mxu1 %v4491_v10 }
 0x3f5   :  { %2798 = vmatpush2.bf16.msra.mxu0 %v4474_v21 }
 0x3f6   :  { %2799 = vmatprep.subr.bf16.mxu0 %v4482_v4  ;;  %v4501_v4 = vld [vmem:[%s6914_s11 + $0xa0] ss:$24 sps:$4 sm:$0xff]  }
 0x3f8   :  { %1992 = vmatmul.mubr.bf16.gmra.mxu0 %v1780_v26  ;;  %v4503_v26 = vld [vmem:[%s6914_s11 + $0xa4] ss:$24 sps:$4 sm:$0xff]  }
 0x3f9   :  { %2800 = vmatpush2.bf16.msra.mxu0 %v4480_v1 }
 0x3fa   :  { %2801 = vmatprep.subr.bf16.mxu0 %v4488_v49 }
 0x3fd   :  { %2802 = vmatpush2.bf16.msra.mxu0 %v4486_v41 }
 0x3fe   :  { %2884 = vmatprep.subr.bf16.mxu0 %v4491_v10 }
 0x480   :  { %v1923_v19 = vpop.f32.mrf.mxu0 }
 0x481   :  { %v1924_v11 = vadd.f32 %v1923_v19, %v6181_v9  ;;  %v4504_v19 = vld [vmem:[%s6914_s11 + $0x70] ss:$24 sps:$4 sm:$0xff]  }
 0x482   :  { %v1925_v17 = vpop.f32.mrf.mxu0 }
 0x483   :  { %v1926_v20 = vadd.f32 %v1925_v17, %v6178_v63  ;;  %v2002_v13 = vmax.f32 %v1924_v11, 0.0 }
 0x484   :  { %v1927_v44 = vpop.f32.mrf.mxu0 }
 0x485   :  { %v1928_v33 = vadd.f32 %v1927_v44, %v6181_v9  ;;  %v2003_v24 = vmax.f32 %v1926_v20, 0.0  ;;  %v4509_v20 = vld [vmem:[%s6914_s11 + $0x44] ss:$24 sps:$4 sm:$0xff]  }
 0x486   :  { %v1929_v50 = vpop.f32.mrf.mxu0 }
 0x487   :  { %v1930_v7 = vadd.f32 %v1929_v50, %v6178_v63  ;;  %v2004_v34 = vmax.f32 %v1928_v33, 0.0 }
 0x488   :  { %v1933_v2 = vpop.f32.mrf.mxu0 }
 0x489   :  { %v2005_v30 = vmax.f32 %v1930_v7, 0.0  ;;  %v6192_v36 = vpack.c.bf16 %v2004_v34, %v2002_v13  ;;  %v1934_v16 = vadd.f32 %v1933_v2, %v6181_v9  ;;  %v4507_v2 = vld [vmem:[%s6914_s11 + $0x40] ss:$24 sps:$4 sm:$0xff]   ;;  %v4512_v13 = vld [vmem:[%s6914_s11 + $0x14] ss:$24 sps:$4 sm:$0xff]  }
 0x48a   :  { %v1935_v31 = vpop.f32.mrf.mxu0 }
 0x48b   :  { %v6187_v47 = vpack.c.bf16 %v2005_v30, %v2003_v24  ;;  %v1936_v29 = vadd.f32 %v1935_v31, %v6178_v63  ;;  %v2006_v54 = vmax.f32 %v1934_v16, 0.0 }
 0x48c   :  { %v1937_v35 = vpop.f32.mrf.mxu0 }
 0x48d   :  { %v1938_v51 = vadd.f32 %v1937_v35, %v6181_v9  ;;  %2690 = vmatprep.mubr.bf16.mxu1 %v6187_v47  ;;  %2803 = vmatprep.mubr.bf16.mxu0 %v6187_v47  ;;  %v2007_v52 = vmax.f32 %v1936_v29, 0.0 }
 0x48e   :  { %v1939_v60 = vpop.f32.mrf.mxu0  ;;  %2691 = vmatmul.mubr.bf16.vlgmr.msra.gmra.mxu1 %v6192_v36  ;;  %2804 = vmatmul.mubr.bf16.vlgmr.msra.gmra.mxu0 %v6192_v36 }
 0x48f   :  { %v1940_v56 = vadd.f32 %v1939_v60, %v6178_v63  ;;  %2885 = vmatpush1.bf16.msra.mxu0 %v4489_v32  ;;  %4180 = vmatpush1.bf16.msra.mxu1 %v4489_v32  ;;  %v2008_v38 = vmax.f32 %v1938_v51, 0.0  ;;  %v4510_v51 = vld [vmem:[%s6914_s11 + $0x10] ss:$24 sps:$4 sm:$0xff]  }
 0x490   :  { %v1943_v59 = vpop.f32.mrf.mxu0  ;;  %2886 = vmatprep.subr.bf16.mxu0 %v4494_v61  ;;  %4165 = vmatprep.subr.bf16.mxu1 %v4494_v61 }
 0x491   :  { %v2009_v58 = vmax.f32 %v1940_v56, 0.0  ;;  %v6216_v22 = vpack.c.bf16 %v2008_v38, %v2006_v54  ;;  %v1944_v28 = vadd.f32 %v1943_v59, %v6181_v9  ;;  %v4515_v56 = vld [vmem:[%s6914_s11 + $0x2e4] ss:$24 sps:$4 sm:$0xff]  }
 0x492   :  { %v1945_v3 = vpop.f32.mrf.mxu0 }
 0x493   :  { %v6211_v57 = vpack.c.bf16 %v2009_v58, %v2007_v52  ;;  %2887 = vmatpush1.bf16.msra.mxu0 %v4492_v8  ;;  %4181 = vmatpush1.bf16.msra.mxu1 %v4492_v8  ;;  %v1946_v40 = vadd.f32 %v1945_v3, %v6178_v63  ;;  %v2010_v43 = vmax.f32 %v1944_v28, 0.0  ;;  %v4513_v58 = vld [vmem:[%s6914_s11 + $0x2e0] ss:$24 sps:$4 sm:$0xff]  }
 0x494   :  { %v1947_v39 = vpop.f32.mrf.mxu0  ;;  %2888 = vmatprep.subr.bf16.mxu0 %v4497_v12  ;;  %4166 = vmatprep.subr.bf16.mxu1 %v4497_v12 }
 0x495   :  { %v1948_v53 = vadd.f32 %v1947_v39, %v6181_v9  ;;  %2700 = vmatprep.mubr.bf16.mxu1 %v6211_v57  ;;  %2813 = vmatprep.mubr.bf16.mxu0 %v6211_v57  ;;  %v2011_v5 = vmax.f32 %v1946_v40, 0.0 }
 0x496   :  { %v1949_v37 = vpop.f32.mrf.mxu0  ;;  %2701 = vmatmul.mubr.bf16.gmra.mxu1 %v6216_v22  ;;  %2814 = vmatmul.mubr.bf16.gmra.mxu0 %v6216_v22 }
 0x497   :  { %v1950_v14 = vadd.f32 %v1949_v37, %v6178_v63  ;;  %2889 = vmatpush1.bf16.msra.mxu0 %v4495_v18  ;;  %4182 = vmatpush1.bf16.msra.mxu1 %v4495_v18  ;;  %v2012_v25 = vmax.f32 %v1948_v53, 0.0  ;;  %v4518_v18 = vld [vmem:[%s6914_s11 + $0x2b4] ss:$24 sps:$4 sm:$0xff]   ;;  %v4516_v37 = vld [vmem:[%s6914_s11 + $0x2b0] ss:$24 sps:$4 sm:$0xff]  }
 0x498   :  { %v1953_v42 = vpop.f32.mrf.mxu0  ;;  %2890 = vmatprep.subr.bf16.mxu0 %v4500_v27  ;;  %4167 = vmatprep.subr.bf16.mxu1 %v4500_v27 }
 0x499   :  { %v2013_v23 = vmax.f32 %v1950_v14, 0.0  ;;  %v6240_v6 = vpack.c.bf16 %v2012_v25, %v2010_v43  ;;  %v1954_v41 = vadd.f32 %v1953_v42, %v6181_v9  ;;  %v4521_v25 = vld [vmem:[%s6914_s11 + $0x284] ss:$24 sps:$4 sm:$0xff]  }
 0x49a   :  { %v1955_v21 = vpop.f32.mrf.mxu0 }
 0x49b   :  { %v6235_v15 = vpack.c.bf16 %v2013_v23, %v2011_v5  ;;  %2891 = vmatpush1.bf16.msra.mxu0 %v4498_v0  ;;  %4183 = vmatpush1.bf16.msra.mxu1 %v4498_v0  ;;  %v1956_v49 = vadd.f32 %v1955_v21, %v6178_v63  ;;  %v2014_v50 = vmax.f32 %v1954_v41, 0.0  ;;  %v4519_v21 = vld [vmem:[%s6914_s11 + $0x280] ss:$24 sps:$4 sm:$0xff]  }
 0x49c   :  { %v1957_v1 = vpop.f32.mrf.mxu0  ;;  %2892 = vmatprep.subr.bf16.mxu0 %v4503_v26  ;;  %4168 = vmatprep.subr.bf16.mxu1 %v4503_v26 }
 0x49d   :  { %v1958_v62 = vadd.f32 %v1957_v1, %v6181_v9  ;;  %2710 = vmatprep.mubr.bf16.mxu1 %v6235_v15  ;;  %2823 = vmatprep.mubr.bf16.mxu0 %v6235_v15  ;;  %v2015_v33 = vmax.f32 %v1956_v49, 0.0 }
 0x49e   :  { %v1959_v10 = vpop.f32.mrf.mxu0  ;;  %2711 = vmatmul.mubr.bf16.gmra.mxu1 %v6240_v6  ;;  %2824 = vmatmul.mubr.bf16.gmra.mxu0 %v6240_v6 }
 0x49f   :  { %v1960_v55 = vadd.f32 %v1959_v10, %v6178_v63  ;;  %2893 = vmatpush1.bf16.msra.mxu0 %v4501_v4  ;;  %4184 = vmatpush1.bf16.msra.mxu1 %v4501_v4  ;;  %v2016_v17 = vmax.f32 %v1958_v62, 0.0 }
 0x4a0   :  { %v1963_v44 = vpop.f32.mrf.mxu0  ;;  %2894 = vmatprep.subr.bf16.mxu0 %v4506_v45  ;;  %4169 = vmatprep.subr.bf16.mxu1 %v4506_v45  ;;  %v4524_v45 = vld [vmem:[%s6914_s11 + $0x254] ss:$24 sps:$4 sm:$0xff]  }
 0x4a1   :  { %v2017_v11 = vmax.f32 %v1960_v55, 0.0  ;;  %v6264_v24 = vpack.c.bf16 %v2016_v17, %v2014_v50  ;;  %v1964_v35 = vadd.f32 %v1963_v44, %v6181_v9 }
 0x4a2   :  { %v1965_v7 = vpop.f32.mrf.mxu0 }
 0x4a3   :  { %v6259_v34 = vpack.c.bf16 %v2017_v11, %v2015_v33  ;;  %2895 = vmatpush1.bf16.msra.mxu0 %v4504_v19  ;;  %4185 = vmatpush1.bf16.msra.mxu1 %v4504_v19  ;;  %v1966_v31 = vadd.f32 %v1965_v7, %v6178_v63  ;;  %v2018_v59 = vmax.f32 %v1964_v35, 0.0  ;;  %v4522_v19 = vld [vmem:[%s6914_s11 + $0x250] ss:$24 sps:$4 sm:$0xff]  }
 0x4a4   :  { %v1967_v30 = vpop.f32.mrf.mxu0  ;;  %2896 = vmatprep.subr.bf16.mxu0 %v4509_v20  ;;  %4170 = vmatprep.subr.bf16.mxu1 %v4509_v20  ;;  %v4527_v20 = vld [vmem:[%s6914_s11 + $0x224] ss:$24 sps:$4 sm:$0xff]  }
 0x4a5   :  { %v1968_v32 = vadd.f32 %v1967_v30, %v6181_v9  ;;  %2720 = vmatprep.mubr.bf16.mxu1 %v6259_v34  ;;  %2833 = vmatprep.mubr.bf16.mxu0 %v6259_v34  ;;  %v2019_v8 = vmax.f32 %v1966_v31, 0.0  ;;  %v4525_v30 = vld [vmem:[%s6914_s11 + $0x220] ss:$24 sps:$4 sm:$0xff]  }
 0x4a6   :  { %v1969_v61 = vpop.f32.mrf.mxu0  ;;  %2721 = vmatmul.mubr.bf16.gmra.mxu1 %v6264_v24  ;;  %2834 = vmatmul.mubr.bf16.gmra.mxu0 %v6264_v24 }
 0x4a7   :  { %v1970_v29 = vadd.f32 %v1969_v61, %v6178_v63  ;;  %2897 = vmatpush1.bf16.msra.mxu0 %v4507_v2  ;;  %4186 = vmatpush1.bf16.msra.mxu1 %v4507_v2  ;;  %v2020_v16 = vmax.f32 %v1968_v32, 0.0  ;;  %v4530_v32 = vld [vmem:[%s6914_s11 + $0x1f4] ss:$24 sps:$4 sm:$0xff]  }
 0x4a8   :  { %v1973_v60 = vpop.f32.mrf.mxu0  ;;  %2898 = vmatprep.subr.bf16.mxu0 %v4512_v13  ;;  %4171 = vmatprep.subr.bf16.mxu1 %v4512_v13 }
 0x4a9   :  { %v2021_v38 = vmax.f32 %v1970_v29, 0.0  ;;  %v6288_v54 = vpack.c.bf16 %v2020_v16, %v2018_v59  ;;  %v1974_v40 = vadd.f32 %v1973_v60, %v6181_v9  ;;  %v4528_v60 = vld [vmem:[%s6914_s11 + $0x1f0] ss:$24 sps:$4 sm:$0xff]  }
 0x4aa   :  { %v1975_v12 = vpop.f32.mrf.mxu0 }
 0x4ab   :  { %v6283_v52 = vpack.c.bf16 %v2021_v38, %v2019_v8  ;;  %2899 = vmatpush1.bf16.msra.mxu0 %v4510_v51  ;;  %4187 = vmatpush1.bf16.msra.mxu1 %v4510_v51  ;;  %v1976_v39 = vadd.f32 %v1975_v12, %v6178_v63  ;;  %v2022_v5 = vmax.f32 %v1974_v40, 0.0  ;;  %v4533_v8 = vld [vmem:[%s6914_s11 + $0x1c4] ss:$24 sps:$4 sm:$0xff]  }
 0x4ac   :  { %v1977_v3 = vpop.f32.mrf.mxu0  ;;  %2900 = vmatprep.subr.bf16.mxu0 %v4515_v56  ;;  %4172 = vmatprep.subr.bf16.mxu1 %v4515_v56 }
 0x4ad   :  { %v1978_v27 = vadd.f32 %v1977_v3, %v6181_v9  ;;  %2730 = vmatprep.mubr.bf16.mxu1 %v6283_v52  ;;  %2843 = vmatprep.mubr.bf16.mxu0 %v6283_v52  ;;  %v2023_v42 = vmax.f32 %v1976_v39, 0.0  ;;  %v4536_v3 = vld [vmem:[%s6914_s11 + $0x194] ss:$24 sps:$4 sm:$0xff]  }
 0x4ae   :  { %v1979_v53 = vpop.f32.mrf.mxu0  ;;  %2731 = vmatmul.mubr.bf16.gmra.mxu1 %v6288_v54  ;;  %2844 = vmatmul.mubr.bf16.gmra.mxu0 %v6288_v54 }
 0x4af   :  { %v1980_v28 = vadd.f32 %v1979_v53, %v6178_v63  ;;  %2901 = vmatpush2.bf16.msra.mxu0 %v4513_v58  ;;  %4188 = vmatpush2.bf16.msra.mxu1 %v4513_v58  ;;  %v2024_v14 = vmax.f32 %v1978_v27, 0.0 }
 0x4b0   :  { %v1983_v0 = vpop.f32.mrf.mxu0  ;;  %2902 = vmatprep.subr.bf16.mxu0 %v4518_v18  ;;  %4173 = vmatprep.subr.bf16.mxu1 %v4518_v18  ;;  %v4534_v18 = vld [vmem:[%s6914_s11 + $0x190] ss:$24 sps:$4 sm:$0xff]  }
 0x4b1   :  { %v2025_v26 = vmax.f32 %v1980_v28, 0.0  ;;  %v6312_v4 = vpack.c.bf16 %v2024_v14, %v2022_v5  ;;  %v1984_v41 = vadd.f32 %v1983_v0, %v6181_v9 }
 0x4b2   :  { %v1985_v23 = vpop.f32.mrf.mxu0 }
 0x4b3   :  { %v6307_v43 = vpack.c.bf16 %v2025_v26, %v2023_v42  ;;  %2903 = vmatpush2.bf16.msra.mxu0 %v4516_v37  ;;  %4189 = vmatpush2.bf16.msra.mxu1 %v4516_v37  ;;  %v1986_v49 = vadd.f32 %v1985_v23, %v6178_v63  ;;  %v2026_v50 = vmax.f32 %v1984_v41, 0.0 }
 0x4b4   :  { %v1987_v1 = vpop.f32.mrf.mxu0  ;;  %2904 = vmatprep.subr.bf16.mxu0 %v4521_v25  ;;  %4174 = vmatprep.subr.bf16.mxu1 %v4521_v25 }
 0x4b5   :  { %v1988_v62 = vadd.f32 %v1987_v1, %v6181_v9  ;;  %2740 = vmatprep.mubr.bf16.mxu1 %v6307_v43  ;;  %2853 = vmatprep.mubr.bf16.mxu0 %v6307_v43  ;;  %v2027_v33 = vmax.f32 %v1986_v49, 0.0 }
 0x4b6   :  { %v1989_v10 = vpop.f32.mrf.mxu0  ;;  %2741 = vmatmul.mubr.bf16.gmra.mxu1 %v6312_v4  ;;  %2854 = vmatmul.mubr.bf16.gmra.mxu0 %v6312_v4 }
 0x4b7   :  { %v1990_v55 = vadd.f32 %v1989_v10, %v6178_v63  ;;  %2905 = vmatpush2.bf16.msra.mxu0 %v4519_v21  ;;  %4190 = vmatpush2.bf16.msra.mxu1 %v4519_v21  ;;  %v2028_v17 = vmax.f32 %v1988_v62, 0.0 }
 0x4b8   :  { %v1993_v44 = vpop.f32.mrf.mxu0  ;;  %2906 = vmatprep.subr.bf16.mxu0 %v4524_v45  ;;  %4175 = vmatprep.subr.bf16.mxu1 %v4524_v45 }
 0x4b9   :  { %v2029_v11 = vmax.f32 %v1990_v55, 0.0  ;;  %v2046_v13 = vpack.c.bf16 %v2028_v17, %v2026_v50  ;;  %v1994_v29 = vadd.f32 %v1993_v44, %v6181_v9 }
 0x4ba   :  { %v1995_v7 = vpop.f32.mrf.mxu0 }
 0x4bb   :  { %v2047_v2 = vpack.c.bf16 %v2029_v11, %v2027_v33  ;;  %2907 = vmatpush2.bf16.msra.mxu0 %v4522_v19  ;;  %4191 = vmatpush2.bf16.msra.mxu1 %v4522_v19  ;;  %v1996_v35 = vadd.f32 %v1995_v7, %v6178_v63  ;;  %v2030_v59 = vmax.f32 %v1994_v29, 0.0 }
 0x4bc   :  { %v1997_v31 = vpop.f32.mrf.mxu0  ;;  %2908 = vmatprep.subr.bf16.mxu0 %v4527_v20  ;;  %4176 = vmatprep.subr.bf16.mxu1 %v4527_v20 }
 0x4bd   :  { %v1998_v61 = vadd.f32 %v1997_v31, %v6181_v9  ;;  %2750 = vmatprep.mubr.bf16.mxu1 %v2047_v2  ;;  %2863 = vmatprep.mubr.bf16.mxu0 %v2047_v2  ;;  %v2031_v38 = vmax.f32 %v1996_v35, 0.0 }
 0x4be   :  { %v1999_v51 = vpop.f32.mrf.mxu0  ;;  %2751 = vmatmul.mubr.bf16.gmra.mxu1 %v2046_v13  ;;  %2864 = vmatmul.mubr.bf16.gmra.mxu0 %v2046_v13 }
 0x4bf   :  { %v2000_v16 = vadd.f32 %v1999_v51, %v6178_v63  ;;  %2909 = vmatpush2.bf16.msra.mxu0 %v4525_v30  ;;  %4192 = vmatpush2.bf16.msra.mxu1 %v4525_v30  ;;  %v2032_v56 = vmax.f32 %v1998_v61, 0.0  ;;  %v4531_v63 = vld [vmem:[%s6914_s11 + $0x1c0] ss:$24 sps:$4 sm:$0xff]  }
 0x4c0   :  { %2910 = vmatprep.subr.bf16.mxu0 %v4530_v32  ;;  %4177 = vmatprep.subr.bf16.mxu1 %v4530_v32 }
 0x4c1   :  { %v2033_v9 = vmax.f32 %v2000_v16, 0.0  ;;  %v2048_v58 = vpack.c.bf16 %v2032_v56, %v2030_v59 }
 0x4c3   :  { %v2049_v12 = vpack.c.bf16 %v2033_v9, %v2031_v38  ;;  %2911 = vmatpush2.bf16.msra.mxu0 %v4528_v60  ;;  %4193 = vmatpush2.bf16.msra.mxu1 %v4528_v60 }
 0x4c4   :  { %2912 = vmatprep.subr.bf16.mxu0 %v4533_v8  ;;  %4178 = vmatprep.subr.bf16.mxu1 %v4533_v8 }
 0x4c5   :  { %2760 = vmatprep.mubr.bf16.mxu1 %v2049_v12  ;;  %2873 = vmatprep.mubr.bf16.mxu0 %v2049_v12 }
 0x4c6   :  { %2761 = vmatmul.mubr.bf16.gmra.mxu1 %v2048_v58  ;;  %2874 = vmatmul.mubr.bf16.gmra.mxu0 %v2048_v58 }
 0x4c7   :  { %2913 = vmatpush2.bf16.msra.mxu0 %v4531_v63  ;;  %4194 = vmatpush2.bf16.msra.mxu1 %v4531_v63 }
 0x4c8   :  { %2916 = vmatprep.mubr.bf16.mxu0 %v6187_v47  ;;  %2936 = vmatprep.mubr.bf16.mxu1 %v6235_v15  ;;  %v6934_v47 = vld [vmem:[#allocation2_spill] sm:$0xff] }
 0x4c9   :  { %2914 = vmatprep.subr.bf16.mxu0 %v4536_v3  ;;  %4179 = vmatprep.subr.bf16.mxu1 %v4536_v3 }
 0x4cb   :  { %2915 = vmatpush2.bf16.msra.mxu0 %v4534_v18  ;;  %4195 = vmatpush2.bf16.msra.mxu1 %v4534_v18 }
 0x4ce   :  { %2917 = vmatmul.mubr.bf16.vlgmr.msra.gmra.mxu0 %v6192_v36  ;;  %2937 = vmatmul.mubr.bf16.vlgmr.msra.gmra.mxu1 %v6240_v6  ;;  %v2158_v36 = vsub.s32 2, %v6934_v47 }
 0x4cf   :  { %2926 = vmatprep.mubr.bf16.mxu0 %v6211_v57  ;;  %2946 = vmatprep.mubr.bf16.mxu1 %v6259_v34  ;;  %v2146_v57 = vld [vmem:[%s6917_s12] sm:$0x3f] }
 0x4d0   :  { %v6374_v15 = vrot.slane %v2146_v57, %v6933_v48  ;;  %v6376_v6 = vrot.slane %v2146_v57, %v2158_v36  ;;  %v6379_v34 = vrot.slane %v2146_v57, %v6932_v46 }
 0x4d6   :  { %2927 = vmatmul.mubr.bf16.gmra.mxu0 %v6216_v22  ;;  %2947 = vmatmul.mubr.bf16.gmra.mxu1 %v6264_v24  ;;  %v2162_v22 = vsub.s32 3, %v6934_v47 }
 0x4d7   :  { %2956 = vmatprep.mubr.bf16.mxu1 %v6283_v52 }
 0x4d8   :  { %v6381_v24 = vrot.slane %v2146_v57, %v2162_v22 }
 0x4de   :  { %2957 = vmatmul.mubr.bf16.gmra.mxu1 %v6288_v54 }
 0x4df   :  { %2966 = vmatprep.mubr.bf16.mxu1 %v6307_v43 }
 0x4e6   :  { %2967 = vmatmul.mubr.bf16.gmra.mxu1 %v6312_v4 }
 0x4e7   :  { %2976 = vmatprep.mubr.bf16.mxu1 %v2047_v2 }
 0x4ee   :  { %2977 = vmatmul.mubr.bf16.gmra.mxu1 %v2046_v13 }
 0x4ef   :  { %2986 = vmatprep.mubr.bf16.mxu1 %v2049_v12 }
 0x4f6   :  { %2987 = vmatmul.mubr.bf16.gmra.mxu1 %v2048_v58 }
 0x54e   :  { %v2692_v52 = vpop.f32.mrf.mxu1  ;;  %v2805_v54 = vpop.f32.mrf.mxu0 }
 0x54f   :  { %v2693_v39 = vadd.f32 %v2692_v52, %v6374_v15  ;;  %v2806_v27 = vadd.f32 %v2805_v54, %v6376_v6 }
 0x550   :  { %v2694_v40 = vpop.f32.mrf.mxu1  ;;  %v2807_v53 = vpop.f32.mrf.mxu0 }
 0x551   :  { %v3920_v28 = vmul.f32 -1.442695, %v2693_v39  ;;  %v3922_v37 = vmul.f32 -1.442695, %v2806_v27  ;;  %v2695_v48 = vadd.f32 %v2694_v40, %v6379_v34  ;;  %v2808_v14 = vadd.f32 %v2807_v53, %v6381_v24 }
 0x552   :  { %v2696_v0 = vpop.f32.mrf.mxu1  ;;  %v2809_v25 = vpop.f32.mrf.mxu0 }
 0x553   :  { %4537 = vpow2.f32 %v3920_v28  ;;  %v3921_v46 = vmul.f32 -1.442695, %v2695_v48  ;;  %v3923_v42 = vmul.f32 -1.442695, %v2808_v14  ;;  %v2697_v26 = vadd.f32 %v2696_v0, %v6374_v15 }
 0x554   :  { %4539 = vpow2.f32 %v3922_v37  ;;  %v2810_v5 = vadd.f32 %v2809_v25, %v6376_v6  ;;  %v2698_v23 = vpop.f32.mrf.mxu1  ;;  %v2811_v43 = vpop.f32.mrf.mxu0 }
 0x555   :  { %4541 = vpow2.f32 %v3921_v46  ;;  %v3926_v21 = vmul.f32 -1.442695, %v2697_v26  ;;  %v2699_v4 = vadd.f32 %v2698_v23, %v6379_v34  ;;  %v2812_v1 = vadd.f32 %v2811_v43, %v6381_v24 }
 0x556   :  { %4543 = vpow2.f32 %v3923_v42  ;;  %v3928_v45 = vmul.f32 -1.442695, %v2810_v5  ;;  %v2702_v49 = vpop.f32.mrf.mxu1  ;;  %v2815_v62 = vpop.f32.mrf.mxu0 }
 0x557   :  { %4545 = vpow2.f32 %v3926_v21  ;;  %v3927_v41 = vmul.f32 -1.442695, %v2699_v4  ;;  %v3929_v10 = vmul.f32 -1.442695, %v2812_v1  ;;  %v2703_v55 = vadd.f32 %v2702_v49, %v6374_v15 }
 0x558   :  { %4547 = vpow2.f32 %v3928_v45  ;;  %v2816_v19 = vadd.f32 %v2815_v62, %v6376_v6  ;;  %v2704_v17 = vpop.f32.mrf.mxu1  ;;  %v2817_v44 = vpop.f32.mrf.mxu0 }
 0x559   :  { %4549 = vpow2.f32 %v3927_v41  ;;  %v3932_v20 = vmul.f32 -1.442695, %v2703_v55  ;;  %v2705_v33 = vadd.f32 %v2704_v17, %v6379_v34  ;;  %v2818_v11 = vadd.f32 %v2817_v44, %v6381_v24 }
 0x55a   :  { %4551 = vpow2.f32 %v3929_v10  ;;  %v3934_v50 = vmul.f32 -1.442695, %v2816_v19  ;;  %v2706_v7 = vpop.f32.mrf.mxu1  ;;  %v2819_v2 = vpop.f32.mrf.mxu0 }
 0x55b   :  { %4553 = vpow2.f32 %v3932_v20  ;;  %v3933_v30 = vmul.f32 -1.442695, %v2705_v33  ;;  %v3935_v13 = vmul.f32 -1.442695, %v2818_v11  ;;  %v2707_v31 = vadd.f32 %v2706_v7, %v6374_v15 }
 0x55c   :  { %4555 = vpow2.f32 %v3934_v50  ;;  %v2820_v32 = vadd.f32 %v2819_v2, %v6376_v6  ;;  %v2708_v35 = vpop.f32.mrf.mxu1  ;;  %v2821_v61 = vpop.f32.mrf.mxu0 }
 0x55d   :  { %4557 = vpow2.f32 %v3933_v30  ;;  %v3938_v29 = vmul.f32 -1.442695, %v2707_v31  ;;  %v2709_v51 = vadd.f32 %v2708_v35, %v6379_v34  ;;  %v2822_v16 = vadd.f32 %v2821_v61, %v6381_v24 }
 0x55e   :  { %4559 = vpow2.f32 %v3935_v13  ;;  %v3940_v60 = vmul.f32 -1.442695, %v2820_v32  ;;  %v2712_v56 = vpop.f32.mrf.mxu1  ;;  %v2825_v8 = vpop.f32.mrf.mxu0 }
 0x55f   :  { %4561 = vpow2.f32 %v3938_v29  ;;  %v3939_v38 = vmul.f32 -1.442695, %v2709_v51  ;;  %v3941_v9 = vmul.f32 -1.442695, %v2822_v16  ;;  %v2713_v41 = vadd.f32 %v2712_v56, %v6374_v15 }
 0x560   :  { %v4538_v59 = vpop.eup %4537  ;;  %4563 = vpow2.f32 %v3940_v60  ;;  %v2714_v12 = vpop.f32.mrf.mxu1  ;;  %v2826_v19 = vadd.f32 %v2825_v8, %v6376_v6 }
 0x561   :  { %v2827_v63 = vpop.f32.mrf.mxu0  ;;  %v4540_v58 = vpop.eup %4539  ;;  %v3285_v3 = vadd.f32 1.0, %v4538_v59  ;;  %4565 = vpow2.f32 %v3939_v38  ;;  %v2715_v33 = vadd.f32 %v2714_v12, %v6379_v34  ;;  %v3944_v32 = vmul.f32 -1.442695, %v2713_v41 }
 0x562   :  { %v4542_v18 = vpop.eup %4541  ;;  %v3287_v36 = vadd.f32 1.0, %v4540_v58  ;;  %4567 = vpow2.f32 %v3941_v9  ;;  %v2716_v57 = vpop.f32.mrf.mxu1  ;;  %v2828_v7 = vadd.f32 %v2827_v63, %v6381_v24  ;;  %v3946_v51 = vmul.f32 -1.442695, %v2826_v19 }
 0x563   :  { %v2829_v22 = vpop.f32.mrf.mxu0  ;;  %v4544_v52 = vpop.eup %4543  ;;  %4569 = vrcp.f32 %v3285_v3  ;;  %v3286_v54 = vadd.f32 1.0, %v4542_v18  ;;  %v2717_v35 = vadd.f32 %v2716_v57, %v6374_v15  ;;  %v3945_v8 = vmul.f32 -1.442695, %v2715_v33 }
 0x564   :  { %v4546_v39 = vpop.eup %4545  ;;  %4571 = vrcp.f32 %v3287_v36  ;;  %v3288_v27 = vadd.f32 1.0, %v4544_v52  ;;  %v2718_v40 = vpop.f32.mrf.mxu1  ;;  %v2830_v16 = vadd.f32 %v2829_v22, %v6376_v6  ;;  %v3947_v59 = vmul.f32 -1.442695, %v2828_v7 }
 0x565   :  { %v4548_v53 = vpop.eup %4547  ;;  %4573 = vrcp.f32 %v3286_v54  ;;  %v3291_v28 = vadd.f32 1.0, %v4546_v39  ;;  %v2831_v14 = vpop.f32.mrf.mxu0  ;;  %v2719_v38 = vadd.f32 %v2718_v40, %v6379_v34  ;;  %v3950_v18 = vmul.f32 -1.442695, %v2717_v35 }
 0x566   :  { %v4550_v37 = vpop.eup %4549  ;;  %4575 = vrcp.f32 %v3288_v27  ;;  %v3293_v48 = vadd.f32 1.0, %v4548_v53  ;;  %v6399_v0 = vpop.f32.mrf.mxu1  ;;  %v2832_v12 = vadd.f32 %v2831_v14, %v6381_v24  ;;  %v3952_v22 = vmul.f32 -1.442695, %v2830_v16 }
 0x567   :  { %v4552_v25 = vpop.eup %4551  ;;  %4577 = vrcp.f32 %v3291_v28  ;;  %v3292_v46 = vadd.f32 1.0, %v4550_v37  ;;  %v2835_v1 = vpop.f32.mrf.mxu0  ;;  %v2723_v36 = vadd.f32 %v6399_v0, %v6374_v15  ;;  %v3951_v27 = vmul.f32 -1.442695, %v2719_v38 }
 0x568   :  { %v4554_v42 = vpop.eup %4553  ;;  %4579 = vrcp.f32 %v3293_v48  ;;  %v3294_v26 = vadd.f32 1.0, %v4552_v25  ;;  %v6401_v5 = vpop.f32.mrf.mxu1  ;;  %v2836_v52 = vadd.f32 %v2835_v1, %v6376_v6  ;;  %v3953_v28 = vmul.f32 -1.442695, %v2832_v12 }
 0x569   :  { %v4556_v23 = vpop.eup %4555  ;;  %4581 = vrcp.f32 %v3292_v46  ;;  %v3297_v43 = vadd.f32 1.0, %v4554_v42  ;;  %v2837_v2 = vpop.f32.mrf.mxu0  ;;  %v2725_v40 = vadd.f32 %v6401_v5, %v6379_v34  ;;  %v3956_v25 = vmul.f32 -1.442695, %v2723_v36 }
 0x56a   :  { %v4558_v21 = vpop.eup %4557  ;;  %4583 = vrcp.f32 %v3294_v26  ;;  %v3299_v4 = vadd.f32 1.0, %v4556_v23  ;;  %v6403_v45 = vpop.f32.mrf.mxu1  ;;  %v2838_v37 = vadd.f32 %v2837_v2, %v6381_v24  ;;  %v3958_v26 = vmul.f32 -1.442695, %v2836_v52 }
 0x56b   :  { %v4560_v49 = vpop.eup %4559  ;;  %4585 = vrcp.f32 %v3297_v43  ;;  %v3298_v62 = vadd.f32 1.0, %v4558_v21  ;;  %v2839_v63 = vpop.f32.mrf.mxu0  ;;  %v2727_v46 = vadd.f32 %v6403_v45, %v6374_v15  ;;  %v3957_v21 = vmul.f32 -1.442695, %v2725_v40 }
 0x56c   :  { %v4562_v10 = vpop.eup %4561  ;;  %4587 = vrcp.f32 %v3299_v4  ;;  %v3300_v55 = vadd.f32 1.0, %v4560_v49  ;;  %v6407_v17 = vpop.f32.mrf.mxu1  ;;  %v2840_v5 = vadd.f32 %v2839_v63, %v6376_v6  ;;  %v3959_v45 = vmul.f32 -1.442695, %v2838_v37 }
 0x56d   :  { %v4564_v44 = vpop.eup %4563  ;;  %4589 = vrcp.f32 %v3298_v62  ;;  %v3303_v20 = vadd.f32 1.0, %v4562_v10  ;;  %v2841_v48 = vpop.f32.mrf.mxu0  ;;  %v2729_v4 = vadd.f32 %v6407_v17, %v6379_v34 }
 0x56e   :  { %v4566_v11 = vpop.eup %4565  ;;  %4591 = vrcp.f32 %v3300_v55  ;;  %v3305_v50 = vadd.f32 1.0, %v4564_v44  ;;  %v6411_v30 = vpop.f32.mrf.mxu1  ;;  %v2842_v49 = vadd.f32 %v2841_v48, %v6381_v24  ;;  %v3962_v55 = vmul.f32 -1.442695, %v2727_v46 }
 0x56f   :  { %v4568_v13 = vpop.eup %4567  ;;  %4593 = vrcp.f32 %v3303_v20  ;;  %v3304_v31 = vadd.f32 1.0, %v4566_v11  ;;  %v6469_v62 = vpop.f32.mrf.mxu0  ;;  %v3964_v17 = vmul.f32 -1.442695, %v2840_v5  ;;  %v3963_v33 = vmul.f32 -1.442695, %v2729_v4 }
 0x570   :  { %v4570_v61 = vpop.eup %4569  ;;  %4595 = vrcp.f32 %v3305_v50  ;;  %v3306_v29 = vadd.f32 1.0, %v4568_v13  ;;  %v6415_v60 = vpop.f32.mrf.mxu1  ;;  %v3965_v50 = vmul.f32 -1.442695, %v2842_v49  ;;  %v2733_v46 = vadd.f32 %v6411_v30, %v6374_v15 }
 0x571   :  { %v4572_v56 = vpop.eup %4571  ;;  %3573 = vst [vmem:[%s6918_s13] sm:$0xff] %v4570_v61  ;;  %4597 = vrcp.f32 %v3304_v31  ;;  %v2847_v7 = vpop.f32.mrf.mxu0 }
 0x572   :  { %v4574_v9 = vpop.eup %4573  ;;  %3575 = vst [vmem:[%s6918_s13 + $0x10] sm:$0xff] %v4572_v56  ;;  %4599 = vrcp.f32 %v3306_v29  ;;  %v6425_v58 = vpop.f32.mrf.mxu1 }
 0x573   :  { %v4576_v3 = vpop.eup %4575  ;;  %3574 = vst [vmem:[%s6918_s13 + $0x8] sm:$0xff] %v4574_v9  ;;  %4601 = vpow2.f32 %v3944_v32  ;;  %v2849_v16 = vpop.f32.mrf.mxu0 }
 0x574   :  { %v4578_v57 = vpop.eup %4577  ;;  %3576 = vst [vmem:[%s6918_s13 + $0x18] sm:$0xff] %v4576_v3  ;;  %4603 = vpow2.f32 %v3946_v51  ;;  %v6436_v54 = vpop.f32.mrf.mxu1 }
 0x575   :  { %v4580_v39 = vpop.eup %4579  ;;  %3579 = vst [vmem:[%s6918_s13 + $0x30] sm:$0xff] %v4578_v57  ;;  %4605 = vpow2.f32 %v3945_v8  ;;  %v2851_v36 = vpop.f32.mrf.mxu0 }
 0x576   :  { %v4582_v53 = vpop.eup %4581  ;;  %3581 = vst [vmem:[%s6918_s13 + $0x40] sm:$0xff] %v4580_v39  ;;  %4607 = vpow2.f32 %v3947_v59  ;;  %v6447_v14 = vpop.f32.mrf.mxu1 }
 0x577   :  { %v4584_v0 = vpop.eup %4583  ;;  %3580 = vst [vmem:[%s6918_s13 + $0x38] sm:$0xff] %v4582_v53  ;;  %4609 = vpow2.f32 %v3950_v18  ;;  %v2855_v48 = vpop.f32.mrf.mxu0 }
 0x578   :  { %v4586_v42 = vpop.eup %4585  ;;  %3582 = vst [vmem:[%s6918_s13 + $0x48] sm:$0xff] %v4584_v0  ;;  %4611 = vpow2.f32 %v3952_v22  ;;  %v6458_v23 = vpop.f32.mrf.mxu1 }
 0x579   :  { %v4588_v43 = vpop.eup %4587  ;;  %3585 = vst [vmem:[%s6918_s13 + $0x60] sm:$0xff] %v4586_v42  ;;  %4613 = vpow2.f32 %v3951_v27  ;;  %v2857_v30 = vpop.f32.mrf.mxu0 }
 0x57a   :  { %v4590_v1 = vpop.eup %4589  ;;  %3587 = vst [vmem:[%s6918_s13 + $0x70] sm:$0xff] %v4588_v43  ;;  %4615 = vpow2.f32 %v3953_v28  ;;  %v6471_v41 = vpop.f32.mrf.mxu1  ;;  %v2846_v43 = vadd.f32 %v6469_v62, %v6376_v6 }
 0x57b   :  { %v4592_v10 = vpop.eup %4591  ;;  %3586 = vst [vmem:[%s6918_s13 + $0x68] sm:$0xff] %v4590_v1  ;;  %4617 = vpow2.f32 %v3956_v25  ;;  %v2735_v1 = vadd.f32 %v6415_v60, %v6379_v34  ;;  %v2850_v60 = vadd.f32 %v2849_v16, %v6376_v6 }
 0x57c   :  { %v4594_v19 = vpop.eup %4593  ;;  %3588 = vst [vmem:[%s6918_s13 + $0x78] sm:$0xff] %v4592_v10  ;;  %4619 = vpow2.f32 %v3958_v26  ;;  %v6479_v44 = vpop.f32.mrf.mxu1  ;;  %v2848_v10 = vadd.f32 %v2847_v7, %v6381_v24 }
 0x57d   :  { %v4596_v20 = vpop.eup %4595  ;;  %3591 = vst [vmem:[%s6918_s13 + $0x90] sm:$0xff] %v4594_v19  ;;  %4621 = vpow2.f32 %v3957_v21  ;;  %v3969_v7 = vmul.f32 -1.442695, %v2735_v1 }
 0x57e   :  { %v4598_v11 = vpop.eup %4597  ;;  %3593 = vst [vmem:[%s6918_s13 + $0xa0] sm:$0xff] %v4596_v20  ;;  %4623 = vpow2.f32 %v3959_v45  ;;  %v6487_v2 = vpop.f32.mrf.mxu1  ;;  %v2737_v20 = vadd.f32 %v6425_v58, %v6374_v15  ;;  %v3971_v58 = vmul.f32 -1.442695, %v2848_v10 }
 0x57f   :  { %v4600_v13 = vpop.eup %4599  ;;  %3592 = vst [vmem:[%s6918_s13 + $0x98] sm:$0xff] %v4598_v11  ;;  %4625 = vpow2.f32 %v3962_v55 }
 0x580   :  { %v4602_v31 = vpop.eup %4601  ;;  %3594 = vst [vmem:[%s6918_s13 + $0xa8] sm:$0xff] %v4600_v13  ;;  %4627 = vpow2.f32 %v3964_v17  ;;  %v6495_v32 = vpop.f32.mrf.mxu1  ;;  %v3968_v17 = vmul.f32 -1.442695, %v2733_v46  ;;  %v3974_v16 = vmul.f32 -1.442695, %v2737_v20 }
 0x581   :  { %v4604_v35 = vpop.eup %4603  ;;  %v3309_v61 = vadd.f32 1.0, %v4602_v31  ;;  %4629 = vpow2.f32 %v3963_v33  ;;  %v2739_v31 = vadd.f32 %v6436_v54, %v6379_v34  ;;  %v2743_v54 = vadd.f32 %v6447_v14, %v6374_v15 }
 0x582   :  { %v4606_v29 = vpop.eup %4605  ;;  %v3311_v51 = vadd.f32 1.0, %v4604_v35  ;;  %4631 = vpow2.f32 %v3965_v50  ;;  %v6497_v38 = vpop.f32.mrf.mxu1  ;;  %v3970_v50 = vmul.f32 -1.442695, %v2846_v43  ;;  %v2745_v14 = vadd.f32 %v6458_v23, %v6379_v34 }
 0x583   :  { %v4608_v56 = vpop.eup %4607  ;;  %4633 = vrcp.f32 %v3309_v61  ;;  %v3310_v8 = vadd.f32 1.0, %v4606_v29  ;;  %v2852_v61 = vadd.f32 %v2851_v36, %v6381_v24  ;;  %v2859_v29 = vpop.f32.mrf.mxu0  ;;  %v2858_v36 = vadd.f32 %v2857_v30, %v6381_v24 }
 0x584   :  { %v4610_v9 = vpop.eup %4609  ;;  %4635 = vrcp.f32 %v3311_v51  ;;  %v3312_v59 = vadd.f32 1.0, %v4608_v56  ;;  %v6499_v52 = vpop.f32.mrf.mxu1  ;;  %v2747_v23 = vadd.f32 %v6471_v41, %v6374_v15  ;;  %v2749_v41 = vadd.f32 %v6479_v44, %v6379_v34 }
 0x585   :  { %v4612_v12 = vpop.eup %4611  ;;  %4637 = vrcp.f32 %v3310_v8  ;;  %v3315_v63 = vadd.f32 1.0, %v4610_v9  ;;  %v3976_v9 = vmul.f32 -1.442695, %v2850_v60 }
 0x586   :  { %v4614_v3 = vpop.eup %4613  ;;  %4639 = vrcp.f32 %v3312_v59  ;;  %v3317_v18 = vadd.f32 1.0, %v4612_v12  ;;  %v6503_v42 = vpop.f32.mrf.mxu1  ;;  %v2856_v59 = vadd.f32 %v2855_v48, %v6376_v6  ;;  %v3981_v48 = vmul.f32 -1.442695, %v2745_v14 }
 0x587   :  { %v4616_v57 = vpop.eup %4615  ;;  %4641 = vrcp.f32 %v3315_v63  ;;  %v3316_v22 = vadd.f32 1.0, %v4614_v3  ;;  %v3975_v63 = vmul.f32 -1.442695, %v2739_v31  ;;  %v3986_v43 = vmul.f32 -1.442695, %v2747_v23 }
 0x588   :  { %v4618_v39 = vpop.eup %4617  ;;  %4643 = vrcp.f32 %v3317_v18  ;;  %v3318_v27 = vadd.f32 1.0, %v4616_v57  ;;  %v6512_v62 = vpop.f32.mrf.mxu1  ;;  %v3977_v18 = vmul.f32 -1.442695, %v2852_v61  ;;  %v2753_v23 = vadd.f32 %v6487_v2, %v6374_v15 }
 0x589   :  { %v4620_v40 = vpop.eup %4619  ;;  %4645 = vrcp.f32 %v3316_v22  ;;  %v3321_v53 = vadd.f32 1.0, %v4618_v39  ;;  %v2861_v57 = vpop.f32.mrf.mxu0  ;;  %v3980_v39 = vmul.f32 -1.442695, %v2743_v54 }
 0x58a   :  { %v4622_v28 = vpop.eup %4621  ;;  %4647 = vrcp.f32 %v3318_v27  ;;  %v3323_v37 = vadd.f32 1.0, %v4620_v40  ;;  %v6529_v56 = vpop.f32.mrf.mxu1  ;;  %v2862_v46 = vadd.f32 %v2861_v57, %v6381_v24 }
 0x58b   :  { %v4624_v0 = vpop.eup %4623  ;;  %4649 = vrcp.f32 %v3321_v53  ;;  %v3322_v25 = vadd.f32 1.0, %v4622_v28  ;;  %v3982_v53 = vmul.f32 -1.442695, %v2856_v59  ;;  %v2860_v28 = vadd.f32 %v2859_v29, %v6376_v6 }
 0x58c   :  { %v4626_v26 = vpop.eup %4625  ;;  %4651 = vrcp.f32 %v3323_v37  ;;  %v3324_v5 = vadd.f32 1.0, %v4624_v0  ;;  %v6549_v27 = vpop.f32.mrf.mxu1  ;;  %v3989_v10 = vmul.f32 -1.442695, %v2862_v46 }
 0x58d   :  { %v4628_v21 = vpop.eup %4627  ;;  %4653 = vrcp.f32 %v3322_v25  ;;  %v3327_v4 = vadd.f32 1.0, %v4626_v26  ;;  %v3983_v25 = vmul.f32 -1.442695, %v2858_v36  ;;  %v6564_v26 = vpop.f32.mrf.mxu0 }
 0x58e   :  { %v4630_v45 = vpop.eup %4629  ;;  %4655 = vrcp.f32 %v3324_v5  ;;  %v3329_v49 = vadd.f32 1.0, %v4628_v21  ;;  %v6569_v21 = vpop.f32.mrf.mxu1 }
 0x58f   :  { %v4632_v55 = vpop.eup %4631  ;;  %4657 = vrcp.f32 %v3327_v4  ;;  %v3328_v19 = vadd.f32 1.0, %v4630_v45  ;;  %v3988_v4 = vmul.f32 -1.442695, %v2860_v28  ;;  %v3987_v45 = vmul.f32 -1.442695, %v2749_v41  ;;  %v2867_v30 = vpop.f32.mrf.mxu0 }
 0x590   :  { %v4634_v33 = vpop.eup %4633  ;;  %4659 = vrcp.f32 %v3329_v49  ;;  %v3330_v11 = vadd.f32 1.0, %v4632_v55 }
 0x591   :  { %v4636_v13 = vpop.eup %4635  ;;  %3597 = vst [vmem:[%s6918_s13 + $0xc0] sm:$0xff] %v4634_v33  ;;  %4661 = vrcp.f32 %v3328_v19  ;;  %v6583_v19 = vpop.f32.mrf.mxu1 }
 0x592   :  { %v4638_v35 = vpop.eup %4637  ;;  %3599 = vst [vmem:[%s6918_s13 + $0xd0] sm:$0xff] %v4636_v13  ;;  %4663 = vrcp.f32 %v3330_v11  ;;  %v2869_v60 = vpop.f32.mrf.mxu0 }
 0x593   :  { %v4640_v51 = vpop.eup %4639  ;;  %3598 = vst [vmem:[%s6918_s13 + $0xc8] sm:$0xff] %v4638_v35  ;;  %4665 = vpow2.f32 %v3968_v17  ;;  %v6588_v31 = vpop.f32.mrf.mxu1 }
 0x594   :  { %v4642_v8 = vpop.eup %4641  ;;  %3600 = vst [vmem:[%s6918_s13 + $0xd8] sm:$0xff] %v4640_v51  ;;  %4667 = vpow2.f32 %v3970_v50  ;;  %v2871_v54 = vpop.f32.mrf.mxu0 }
 0x595   :  { %v4644_v12 = vpop.eup %4643  ;;  %3603 = vst [vmem:[%s6918_s13 + $0xf0] sm:$0xff] %v4642_v8  ;;  %4669 = vpow2.f32 %v3969_v7  ;;  %v6590_v59 = vpop.f32.mrf.mxu1 }
 0x596   :  { %v4646_v3 = vpop.eup %4645  ;;  %3605 = vst [vmem:[%s6918_s13 + $0x100] sm:$0xff] %v4644_v12  ;;  %4671 = vpow2.f32 %v3971_v58  ;;  %v2875_v57 = vpop.f32.mrf.mxu0 }
 0x597   :  { %v4648_v22 = vpop.eup %4647  ;;  %3604 = vst [vmem:[%s6918_s13 + $0xf8] sm:$0xff] %v4646_v3  ;;  %4673 = vpow2.f32 %v3974_v16 }
 0x598   :  { %v4650_v40 = vpop.eup %4649  ;;  %3606 = vst [vmem:[%s6918_s13 + $0x108] sm:$0xff] %v4648_v22  ;;  %4675 = vpow2.f32 %v3976_v9  ;;  %v2877_v2 = vpop.f32.mrf.mxu0 }
 0x599   :  { %v4652_v37 = vpop.eup %4651  ;;  %3609 = vst [vmem:[%s6918_s13 + $0x120] sm:$0xff] %v4650_v40  ;;  %4677 = vpow2.f32 %v3975_v63  ;;  %v6594_v40 = vpop.f32.mrf.mxu1 }
 0x59a   :  { %v4654_v0 = vpop.eup %4653  ;;  %3611 = vst [vmem:[%s6918_s13 + $0x130] sm:$0xff] %v4652_v37  ;;  %4679 = vpow2.f32 %v3977_v18  ;;  %v2866_v37 = vadd.f32 %v6564_v26, %v6376_v6 }
 0x59b   :  { %v4656_v5 = vpop.eup %4655  ;;  %3610 = vst [vmem:[%s6918_s13 + $0x128] sm:$0xff] %v4654_v0  ;;  %4681 = vpow2.f32 %v3980_v39  ;;  %v2755_v0 = vadd.f32 %v6495_v32, %v6379_v34  ;;  %v6603_v26 = vpop.f32.mrf.mxu1  ;;  %v2870_v32 = vadd.f32 %v2869_v60, %v6376_v6 }
 0x59c   :  { %v4658_v44 = vpop.eup %4657  ;;  %3612 = vst [vmem:[%s6918_s13 + $0x138] sm:$0xff] %v4656_v5  ;;  %4683 = vpow2.f32 %v3982_v53  ;;  %v2868_v5 = vadd.f32 %v2867_v30, %v6381_v24 }
 0x59d   :  { %v4660_v1 = vpop.eup %4659  ;;  %3615 = vst [vmem:[%s6918_s13 + $0x150] sm:$0xff] %v4658_v44  ;;  %4685 = vpow2.f32 %v3981_v48  ;;  %v3993_v30 = vmul.f32 -1.442695, %v2755_v0 }
 0x59e   :  { %v4662_v49 = vpop.eup %4661  ;;  %3617 = vst [vmem:[%s6918_s13 + $0x160] sm:$0xff] %v4660_v1  ;;  %4687 = vpow2.f32 %v3983_v25  ;;  %v2757_v1 = vadd.f32 %v6497_v38, %v6374_v15  ;;  %v3995_v38 = vmul.f32 -1.442695, %v2868_v5 }
 0x59f   :  { %v4664_v55 = vpop.eup %4663  ;;  %3616 = vst [vmem:[%s6918_s13 + $0x158] sm:$0xff] %v4662_v49  ;;  %4689 = vpow2.f32 %v3986_v43 }
 0x5a0   :  { %v4666_v17 = vpop.eup %4665  ;;  %3618 = vst [vmem:[%s6918_s13 + $0x168] sm:$0xff] %v4664_v55  ;;  %4691 = vpow2.f32 %v3988_v4  ;;  %v3992_v4 = vmul.f32 -1.442695, %v2753_v23  ;;  %v3998_v60 = vmul.f32 -1.442695, %v2757_v1 }
 0x5a1   :  { %v4668_v20 = vpop.eup %4667  ;;  %v3333_v33 = vadd.f32 1.0, %v4666_v17  ;;  %4693 = vpow2.f32 %v3987_v45  ;;  %v2759_v17 = vadd.f32 %v6499_v52, %v6379_v34  ;;  %v2763_v52 = vadd.f32 %v6503_v42, %v6374_v15 }
 0x5a2   :  { %v4670_v11 = vpop.eup %4669  ;;  %v3335_v50 = vadd.f32 1.0, %v4668_v20  ;;  %4695 = vpow2.f32 %v3989_v10  ;;  %v3994_v10 = vmul.f32 -1.442695, %v2866_v37  ;;  %v2765_v42 = vadd.f32 %v6512_v62, %v6379_v34 }
 0x5a3   :  { %v4672_v13 = vpop.eup %4671  ;;  %4697 = vrcp.f32 %v3333_v33  ;;  %v3334_v7 = vadd.f32 1.0, %v4670_v11  ;;  %v2872_v33 = vadd.f32 %v2871_v54, %v6381_v24  ;;  %v2879_v11 = vpop.f32.mrf.mxu0  ;;  %v2878_v54 = vadd.f32 %v2877_v2, %v6381_v24 }
 0x5a4   :  { %v4674_v35 = vpop.eup %4673  ;;  %4699 = vrcp.f32 %v3335_v50  ;;  %v3336_v58 = vadd.f32 1.0, %v4672_v13  ;;  %v6620_v13 = vpop.f32.mrf.mxu1  ;;  %v2767_v62 = vadd.f32 %v6529_v56, %v6374_v15  ;;  %v2769_v15 = vadd.f32 %v6549_v27, %v6379_v34 }
 0x5a5   :  { %v4676_v61 = vpop.eup %4675  ;;  %4701 = vrcp.f32 %v3334_v7  ;;  %v3339_v29 = vadd.f32 1.0, %v4674_v35  ;;  %v4000_v35 = vmul.f32 -1.442695, %v2870_v32 }
 0x5a6   :  { %v4678_v51 = vpop.eup %4677  ;;  %4703 = vrcp.f32 %v3336_v58  ;;  %v3341_v16 = vadd.f32 1.0, %v4676_v61  ;;  %v2876_v58 = vadd.f32 %v2875_v57, %v6376_v6  ;;  %v4005_v57 = vmul.f32 -1.442695, %v2765_v42 }
 0x5a7   :  { %v4680_v8 = vpop.eup %4679  ;;  %4705 = vrcp.f32 %v3339_v29  ;;  %v3340_v9 = vadd.f32 1.0, %v4678_v51  ;;  %v3999_v29 = vmul.f32 -1.442695, %v2759_v17 }
 0x5a8   :  { %v4682_v12 = vpop.eup %4681  ;;  %4707 = vrcp.f32 %v3341_v16  ;;  %v3342_v63 = vadd.f32 1.0, %v4680_v8  ;;  %v4001_v16 = vmul.f32 -1.442695, %v2872_v33  ;;  %v2881_v8 = vpop.f32.mrf.mxu0 }
 0x5a9   :  { %v4684_v14 = vpop.eup %4683  ;;  %4709 = vrcp.f32 %v3340_v9  ;;  %v3345_v3 = vadd.f32 1.0, %v4682_v12  ;;  %v4004_v12 = vmul.f32 -1.442695, %v2763_v52 }
 0x5aa   :  { %v4686_v18 = vpop.eup %4685  ;;  %4711 = vrcp.f32 %v3342_v63  ;;  %v3347_v36 = vadd.f32 1.0, %v4684_v14  ;;  %v6640_v63 = vpop.f32.mrf.mxu1 }
 0x5ab   :  { %v4688_v22 = vpop.eup %4687  ;;  %4713 = vrcp.f32 %v3345_v3  ;;  %v3346_v39 = vadd.f32 1.0, %v4686_v18  ;;  %v4006_v3 = vmul.f32 -1.442695, %v2876_v58  ;;  %v2880_v18 = vadd.f32 %v2879_v11, %v6376_v6  ;;  %v6655_v6 = vpop.f32.mrf.mxu0 }
 0x5ac   :  { %v4690_v53 = vpop.eup %4689  ;;  %4715 = vrcp.f32 %v3347_v36  ;;  %v3348_v28 = vadd.f32 1.0, %v4688_v22  ;;  %v4007_v22 = vmul.f32 -1.442695, %v2878_v54 }
 0x5ad   :  { %v4692_v48 = vpop.eup %4691  ;;  %4717 = vrcp.f32 %v3346_v39  ;;  %v3351_v41 = vadd.f32 1.0, %v4690_v53  ;;  %v2882_v39 = vadd.f32 %v2881_v8, %v6381_v24  ;;  %v4010_v53 = vmul.f32 -1.442695, %v2767_v62  ;;  %v2920_v0 = vpop.f32.mrf.mxu0 }
 0x5ae   :  { %v4694_v25 = vpop.eup %4693  ;;  %4719 = vrcp.f32 %v3348_v28  ;;  %v3353_v46 = vadd.f32 1.0, %v4692_v48  ;;  %v6660_v28 = vpop.f32.mrf.mxu1  ;;  %v4012_v27 = vmul.f32 -1.442695, %v2880_v18  ;;  %v4011_v24 = vmul.f32 -1.442695, %v2769_v15 }
 0x5af   :  { %v4696_v43 = vpop.eup %4695  ;;  %4721 = vrcp.f32 %v3351_v41  ;;  %v3352_v44 = vadd.f32 1.0, %v4694_v25  ;;  %v4013_v41 = vmul.f32 -1.442695, %v2882_v39  ;;  %v2922_v1 = vpop.f32.mrf.mxu0 }
 0x5b0   :  { %v4698_v45 = vpop.eup %4697  ;;  %4723 = vrcp.f32 %v3353_v46  ;;  %v3354_v49 = vadd.f32 1.0, %v4696_v43  ;;  %v6674_v46 = vpop.f32.mrf.mxu1 }
 0x5b1   :  { %v4700_v55 = vpop.eup %4699  ;;  %3621 = vst [vmem:[%s6918_s13 + $0x180] sm:$0xff] %v4698_v45  ;;  %4725 = vrcp.f32 %v3352_v44 }
 0x5b2   :  { %v4702_v20 = vpop.eup %4701  ;;  %3623 = vst [vmem:[%s6918_s13 + $0x190] sm:$0xff] %v4700_v55  ;;  %4727 = vrcp.f32 %v3354_v49  ;;  %v6680_v32 = vpop.f32.mrf.mxu1 }
 0x5b3   :  { %v4704_v50 = vpop.eup %4703  ;;  %3622 = vst [vmem:[%s6918_s13 + $0x188] sm:$0xff] %v4702_v20  ;;  %4729 = vpow2.f32 %v3992_v4 }
 0x5b4   :  { %v4706_v7 = vpop.eup %4705  ;;  %3624 = vst [vmem:[%s6918_s13 + $0x198] sm:$0xff] %v4704_v50  ;;  %4731 = vpow2.f32 %v3994_v10  ;;  %v2166_v10 = vsub.s32 4, %v6934_v47  ;;  %v2924_v50 = vpop.f32.mrf.mxu0 }
 0x5b5   :  { %v4708_v61 = vpop.eup %4707  ;;  %3627 = vst [vmem:[%s6918_s13 + $0x1b0] sm:$0xff] %v4706_v7  ;;  %4733 = vpow2.f32 %v3993_v30  ;;  %v4921_v7 = vld [vmem:[%s6917_s12] sm:$0x3f]  ;;  %v6688_v58 = vpop.f32.mrf.mxu1 }
 0x5b6   :  { %v4710_v51 = vpop.eup %4709  ;;  %3629 = vst [vmem:[%s6918_s13 + $0x1c0] sm:$0xff] %v4708_v61  ;;  %4735 = vpow2.f32 %v3995_v38  ;;  %v2170_v38 = vsub.s32 5, %v6934_v47  ;;  %v2928_v8 = vpop.f32.mrf.mxu0 }
 0x5b7   :  { %v4712_v9 = vpop.eup %4711  ;;  %3628 = vst [vmem:[%s6918_s13 + $0x1b8] sm:$0xff] %v4710_v51  ;;  %4737 = vpow2.f32 %v3998_v60 }
 0x5b8   :  { %v4714_v14 = vpop.eup %4713  ;;  %3630 = vst [vmem:[%s6918_s13 + $0x1c8] sm:$0xff] %v4712_v9  ;;  %4739 = vpow2.f32 %v4000_v35  ;;  %v6686_v35 = vrot.slane %v4921_v7, %v2166_v10  ;;  %v6690_v51 = vrot.slane %v4921_v7, %v2170_v38 }
 0x5b9   :  { %v4716_v36 = vpop.eup %4715  ;;  %3633 = vst [vmem:[%s6918_s13 + $0x1e0] sm:$0xff] %v4714_v14  ;;  %4741 = vpow2.f32 %v3999_v29  ;;  %v6694_v14 = vpop.f32.mrf.mxu1 }
 0x5ba   :  { %v4718_v56 = vpop.eup %4717  ;;  %3635 = vst [vmem:[%s6918_s13 + $0x1f0] sm:$0xff] %v4716_v36  ;;  %4743 = vpow2.f32 %v4001_v16  ;;  %v2919_v62 = vadd.f32 %v6655_v6, %v6686_v35  ;;  %v2939_v36 = vadd.f32 %v6569_v21, %v6686_v35  ;;  %v2930_v6 = vpop.f32.mrf.mxu0 }
 0x5bb   :  { %v4720_v23 = vpop.eup %4719  ;;  %3634 = vst [vmem:[%s6918_s13 + $0x1e8] sm:$0xff] %v4718_v56  ;;  %4745 = vpow2.f32 %v4004_v12  ;;  %v2921_v56 = vadd.f32 %v2920_v0, %v6690_v51  ;;  %v2943_v0 = vadd.f32 %v6588_v31, %v6686_v35 }
 0x5bc   :  { %v4722_v34 = vpop.eup %4721  ;;  %3636 = vst [vmem:[%s6918_s13 + $0x1f8] sm:$0xff] %v4720_v23  ;;  %4747 = vpow2.f32 %v4006_v3  ;;  %v2941_v23 = vadd.f32 %v6583_v19, %v6690_v51  ;;  %v2932_v31 = vpop.f32.mrf.mxu0 }
 0x5bd   :  { %v4724_v37 = vpop.eup %4723  ;;  %3639 = vst [vmem:[%s6918_s13 + $0x210] sm:$0xff] %v4722_v34  ;;  %4749 = vpow2.f32 %v4005_v57  ;;  %v3925_v19 = vmul.f32 -1.442695, %v2921_v56 }
 0x5be   :  { %v4726_v48 = vpop.eup %4725  ;;  %3641 = vst [vmem:[%s6918_s13 + $0x220] sm:$0xff] %v4724_v37  ;;  %4751 = vpow2.f32 %v4007_v22  ;;  %v2923_v37 = vadd.f32 %v2922_v1, %v6686_v35 }
 0x5bf   :  { %v4728_v25 = vpop.eup %4727  ;;  %3640 = vst [vmem:[%s6918_s13 + $0x218] sm:$0xff] %v4726_v48  ;;  %4753 = vpow2.f32 %v4010_v53 }
 0x5c0   :  { %v4730_v5 = vpop.eup %4729  ;;  %3642 = vst [vmem:[%s6918_s13 + $0x228] sm:$0xff] %v4728_v25  ;;  %4755 = vpow2.f32 %v4012_v27  ;;  %v3924_v27 = vmul.f32 -1.442695, %v2919_v62  ;;  %v3930_v1 = vmul.f32 -1.442695, %v2923_v37 }
 0x5c1   :  { %v4732_v2 = vpop.eup %4731  ;;  %v3357_v43 = vadd.f32 1.0, %v4730_v5  ;;  %4757 = vpow2.f32 %v4011_v24  ;;  %v6702_v24 = vpop.f32.mrf.mxu1  ;;  %v2925_v5 = vadd.f32 %v2924_v50, %v6690_v51 }
 0x5c2   :  { %v4734_v44 = vpop.eup %4733  ;;  %v3359_v4 = vadd.f32 1.0, %v4732_v2  ;;  %4759 = vpow2.f32 %v4013_v41  ;;  %v3948_v41 = vmul.f32 -1.442695, %v2939_v36 }
 0x5c3   :  { %v4736_v45 = vpop.eup %4735  ;;  %4761 = vrcp.f32 %v3357_v43  ;;  %v3358_v49 = vadd.f32 1.0, %v4734_v44  ;;  %v3949_v43 = vmul.f32 -1.442695, %v2941_v23  ;;  %v2945_v44 = vadd.f32 %v6590_v59, %v6690_v51 }
 0x5c4   :  { %v4738_v55 = vpop.eup %4737  ;;  %4763 = vrcp.f32 %v3359_v4  ;;  %v3360_v30 = vadd.f32 1.0, %v4736_v45  ;;  %v2929_v45 = vadd.f32 %v2928_v8, %v6686_v35  ;;  %v2949_v59 = vadd.f32 %v6594_v40, %v6686_v35  ;;  %v2934_v40 = vpop.f32.mrf.mxu0 }
 0x5c5   :  { %v4740_v17 = vpop.eup %4739  ;;  %4765 = vrcp.f32 %v3358_v49  ;;  %v3363_v20 = vadd.f32 1.0, %v4738_v55  ;;  %v6719_v49 = vpop.f32.mrf.mxu1  ;;  %v3954_v55 = vmul.f32 -1.442695, %v2943_v0 }
 0x5c6   :  { %v4742_v33 = vpop.eup %4741  ;;  %4767 = vrcp.f32 %v3360_v30  ;;  %v3365_v11 = vadd.f32 1.0, %v4740_v17  ;;  %v3931_v17 = vmul.f32 -1.442695, %v2925_v5 }
 0x5c7   :  { %v4744_v60 = vpop.eup %4743  ;;  %4769 = vrcp.f32 %v3363_v20  ;;  %v3364_v52 = vadd.f32 1.0, %v4742_v33  ;;  %v2931_v20 = vadd.f32 %v2930_v6, %v6690_v51  ;;  %v3955_v33 = vmul.f32 -1.442695, %v2945_v44  ;;  %v6739_v7 = vpop.f32.mrf.mxu1 }
 0x5c8   :  { %v4746_v61 = vpop.eup %4745  ;;  %4771 = vrcp.f32 %v3365_v11  ;;  %v3366_v29 = vadd.f32 1.0, %v4744_v60  ;;  %v2951_v11 = vadd.f32 %v6603_v26, %v6690_v51  ;;  %v3936_v60 = vmul.f32 -1.442695, %v2929_v45 }
 0x5c9   :  { %v4748_v42 = vpop.eup %4747  ;;  %4773 = vrcp.f32 %v3364_v52  ;;  %v3369_v47 = vadd.f32 1.0, %v4746_v61  ;;  %v2933_v52 = vadd.f32 %v2932_v31, %v6686_v35  ;;  %v2953_v26 = vadd.f32 %v6620_v13, %v6686_v35  ;;  %v6758_v62 = vpop.f32.mrf.mxu1 }
 0x5ca   :  { %v4750_v16 = vpop.eup %4749  ;;  %4775 = vrcp.f32 %v3366_v29  ;;  %v3371_v54 = vadd.f32 1.0, %v4748_v42  ;;  %v3960_v29 = vmul.f32 -1.442695, %v2949_v59  ;;  %v3961_v8 = vmul.f32 -1.442695, %v2951_v11 }
 0x5cb   :  { %v4752_v9 = vpop.eup %4751  ;;  %4777 = vrcp.f32 %v3369_v47  ;;  %v3370_v12 = vadd.f32 1.0, %v4750_v16  ;;  %v3937_v47 = vmul.f32 -1.442695, %v2931_v20  ;;  %v2935_v16 = vadd.f32 %v2934_v40, %v6690_v51 }
 0x5cc   :  { %v4754_v3 = vpop.eup %4753  ;;  %4779 = vrcp.f32 %v3371_v54  ;;  %v3372_v18 = vadd.f32 1.0, %v4752_v9  ;;  %v2955_v9 = vadd.f32 %v6640_v63, %v6690_v51  ;;  %v2961_v11 = vadd.f32 %v6674_v46, %v6690_v51 }
 0x5cd   :  { %v4756_v57 = vpop.eup %4755  ;;  %4781 = vrcp.f32 %v3370_v12  ;;  %v3375_v15 = vadd.f32 1.0, %v4754_v3  ;;  %v3942_v12 = vmul.f32 -1.442695, %v2933_v52  ;;  %v3943_v63 = vmul.f32 -1.442695, %v2935_v16 }
 0x5ce   :  { %v4758_v22 = vpop.eup %4757  ;;  %4783 = vrcp.f32 %v3372_v18  ;;  %v3377_v39 = vadd.f32 1.0, %v4756_v57  ;;  %v3966_v18 = vmul.f32 -1.442695, %v2953_v26 }
 0x5cf   :  { %v4760_v53 = vpop.eup %4759  ;;  %4785 = vrcp.f32 %v3375_v15  ;;  %v3376_v34 = vadd.f32 1.0, %v4758_v22  ;;  %v3967_v15 = vmul.f32 -1.442695, %v2955_v9  ;;  %v6772_v22 = vpop.f32.mrf.mxu1 }
 0x5d0   :  { %v4762_v21 = vpop.eup %4761  ;;  %4787 = vrcp.f32 %v3377_v39  ;;  %v3378_v48 = vadd.f32 1.0, %v4760_v53 }
 0x5d1   :  { %v4764_v25 = vpop.eup %4763  ;;  %3645 = vst [vmem:[%s6918_s13 + $0x240] sm:$0xff] %v4762_v21  ;;  %4789 = vrcp.f32 %v3376_v34  ;;  %v6777_v21 = vpop.f32.mrf.mxu1 }
 0x5d2   :  { %v4766_v2 = vpop.eup %4765  ;;  %3647 = vst [vmem:[%s6918_s13 + $0x250] sm:$0xff] %v4764_v25  ;;  %4791 = vrcp.f32 %v3378_v48 }
 0x5d3   :  { %v4768_v4 = vpop.eup %4767  ;;  %3646 = vst [vmem:[%s6918_s13 + $0x248] sm:$0xff] %v4766_v2  ;;  %4793 = vpow2.f32 %v3924_v27  ;;  %v6779_v44 = vpop.f32.mrf.mxu1 }
 0x5d4   :  { %v4770_v10 = vpop.eup %4769  ;;  %3648 = vst [vmem:[%s6918_s13 + $0x258] sm:$0xff] %v4768_v4  ;;  %4795 = vpow2.f32 %v3948_v41 }
 0x5d5   :  { %v4772_v30 = vpop.eup %4771  ;;  %3651 = vst [vmem:[%s6918_s13 + $0x270] sm:$0xff] %v4770_v10  ;;  %4797 = vpow2.f32 %v3925_v19  ;;  %v2988_v20 = vpop.f32.mrf.mxu1 }
 0x5d6   :  { %v4774_v38 = vpop.eup %4773  ;;  %3653 = vst [vmem:[%s6918_s13 + $0x280] sm:$0xff] %v4772_v30  ;;  %4799 = vpow2.f32 %v3949_v43 }
 0x5d7   :  { %v4776_v50 = vpop.eup %4775  ;;  %3652 = vst [vmem:[%s6918_s13 + $0x278] sm:$0xff] %v4774_v38  ;;  %4801 = vpow2.f32 %v3930_v1  ;;  %v2990_v46 = vpop.f32.mrf.mxu1 }
 0x5d8   :  { %v4778_v61 = vpop.eup %4777  ;;  %3654 = vst [vmem:[%s6918_s13 + $0x288] sm:$0xff] %v4776_v50  ;;  %4803 = vpow2.f32 %v3954_v55 }
 0x5d9   :  { %v4780_v42 = vpop.eup %4779  ;;  %3657 = vst [vmem:[%s6918_s13 + $0x2a0] sm:$0xff] %v4778_v61  ;;  %4805 = vpow2.f32 %v3931_v17  ;;  %v2959_v17 = vadd.f32 %v6660_v28, %v6686_v35 }
 0x5da   :  { %v4782_v54 = vpop.eup %4781  ;;  %3659 = vst [vmem:[%s6918_s13 + $0x2b0] sm:$0xff] %v4780_v42  ;;  %4807 = vpow2.f32 %v3955_v33 }
 0x5db   :  { %v4784_v13 = vpop.eup %4783  ;;  %3658 = vst [vmem:[%s6918_s13 + $0x2a8] sm:$0xff] %v4782_v54  ;;  %4809 = vpow2.f32 %v3936_v60  ;;  %v2963_v60 = vadd.f32 %v6680_v32, %v6686_v35  ;;  %v3972_v42 = vmul.f32 -1.442695, %v2959_v17  ;;  %v2971_v32 = vadd.f32 %v6702_v24, %v6690_v51 }
 0x5dc   :  { %v4786_v3 = vpop.eup %4785  ;;  %3660 = vst [vmem:[%s6918_s13 + $0x2b8] sm:$0xff] %v4784_v13  ;;  %4811 = vpow2.f32 %v3960_v29  ;;  %v2965_v29 = vadd.f32 %v6688_v58, %v6690_v51  ;;  %v2973_v13 = vadd.f32 %v6719_v49, %v6686_v35  ;;  %v2975_v24 = vadd.f32 %v6739_v7, %v6690_v51 }
 0x5dd   :  { %v4788_v36 = vpop.eup %4787  ;;  %3663 = vst [vmem:[%s6918_s13 + $0x2d0] sm:$0xff] %v4786_v3  ;;  %4813 = vpow2.f32 %v3937_v47  ;;  %v2969_v47 = vadd.f32 %v6694_v14, %v6686_v35  ;;  %v3978_v58 = vmul.f32 -1.442695, %v2963_v60  ;;  %v2979_v49 = vadd.f32 %v6758_v62, %v6686_v35 }
 0x5de   :  { %v4790_v57 = vpop.eup %4789  ;;  %3665 = vst [vmem:[%s6918_s13 + $0x2e0] sm:$0xff] %v4788_v36  ;;  %4815 = vpow2.f32 %v3961_v8  ;;  %v3973_v8 = vmul.f32 -1.442695, %v2961_v11  ;;  %v3979_v14 = vmul.f32 -1.442695, %v2965_v29  ;;  %v2992_v36 = vpop.f32.mrf.mxu1  ;;  %v2981_v7 = vadd.f32 %v6772_v22, %v6690_v51 }
 0x5df   :  { %v4792_v56 = vpop.eup %4791  ;;  %3664 = vst [vmem:[%s6918_s13 + $0x2d8] sm:$0xff] %v4790_v57  ;;  %4817 = vpow2.f32 %v3942_v12  ;;  %v3985_v57 = vmul.f32 -1.442695, %v2971_v32  ;;  %v2983_v62 = vadd.f32 %v6777_v21, %v6686_v35  ;;  %v2985_v22 = vadd.f32 %v6779_v44, %v6690_v51 }
 0x5e0   :  { %v4794_v39 = vpop.eup %4793  ;;  %3666 = vst [vmem:[%s6918_s13 + $0x2e8] sm:$0xff] %v4792_v56  ;;  %4819 = vpow2.f32 %v3966_v18  ;;  %v3984_v18 = vmul.f32 -1.442695, %v2969_v47  ;;  %v3990_v56 = vmul.f32 -1.442695, %v2973_v13 }
 0x5e1   :  { %v4796_v23 = vpop.eup %4795  ;;  %v3289_v6 = vadd.f32 1.0, %v4794_v39  ;;  %4821 = vpow2.f32 %v3943_v63  ;;  %v3997_v21 = vmul.f32 -1.442695, %v2981_v7 }
 0x5e2   :  { %v4798_v53 = vpop.eup %4797  ;;  %v3313_v34 = vadd.f32 1.0, %v4796_v23  ;;  %4823 = vpow2.f32 %v3967_v15  ;;  %v3991_v23 = vmul.f32 -1.442695, %v2975_v24 }
 0x5e3   :  { %v4800_v27 = vpop.eup %4799  ;;  %4825 = vrcp.f32 %v3289_v6  ;;  %v3290_v37 = vadd.f32 1.0, %v4798_v53  ;;  %v3996_v53 = vmul.f32 -1.442695, %v2979_v49 }
 0x5e4   :  { %v4802_v48 = vpop.eup %4801  ;;  %4827 = vrcp.f32 %v3313_v34  ;;  %v3314_v41 = vadd.f32 1.0, %v4800_v27  ;;  %v2989_v34 = vadd.f32 %v2988_v20, %v6686_v35  ;;  %v2994_v27 = vpop.f32.mrf.mxu1 }
 0x5e5   :  { %v4804_v0 = vpop.eup %4803  ;;  %4829 = vrcp.f32 %v3290_v37  ;;  %v3295_v25 = vadd.f32 1.0, %v4802_v48  ;;  %v2991_v48 = vadd.f32 %v2990_v46, %v6690_v51 }
 0x5e6   :  { %v4806_v19 = vpop.eup %4805  ;;  %4831 = vrcp.f32 %v3314_v41  ;;  %v3319_v5 = vadd.f32 1.0, %v4804_v0  ;;  %v4002_v0 = vmul.f32 -1.442695, %v2983_v62  ;;  %v4008_v44 = vmul.f32 -1.442695, %v2989_v34 }
 0x5e7   :  { %v4808_v2 = vpop.eup %4807  ;;  %4833 = vrcp.f32 %v3295_v25  ;;  %v3296_v43 = vadd.f32 1.0, %v4806_v19  ;;  %v2993_v25 = vadd.f32 %v2992_v36, %v6686_v35  ;;  %v4009_v35 = vmul.f32 -1.442695, %v2991_v48 }
 0x5e8   :  { %v4810_v31 = vpop.eup %4809  ;;  %4835 = vrcp.f32 %v3319_v5  ;;  %v3320_v4 = vadd.f32 1.0, %v4808_v2  ;;  %v4003_v5 = vmul.f32 -1.442695, %v2985_v22  ;;  %v2995_v2 = vadd.f32 %v2994_v27, %v6690_v51 }
 0x5e9   :  { %v4812_v1 = vpop.eup %4811  ;;  %4837 = vrcp.f32 %v3296_v43  ;;  %v3301_v45 = vadd.f32 1.0, %v4810_v31  ;;  %v4014_v51 = vmul.f32 -1.442695, %v2993_v25 }
 0x5ea   :  { %v4814_v10 = vpop.eup %4813  ;;  %4839 = vrcp.f32 %v3320_v4  ;;  %v3325_v55 = vadd.f32 1.0, %v4812_v1 }
 0x5eb   :  { %v4816_v59 = vpop.eup %4815  ;;  %4841 = vrcp.f32 %v3301_v45  ;;  %v3302_v30 = vadd.f32 1.0, %v4814_v10  ;;  %v4015_v45 = vmul.f32 -1.442695, %v2995_v2 }
 0x5ec   :  { %v4818_v38 = vpop.eup %4817  ;;  %4843 = vrcp.f32 %v3325_v55  ;;  %v3326_v33 = vadd.f32 1.0, %v4816_v59 }
 0x5ed   :  { %v4820_v40 = vpop.eup %4819  ;;  %4845 = vrcp.f32 %v3302_v30  ;;  %v3307_v50 = vadd.f32 1.0, %v4818_v38 }
 0x5ee   :  { %v4822_v52 = vpop.eup %4821  ;;  %4847 = vrcp.f32 %v3326_v33  ;;  %v3331_v61 = vadd.f32 1.0, %v4820_v40 }
 0x5ef   :  { %v4824_v28 = vpop.eup %4823  ;;  %4849 = vrcp.f32 %v3307_v50  ;;  %v3308_v26 = vadd.f32 1.0, %v4822_v52 }
 0x5f0   :  { %v4826_v16 = vpop.eup %4825  ;;  %4851 = vrcp.f32 %v3331_v61  ;;  %v3332_v54 = vadd.f32 1.0, %v4824_v28 }
 0x5f1   :  { %v4828_v9 = vpop.eup %4827  ;;  %3577 = vst [vmem:[%s6918_s13 + $0x20] sm:$0xff] %v4826_v16  ;;  %4853 = vrcp.f32 %v3308_v26 }
 0x5f2   :  { %v4830_v12 = vpop.eup %4829  ;;  %3601 = vst [vmem:[%s6918_s13 + $0xe0] sm:$0xff] %v4828_v9  ;;  %4855 = vrcp.f32 %v3332_v54 }
 0x5f3   :  { %v4832_v3 = vpop.eup %4831  ;;  %3578 = vst [vmem:[%s6918_s13 + $0x28] sm:$0xff] %v4830_v12  ;;  %4857 = vpow2.f32 %v3972_v42 }
 0x5f4   :  { %v4834_v63 = vpop.eup %4833  ;;  %3602 = vst [vmem:[%s6918_s13 + $0xe8] sm:$0xff] %v4832_v3  ;;  %4859 = vpow2.f32 %v3973_v8 }
 0x5f5   :  { %v4836_v15 = vpop.eup %4835  ;;  %3583 = vst [vmem:[%s6918_s13 + $0x50] sm:$0xff] %v4834_v63  ;;  %4861 = vpow2.f32 %v3978_v58 }
 0x5f6   :  { %v4838_v39 = vpop.eup %4837  ;;  %3607 = vst [vmem:[%s6918_s13 + $0x110] sm:$0xff] %v4836_v15  ;;  %4863 = vpow2.f32 %v3979_v14 }
 0x5f7   :  { %v4840_v6 = vpop.eup %4839  ;;  %3584 = vst [vmem:[%s6918_s13 + $0x58] sm:$0xff] %v4838_v39  ;;  %4865 = vpow2.f32 %v3984_v18 }
 0x5f8   :  { %v4842_v37 = vpop.eup %4841  ;;  %3608 = vst [vmem:[%s6918_s13 + $0x118] sm:$0xff] %v4840_v6  ;;  %4867 = vpow2.f32 %v3985_v57 }
 0x5f9   :  { %v4844_v41 = vpop.eup %4843  ;;  %3589 = vst [vmem:[%s6918_s13 + $0x80] sm:$0xff] %v4842_v37  ;;  %4869 = vpow2.f32 %v3990_v56 }
 0x5fa   :  { %v4846_v19 = vpop.eup %4845  ;;  %3613 = vst [vmem:[%s6918_s13 + $0x140] sm:$0xff] %v4844_v41  ;;  %4871 = vpow2.f32 %v3991_v23 }
 0x5fb   :  { %v4848_v43 = vpop.eup %4847  ;;  %3590 = vst [vmem:[%s6918_s13 + $0x88] sm:$0xff] %v4846_v19  ;;  %4873 = vpow2.f32 %v3996_v53 }
 0x5fc   :  { %v4850_v31 = vpop.eup %4849  ;;  %3614 = vst [vmem:[%s6918_s13 + $0x148] sm:$0xff] %v4848_v43  ;;  %4875 = vpow2.f32 %v3997_v21 }
 0x5fd   :  { %v4852_v4 = vpop.eup %4851  ;;  %3595 = vst [vmem:[%s6918_s13 + $0xb0] sm:$0xff] %v4850_v31  ;;  %4877 = vpow2.f32 %v4002_v0 }
 0x5fe   :  { %v4854_v1 = vpop.eup %4853  ;;  %3619 = vst [vmem:[%s6918_s13 + $0x170] sm:$0xff] %v4852_v4  ;;  %4879 = vpow2.f32 %v4003_v5 }
 0x5ff   :  { %v4856_v10 = vpop.eup %4855  ;;  %3596 = vst [vmem:[%s6918_s13 + $0xb8] sm:$0xff] %v4854_v1  ;;  %4881 = vpow2.f32 %v4008_v44 }
 0x600   :  { %v4858_v55 = vpop.eup %4857  ;;  %3620 = vst [vmem:[%s6918_s13 + $0x178] sm:$0xff] %v4856_v10  ;;  %4883 = vpow2.f32 %v4009_v35 }
 0x601   :  { %v4860_v59 = vpop.eup %4859  ;;  %v3337_v30 = vadd.f32 1.0, %v4858_v55  ;;  %4885 = vpow2.f32 %v4014_v51 }
 0x602   :  { %v4862_v17 = vpop.eup %4861  ;;  %v3338_v20 = vadd.f32 1.0, %v4860_v59  ;;  %4887 = vpow2.f32 %v4015_v45 }
 0x603   :  { %v4864_v38 = vpop.eup %4863  ;;  %4889 = vrcp.f32 %v3337_v30  ;;  %v3343_v33 = vadd.f32 1.0, %v4862_v17 }
 0x604   :  { %v4866_v11 = vpop.eup %4865  ;;  %4891 = vrcp.f32 %v3338_v20  ;;  %v3344_v40 = vadd.f32 1.0, %v4864_v38 }
 0x605   :  { %v4868_v50 = vpop.eup %4867  ;;  %4893 = vrcp.f32 %v3343_v33  ;;  %v3349_v60 = vadd.f32 1.0, %v4866_v11 }
 0x606   :  { %v4870_v52 = vpop.eup %4869  ;;  %4895 = vrcp.f32 %v3344_v40  ;;  %v3350_v61 = vadd.f32 1.0, %v4868_v50 }
 0x607   :  { %v4872_v29 = vpop.eup %4871  ;;  %4897 = vrcp.f32 %v3349_v60  ;;  %v3355_v28 = vadd.f32 1.0, %v4870_v52 }
 0x608   :  { %v4874_v26 = vpop.eup %4873  ;;  %4899 = vrcp.f32 %v3350_v61  ;;  %v3356_v42 = vadd.f32 1.0, %v4872_v29 }
 0x609   :  { %v4876_v47 = vpop.eup %4875  ;;  %4901 = vrcp.f32 %v3355_v28  ;;  %v3361_v46 = vadd.f32 1.0, %v4874_v26 }
 0x60a   :  { %v4878_v16 = vpop.eup %4877  ;;  %4903 = vrcp.f32 %v3356_v42  ;;  %v3362_v54 = vadd.f32 1.0, %v4876_v47 }
 0x60b   :  { %v4880_v8 = vpop.eup %4879  ;;  %4905 = vrcp.f32 %v3361_v46  ;;  %v3367_v32 = vadd.f32 1.0, %v4878_v16 }
 0x60c   :  { %v4882_v9 = vpop.eup %4881  ;;  %4907 = vrcp.f32 %v3362_v54  ;;  %v3368_v58 = vadd.f32 1.0, %v4880_v8 }
 0x60d   :  { %v4884_v13 = vpop.eup %4883  ;;  %4909 = vrcp.f32 %v3367_v32  ;;  %v3373_v12 = vadd.f32 1.0, %v4882_v9 }
 0x60e   :  { %v4886_v14 = vpop.eup %4885  ;;  %4911 = vrcp.f32 %v3368_v58  ;;  %v3374_v24 = vadd.f32 1.0, %v4884_v13 }
 0x60f   :  { %v4888_v3 = vpop.eup %4887  ;;  %4913 = vrcp.f32 %v3373_v12  ;;  %v3379_v18 = vadd.f32 1.0, %v4886_v14 }
 0x610   :  { %v4890_v49 = vpop.eup %4889  ;;  %4915 = vrcp.f32 %v3374_v24  ;;  %v3380_v36 = vadd.f32 1.0, %v4888_v3 }
 0x611   :  { %v4892_v63 = vpop.eup %4891  ;;  %3625 = vst [vmem:[%s6918_s13 + $0x1a0] sm:$0xff] %v4890_v49  ;;  %4917 = vrcp.f32 %v3379_v18 }
 0x612   :  { %v4894_v57 = vpop.eup %4893  ;;  %3626 = vst [vmem:[%s6918_s13 + $0x1a8] sm:$0xff] %v4892_v63  ;;  %4919 = vrcp.f32 %v3380_v36 }
 0x613   :  { %v4896_v7 = vpop.eup %4895  ;;  %3631 = vst [vmem:[%s6918_s13 + $0x1d0] sm:$0xff] %v4894_v57 }
 0x614   :  { %v4898_v15 = vpop.eup %4897  ;;  %3632 = vst [vmem:[%s6918_s13 + $0x1d8] sm:$0xff] %v4896_v7 }
 0x615   :  { %v4900_v56 = vpop.eup %4899  ;;  %3637 = vst [vmem:[%s6918_s13 + $0x200] sm:$0xff] %v4898_v15 }
 0x616   :  { %v4902_v62 = vpop.eup %4901  ;;  %3638 = vst [vmem:[%s6918_s13 + $0x208] sm:$0xff] %v4900_v56 }
 0x617   :  { %v4904_v39 = vpop.eup %4903  ;;  %3643 = vst [vmem:[%s6918_s13 + $0x230] sm:$0xff] %v4902_v62 }
 0x618   :  { %v4906_v23 = vpop.eup %4905  ;;  %3644 = vst [vmem:[%s6918_s13 + $0x238] sm:$0xff] %v4904_v39 }
 0x619   :  { %v4908_v22 = vpop.eup %4907  ;;  %3649 = vst [vmem:[%s6918_s13 + $0x260] sm:$0xff] %v4906_v23 }
 0x61a   :  { %v4910_v6 = vpop.eup %4909  ;;  %3650 = vst [vmem:[%s6918_s13 + $0x268] sm:$0xff] %v4908_v22 }
 0x61b   :  { %v4912_v53 = vpop.eup %4911  ;;  %3655 = vst [vmem:[%s6918_s13 + $0x290] sm:$0xff] %v4910_v6 }
 0x61c   :  { %v4914_v34 = vpop.eup %4913  ;;  %3656 = vst [vmem:[%s6918_s13 + $0x298] sm:$0xff] %v4912_v53 }
 0x61d   :  { %v4916_v27 = vpop.eup %4915  ;;  %3661 = vst [vmem:[%s6918_s13 + $0x2c0] sm:$0xff] %v4914_v34 }
 0x61e   :  { %v4918_v37 = vpop.eup %4917  ;;  %3662 = vst [vmem:[%s6918_s13 + $0x2c8] sm:$0xff] %v4916_v27 }
 0x61f   :  { %v4920_v21 = vpop.eup %4919  ;;  %3667 = vst [vmem:[%s6918_s13 + $0x2f0] sm:$0xff] %v4918_v37 }
 0x620   :  { %3668 = vst [vmem:[%s6918_s13 + $0x2f8] sm:$0xff] %v4920_v21 }

</bundles_post_ra>
